<compile_context>
chip_gen: v7x
topology: tpu7x:2x2x1
jax: 0.10.0
libtpu: 0.0.40
codegen_flags: <defaults>
</compile_context>

<pallas_src>
import numpy as np
import jax
import jax.numpy as jnp
from jax import lax
from jax.experimental import pallas as pl
from jax.experimental.pallas import tpu as pltpu

SELU_ALPHA = 1.6732632423543772
SELU_SCALE = 1.0507009873554805
NEG_INF = -10000000.0


def _selu(x):
    return SELU_SCALE * jnp.where(x > 0, x, SELU_ALPHA * (jnp.exp(x) - 1.0))


def _round_up(x, m):
    return (x + m - 1) // m * m


def _attr_decoder_kernel(tgt_ref, ctx0_ref, ctx1_ref, h0_ref, attr_tab_ref,
                         wi_ref, wh_ref, bi_ref, bh_ref,
                         win_ref, bin_ref, wout_ref, bout_ref,
                         wv_ref, bv_ref,
                         out_ref):
    S, Bp, Vp = out_ref.shape
    E = h0_ref.shape[1]

    # ---- loop-invariants hoisted once (iota / weights / bias broadcasts) ----
    lane = lax.broadcasted_iota(jnp.int32, (Bp, Vp), 1)
    ctx0 = ctx0_ref[...]                     # (Bp, E) f32
    ctx1 = ctx1_ref[...]                     # (Bp, E) f32
    attr_tab = attr_tab_ref[...]             # (Vp, E) bf16
    w_i = wi_ref[...]                        # (E, 3E) bf16
    w_h = wh_ref[...]                        # (E, 3E) bf16
    w_in = win_ref[...]                      # (E, E)  bf16
    w_out = wout_ref[...]                    # (2E, E) bf16
    w_voc = wv_ref[...]                      # (E, Vp) bf16
    b_i = jnp.broadcast_to(bi_ref[...], (Bp, 3 * E))
    b_h = jnp.broadcast_to(bh_ref[...], (Bp, 3 * E))
    b_in = jnp.broadcast_to(bin_ref[...], (Bp, E))
    b_out = jnp.broadcast_to(bout_ref[...], (Bp, E))
    b_voc = jnp.broadcast_to(bv_ref[...], (Bp, Vp))

    def mm(a, w):  # bf16 MXU matmul, f32 accumulation
        return jnp.dot(a.astype(jnp.bfloat16), w, preferred_element_type=jnp.float32)

    def step(s, carry):
        h, ban = carry
        tgt = tgt_ref[s]                                        # (Bp, 1) int32
        hit = (lane == tgt).astype(jnp.float32)                 # (Bp, Vp) one-hot

        # in-kernel embedding gather: one-hot @ table (reuses `hit` of the mask)
        x = mm(hit, attr_tab)                                   # (Bp, E)

        # --- fused GRUCell (PyTorch gate order r, z, n): 2 wide matmuls ---
        gi = mm(x, w_i) + b_i                                   # (Bp, 3E)
        gh = mm(h, w_h) + b_h                                   # (Bp, 3E)
        r = jax.nn.sigmoid(gi[:, :E] + gh[:, :E])
        z = jax.nn.sigmoid(gi[:, E:2 * E] + gh[:, E:2 * E])
        n = jnp.tanh(gi[:, 2 * E:] + r * gh[:, 2 * E:])
        h_new = (1.0 - z) * n + z * h

        # --- Luong gate attention over the 2-slot [user, item] context ---
        gamma = _selu(mm(h_new, w_in) + b_in)                   # (Bp, E)
        s0 = jnp.sum(ctx0 * gamma, axis=-1, keepdims=True)      # (Bp, 1)
        s1 = jnp.sum(ctx1 * gamma, axis=-1, keepdims=True)
        m = jnp.maximum(s0, s1)
        e0 = jnp.exp(s0 - m)
        e1 = jnp.exp(s1 - m)
        inv = pl.reciprocal(e0 + e1, approx=True)               # EUP divide
        c_t = (e0 * inv) * ctx0 + (e1 * inv) * ctx1             # (Bp, E)

        # --- fused linear_output on cat([h, c_t]) + vocab projection ---
        hc = jnp.concatenate([h_new, c_t], axis=-1)             # (Bp, 2E)
        out = _selu(mm(hc, w_out) + b_out)                      # (Bp, E)
        logit = mm(out, w_voc) + b_voc                          # (Bp, Vp)

        # --- cumulative ban mask: logits[i, j, targets[i, :j+1]] = -1e7 ---
        ban_new = jnp.maximum(ban, hit)
        logit = jnp.where(ban_new > 0.0, jnp.float32(NEG_INF), logit)

        out_ref[s] = logit                                      # full (Bp,Vp) vreg store
        return (h_new, ban_new)

    h0 = h0_ref[...]
    ban0 = jnp.zeros((Bp, Vp), jnp.float32)
    lax.fori_loop(0, S, step, (h0, ban0), unroll=True)


def attr_network_forward(params, user_ids, item_ids, input_targets):
    B, S = input_targets.shape
    E = params["attr_emb"].shape[1]
    V = params["w_voc"].shape[1]
    Bp = _round_up(B, 8)        # sublane-dense batch
    Vp = _round_up(V, 128)      # lane-dense vocab

    f32, bf16 = jnp.float32, jnp.bfloat16

    # glue: user/item embedding lookups, batch/vocab padding, weight packing
    user_embed = params["user_emb"][user_ids].astype(f32)       # (B, E)
    item_embed = params["item_emb"][item_ids].astype(f32)       # (B, E)

    def pad_b(x):
        return jnp.pad(x, ((0, Bp - B), (0, 0)))

    ctx0 = pad_b(user_embed)                                    # (Bp, E)
    ctx1 = pad_b(item_embed)                                    # (Bp, E)
    h0 = ctx0 + ctx1                                            # (Bp, E)

    tgt = jnp.transpose(input_targets.astype(jnp.int32))        # (S, B)
    tgt = jnp.pad(tgt, ((0, 0), (0, Bp - B)))[:, :, None]       # (S, Bp, 1)

    attr_tab = jnp.pad(params["attr_emb"], ((0, Vp - V), (0, 0))).astype(bf16)   # (Vp, E)

    gw, gb = params["gru_w"], params["gru_b"]
    w_i = jnp.concatenate([gw[0], gw[1], gw[2]], axis=1).astype(bf16)            # (E, 3E)
    w_h = jnp.concatenate([gw[3], gw[4], gw[5]], axis=1).astype(bf16)            # (E, 3E)
    b_i = jnp.concatenate([gb[0], gb[1], gb[2]], axis=1)                         # (1, 3E)
    b_h = jnp.concatenate([gb[3], gb[4], gb[5]], axis=1)                         # (1, 3E)

    w_in = params["w_in"].astype(bf16)                                           # (E, E)
    w_out = jnp.concatenate([params["w_out_h"], params["w_out_c"]], axis=0).astype(bf16)  # (2E, E)
    w_voc = jnp.pad(params["w_voc"], ((0, 0), (0, Vp - V))).astype(bf16)         # (E, Vp)
    b_voc = jnp.pad(params["b_voc"], ((0, 0), (0, Vp - V)))                      # (1, Vp)

    def full(shape):
        return pl.BlockSpec(shape, lambda i, _n=len(shape): (0,) * _n)

    out = pl.pallas_call(
        _attr_decoder_kernel,
        out_shape=jax.ShapeDtypeStruct((S, Bp, Vp), f32),
        grid_spec=pltpu.PrefetchScalarGridSpec(
            num_scalar_prefetch=0,
            grid=(1,),                                   # single invocation, loop inside
            in_specs=[
                full((S, Bp, 1)),                        # targets (VMEM-resident, loaded once)
                full((Bp, E)), full((Bp, E)),            # ctx0 / ctx1 (contiguous slabs)
                full((Bp, E)),                           # init hidden
                full((Vp, E)),                           # attr embedding table (bf16)
                full((E, 3 * E)), full((E, 3 * E)),      # fused GRU weights (bf16)
                full((1, 3 * E)), full((1, 3 * E)),      # fused GRU biases
                full((E, E)), full((1, E)),              # linear_in
                full((2 * E, E)), full((1, E)),          # fused linear_output
                full((E, Vp)), full((1, Vp)),            # vocab projection
            ],
            out_specs=full((S, Bp, Vp)),
        ),
        compiler_params=pltpu.CompilerParams(
            dimension_semantics=("arbitrary",)),
    )(tgt, ctx0, ctx1, h0, attr_tab,
      w_i, w_h, b_i, b_h,
      w_in, params["b_in"], w_out, params["b_out"],
      w_voc, b_voc)

    return jnp.transpose(out, (1, 0, 2))[:B, :, :V]             # (B, S, V)


def init_params(key, *, vocab_size, user_num, item_num, emb_size):
    E, V = emb_size, vocab_size
    ks = jax.random.split(key, 12)
    u = lambda k, shape: jax.random.uniform(k, shape, jnp.float32, -0.1, 0.1)
    return dict(
        user_emb=u(ks[0], (user_num, E)),
        item_emb=u(ks[1], (item_num, E)),
        attr_emb=u(ks[2], (V, E)),
        gru_w=u(ks[3], (6, E, E)),   # [W_ir, W_iz, W_in, W_hr, W_hz, W_hn] in (in,out) form
        gru_b=u(ks[4], (6, 1, E)),   # [b_ir, b_iz, b_in, b_hr, b_hz, b_hn]
        w_in=u(ks[5], (E, E)), b_in=u(ks[6], (1, E)),
        w_out_h=u(ks[7], (E, E)), w_out_c=u(ks[8], (E, E)), b_out=u(ks[9], (1, E)),
        w_voc=u(ks[10], (E, V)), b_voc=u(ks[11], (1, V)),
    )


def ref_forward(params, user_ids, item_ids, input_targets):
    """Pure-JAX f32 reference mirroring the PyTorch forward (eval-mode dropout)."""
    B, S = input_targets.shape
    V = params["w_voc"].shape[1]
    user_embed = params["user_emb"][user_ids]
    item_embed = params["item_emb"][item_ids]
    context = jnp.stack([user_embed, item_embed], axis=1)        # (B, 2, E)
    h = user_embed + item_embed
    logits = []
    for i in range(S):
        x = params["attr_emb"][input_targets[:, i]]
        gi_r = x @ params["gru_w"][0] + params["gru_b"][0]
        gi_z = x @ params["gru_w"][1] + params["gru_b"][1]
        gi_n = x @ params["gru_w"][2] + params["gru_b"][2]
        gh_r = h @ params["gru_w"][3] + params["gru_b"][3]
        gh_z = h @ params["gru_w"][4] + params["gru_b"][4]
        gh_n = h @ params["gru_w"][5] + params["gru_b"][5]
        r = jax.nn.sigmoid(gi_r + gh_r)
        z = jax.nn.sigmoid(gi_z + gh_z)
        n = jnp.tanh(gi_n + r * gh_n)
        h = (1.0 - z) * n + z * h
        gamma = _selu(h @ params["w_in"] + params["b_in"])
        w = jnp.sum(context * gamma[:, None, :], axis=-1)        # (B, 2)
        w = jax.nn.softmax(w, axis=-1)
        c_t = jnp.sum(w[:, :, None] * context, axis=1)           # (B, E)
        out = _selu(h @ params["w_out_h"] + c_t @ params["w_out_c"] + params["b_out"])
        logits.append(out @ params["w_voc"] + params["b_voc"])
    logits = jnp.stack(logits, axis=1)                           # (B, S, V)
    onehot = jax.nn.one_hot(input_targets, V, dtype=jnp.float32)
    seen = jnp.cumsum(onehot, axis=1) > 0
    return jnp.where(seen, NEG_INF, logits)


if __name__ == "__main__":
    B, S, E, V = 4, 8, 32, 64
    user_num, item_num = 10, 12

    key = jax.random.PRNGKey(0)
    kp, ku, ki, kt = jax.random.split(key, 4)
    params = init_params(kp, vocab_size=V, user_num=user_num,
                         item_num=item_num, emb_size=E)
    user_ids = jax.random.randint(ku, (B,), 0, user_num)
    item_ids = jax.random.randint(ki, (B,), 0, item_num)
    input_targets = jax.random.randint(kt, (B, S), 3, V)

    out = attr_network_forward(params, user_ids, item_ids, input_targets)
    out = jax.block_until_ready(out)

    ref = ref_forward(params, user_ids, item_ids, input_targets)
    np.testing.assert_allclose(np.asarray(out), np.asarray(ref), rtol=1e-2, atol=1e-2)
    print("KERNEL_OK")
</pallas_src>

<mosaic_0001>
module attributes {stable_mosaic.version = 11 : i64} {
  func.func @_attr_decoder_kernel(%arg0: i32, %arg1: memref<8x8x1xi32, #tpu.memory_space<vmem>>, %arg2: memref<8x32xf32, #tpu.memory_space<vmem>>, %arg3: memref<8x32xf32, #tpu.memory_space<vmem>>, %arg4: memref<8x32xf32, #tpu.memory_space<vmem>>, %arg5: memref<128x32xbf16, #tpu.memory_space<vmem>>, %arg6: memref<32x96xbf16, #tpu.memory_space<vmem>>, %arg7: memref<32x96xbf16, #tpu.memory_space<vmem>>, %arg8: memref<1x96xf32, #tpu.memory_space<vmem>>, %arg9: memref<1x96xf32, #tpu.memory_space<vmem>>, %arg10: memref<32x32xbf16, #tpu.memory_space<vmem>>, %arg11: memref<1x32xf32, #tpu.memory_space<vmem>>, %arg12: memref<64x32xbf16, #tpu.memory_space<vmem>>, %arg13: memref<1x32xf32, #tpu.memory_space<vmem>>, %arg14: memref<32x128xbf16, #tpu.memory_space<vmem>>, %arg15: memref<1x128xf32, #tpu.memory_space<vmem>>, %arg16: memref<8x8x128xf32, #tpu.memory_space<vmem>>) attributes {dimension_semantics = [#tpu.dimension_semantics<arbitrary>], iteration_bounds = array<i64: 1>, scalar_prefetch = 0 : i64, scratch_operands = 0 : i64, tpu.core_type = #tpu.core_type<tc>, window_params = [{pipeline_mode = #tpu.pipeline_mode<synchronous>, transform_indices = @transform_0, window_bounds = array<i64: 8, 8, 1>}, {pipeline_mode = #tpu.pipeline_mode<synchronous>, transform_indices = @transform_1, window_bounds = array<i64: 8, 32>}, {pipeline_mode = #tpu.pipeline_mode<synchronous>, transform_indices = @transform_2, window_bounds = array<i64: 8, 32>}, {pipeline_mode = #tpu.pipeline_mode<synchronous>, transform_indices = @transform_3, window_bounds = array<i64: 8, 32>}, {pipeline_mode = #tpu.pipeline_mode<synchronous>, transform_indices = @transform_4, window_bounds = array<i64: 128, 32>}, {pipeline_mode = #tpu.pipeline_mode<synchronous>, transform_indices = @transform_5, window_bounds = array<i64: 32, 96>}, {pipeline_mode = #tpu.pipeline_mode<synchronous>, transform_indices = @transform_6, window_bounds = array<i64: 32, 96>}, {pipeline_mode = #tpu.pipeline_mode<synchronous>, transform_indices = @transform_7, window_bounds = array<i64: 1, 96>}, {pipeline_mode = #tpu.pipeline_mode<synchronous>, transform_indices = @transform_8, window_bounds = array<i64: 1, 96>}, {pipeline_mode = #tpu.pipeline_mode<synchronous>, transform_indices = @transform_9, window_bounds = array<i64: 32, 32>}, {pipeline_mode = #tpu.pipeline_mode<synchronous>, transform_indices = @transform_10, window_bounds = array<i64: 1, 32>}, {pipeline_mode = #tpu.pipeline_mode<synchronous>, transform_indices = @transform_11, window_bounds = array<i64: 64, 32>}, {pipeline_mode = #tpu.pipeline_mode<synchronous>, transform_indices = @transform_12, window_bounds = array<i64: 1, 32>}, {pipeline_mode = #tpu.pipeline_mode<synchronous>, transform_indices = @transform_13, window_bounds = array<i64: 32, 128>}, {pipeline_mode = #tpu.pipeline_mode<synchronous>, transform_indices = @transform_14, window_bounds = array<i64: 1, 128>}, {pipeline_mode = #tpu.pipeline_mode<synchronous>, transform_indices = @transform_15, window_bounds = array<i64: 8, 8, 128>}]} {
    %0 = tpu.iota {dimensions = array<i32: 1>} : vector<8x128xi32>
    %c0 = arith.constant 0 : index
    %c0_0 = arith.constant 0 : index
    %1 = vector.load %arg2[%c0, %c0_0] : memref<8x32xf32, #tpu.memory_space<vmem>>, vector<8x32xf32>
    %c0_1 = arith.constant 0 : index
    %c0_2 = arith.constant 0 : index
    %2 = vector.load %arg3[%c0_1, %c0_2] : memref<8x32xf32, #tpu.memory_space<vmem>>, vector<8x32xf32>
    %c0_3 = arith.constant 0 : index
    %c0_4 = arith.constant 0 : index
    %3 = vector.load %arg5[%c0_3, %c0_4] : memref<128x32xbf16, #tpu.memory_space<vmem>>, vector<128x32xbf16>
    %c0_5 = arith.constant 0 : index
    %c0_6 = arith.constant 0 : index
    %4 = vector.load %arg6[%c0_5, %c0_6] : memref<32x96xbf16, #tpu.memory_space<vmem>>, vector<32x96xbf16>
    %c0_7 = arith.constant 0 : index
    %c0_8 = arith.constant 0 : index
    %5 = vector.load %arg7[%c0_7, %c0_8] : memref<32x96xbf16, #tpu.memory_space<vmem>>, vector<32x96xbf16>
    %c0_9 = arith.constant 0 : index
    %c0_10 = arith.constant 0 : index
    %6 = vector.load %arg10[%c0_9, %c0_10] : memref<32x32xbf16, #tpu.memory_space<vmem>>, vector<32x32xbf16>
    %c0_11 = arith.constant 0 : index
    %c0_12 = arith.constant 0 : index
    %7 = vector.load %arg12[%c0_11, %c0_12] : memref<64x32xbf16, #tpu.memory_space<vmem>>, vector<64x32xbf16>
    %c0_13 = arith.constant 0 : index
    %c0_14 = arith.constant 0 : index
    %8 = vector.load %arg14[%c0_13, %c0_14] : memref<32x128xbf16, #tpu.memory_space<vmem>>, vector<32x128xbf16>
    %c0_15 = arith.constant 0 : index
    %c0_16 = arith.constant 0 : index
    %9 = vector.load %arg8[%c0_15, %c0_16] : memref<1x96xf32, #tpu.memory_space<vmem>>, vector<1x96xf32>
    %10 = vector.shape_cast %9 : vector<1x96xf32> to vector<1x96xf32>
    %11 = vector.broadcast %10 : vector<1x96xf32> to vector<8x96xf32>
    %c0_17 = arith.constant 0 : index
    %c0_18 = arith.constant 0 : index
    %12 = vector.load %arg9[%c0_17, %c0_18] : memref<1x96xf32, #tpu.memory_space<vmem>>, vector<1x96xf32>
    %13 = vector.shape_cast %12 : vector<1x96xf32> to vector<1x96xf32>
    %14 = vector.broadcast %13 : vector<1x96xf32> to vector<8x96xf32>
    %c0_19 = arith.constant 0 : index
    %c0_20 = arith.constant 0 : index
    %15 = vector.load %arg11[%c0_19, %c0_20] : memref<1x32xf32, #tpu.memory_space<vmem>>, vector<1x32xf32>
    %16 = vector.shape_cast %15 : vector<1x32xf32> to vector<1x32xf32>
    %17 = vector.broadcast %16 : vector<1x32xf32> to vector<8x32xf32>
    %c0_21 = arith.constant 0 : index
    %c0_22 = arith.constant 0 : index
    %18 = vector.load %arg13[%c0_21, %c0_22] : memref<1x32xf32, #tpu.memory_space<vmem>>, vector<1x32xf32>
    %19 = vector.shape_cast %18 : vector<1x32xf32> to vector<1x32xf32>
    %20 = vector.broadcast %19 : vector<1x32xf32> to vector<8x32xf32>
    %c0_23 = arith.constant 0 : index
    %c0_24 = arith.constant 0 : index
    %21 = vector.load %arg15[%c0_23, %c0_24] : memref<1x128xf32, #tpu.memory_space<vmem>>, vector<1x128xf32>
    %22 = vector.shape_cast %21 : vector<1x128xf32> to vector<1x128xf32>
    %23 = vector.broadcast %22 : vector<1x128xf32> to vector<8x128xf32>
    %c0_25 = arith.constant 0 : index
    %c0_26 = arith.constant 0 : index
    %24 = vector.load %arg4[%c0_25, %c0_26] : memref<8x32xf32, #tpu.memory_space<vmem>>, vector<8x32xf32>
    %cst = arith.constant 0.000000e+00 : f32
    %25 = vector.broadcast %cst : f32 to vector<8x128xf32>
    %c0_i32 = arith.constant 0 : i32
    %26 = arith.index_cast %c0_i32 : i32 to index
    %c0_27 = arith.constant 0 : index
    %c0_28 = arith.constant 0 : index
    %27 = vector.load %arg1[%26, %c0_27, %c0_28] : memref<8x8x1xi32, #tpu.memory_space<vmem>>, vector<1x8x1xi32>
    %28 = vector.shape_cast %27 : vector<1x8x1xi32> to vector<8x1xi32>
    %29 = vector.broadcast %28 : vector<8x1xi32> to vector<8x128xi32>
    %30 = arith.cmpi eq, %0, %29 : vector<8x128xi32>
    %31 = arith.extui %30 : vector<8x128xi1> to vector<8x128xi32>
    %32 = arith.sitofp %31 : vector<8x128xi32> to vector<8x128xf32>
    %33 = arith.truncf %32 : vector<8x128xf32> to vector<8x128xbf16>
    %cst_29 = arith.constant dense<0.000000e+00> : vector<8x32xf32>
    %34 = tpu.matmul %33, %3, %cst_29 {dimension_numbers = #tpu.dot_dimension_numbers<[1], [0], [0], [1], [0, 0, 1, 1], [], []>} : vector<8x128xbf16>, vector<128x32xbf16>, vector<8x32xf32> -> vector<8x32xf32>
    %35 = arith.truncf %34 : vector<8x32xf32> to vector<8x32xbf16>
    %cst_30 = arith.constant dense<0.000000e+00> : vector<8x96xf32>
    %36 = tpu.matmul %35, %4, %cst_30 {dimension_numbers = #tpu.dot_dimension_numbers<[1], [0], [0], [1], [0, 0, 1, 1], [], []>} : vector<8x32xbf16>, vector<32x96xbf16>, vector<8x96xf32> -> vector<8x96xf32>
    %37 = arith.addf %36, %11 : vector<8x96xf32>
    %38 = arith.truncf %24 : vector<8x32xf32> to vector<8x32xbf16>
    %cst_31 = arith.constant dense<0.000000e+00> : vector<8x96xf32>
    %39 = tpu.matmul %38, %5, %cst_31 {dimension_numbers = #tpu.dot_dimension_numbers<[1], [0], [0], [1], [0, 0, 1, 1], [], []>} : vector<8x32xbf16>, vector<32x96xbf16>, vector<8x96xf32> -> vector<8x96xf32>
    %40 = arith.addf %39, %14 : vector<8x96xf32>
    %41 = vector.extract_strided_slice %37 {offsets = [0, 0], sizes = [8, 32], strides = [1, 1]} : vector<8x96xf32> to vector<8x32xf32>
    %42 = vector.extract_strided_slice %40 {offsets = [0, 0], sizes = [8, 32], strides = [1, 1]} : vector<8x96xf32> to vector<8x32xf32>
    %43 = arith.addf %41, %42 : vector<8x32xf32>
    %44 = arith.negf %43 : vector<8x32xf32>
    %45 = math.exp %44 : vector<8x32xf32>
    %cst_32 = arith.constant 1.000000e+00 : f32
    %46 = vector.broadcast %cst_32 : f32 to vector<8x32xf32>
    %47 = arith.addf %46, %45 : vector<8x32xf32>
    %48 = arith.divf %46, %47 : vector<8x32xf32>
    %49 = vector.extract_strided_slice %37 {offsets = [0, 32], sizes = [8, 32], strides = [1, 1]} : vector<8x96xf32> to vector<8x32xf32>
    %50 = vector.extract_strided_slice %40 {offsets = [0, 32], sizes = [8, 32], strides = [1, 1]} : vector<8x96xf32> to vector<8x32xf32>
    %51 = arith.addf %49, %50 : vector<8x32xf32>
    %52 = arith.negf %51 : vector<8x32xf32>
    %53 = math.exp %52 : vector<8x32xf32>
    %cst_33 = arith.constant 1.000000e+00 : f32
    %54 = vector.broadcast %cst_33 : f32 to vector<8x32xf32>
    %55 = arith.addf %54, %53 : vector<8x32xf32>
    %56 = arith.divf %54, %55 : vector<8x32xf32>
    %57 = vector.extract_strided_slice %37 {offsets = [0, 64], sizes = [8, 32], strides = [1, 1]} : vector<8x96xf32> to vector<8x32xf32>
    %58 = vector.extract_strided_slice %40 {offsets = [0, 64], sizes = [8, 32], strides = [1, 1]} : vector<8x96xf32> to vector<8x32xf32>
    %59 = arith.mulf %48, %58 : vector<8x32xf32>
    %60 = arith.addf %57, %59 : vector<8x32xf32>
    %61 = math.tanh %60 : vector<8x32xf32>
    %cst_34 = arith.constant 1.000000e+00 : f32
    %62 = vector.broadcast %cst_34 : f32 to vector<8x32xf32>
    %63 = arith.subf %62, %56 : vector<8x32xf32>
    %64 = arith.mulf %63, %61 : vector<8x32xf32>
    %65 = arith.mulf %56, %24 : vector<8x32xf32>
    %66 = arith.addf %64, %65 : vector<8x32xf32>
    %67 = arith.truncf %66 : vector<8x32xf32> to vector<8x32xbf16>
    %cst_35 = arith.constant dense<0.000000e+00> : vector<8x32xf32>
    %68 = tpu.matmul %67, %6, %cst_35 {dimension_numbers = #tpu.dot_dimension_numbers<[1], [0], [0], [1], [0, 0, 1, 1], [], []>} : vector<8x32xbf16>, vector<32x32xbf16>, vector<8x32xf32> -> vector<8x32xf32>
    %69 = arith.addf %68, %17 : vector<8x32xf32>
    %cst_36 = arith.constant 0.000000e+00 : f32
    %70 = vector.broadcast %cst_36 : f32 to vector<8x32xf32>
    %71 = arith.cmpf ogt, %69, %70 : vector<8x32xf32>
    %72 = math.exp %69 : vector<8x32xf32>
    %cst_37 = arith.constant 1.000000e+00 : f32
    %73 = vector.broadcast %cst_37 : f32 to vector<8x32xf32>
    %74 = arith.subf %72, %73 : vector<8x32xf32>
    %cst_38 = arith.constant 1.67326319 : f32
    %75 = vector.broadcast %cst_38 : f32 to vector<8x32xf32>
    %76 = arith.mulf %75, %74 : vector<8x32xf32>
    %77 = arith.select %71, %69, %76 : vector<8x32xi1>, vector<8x32xf32>
    %cst_39 = arith.constant 1.05070102 : f32
    %78 = vector.broadcast %cst_39 : f32 to vector<8x32xf32>
    %79 = arith.mulf %78, %77 : vector<8x32xf32>
    %80 = arith.mulf %1, %79 : vector<8x32xf32>
    %cst_40 = arith.constant dense<0.000000e+00> : vector<8xf32>
    %81 = vector.multi_reduction <add>, %80, %cst_40 [1] : vector<8x32xf32> to vector<8xf32>
    %82 = vector.shape_cast %81 : vector<8xf32> to vector<8x1xf32>
    %83 = arith.mulf %2, %79 : vector<8x32xf32>
    %cst_41 = arith.constant dense<0.000000e+00> : vector<8xf32>
    %84 = vector.multi_reduction <add>, %83, %cst_41 [1] : vector<8x32xf32> to vector<8xf32>
    %85 = vector.shape_cast %84 : vector<8xf32> to vector<8x1xf32>
    %86 = arith.maximumf %82, %85 : vector<8x1xf32>
    %87 = arith.subf %82, %86 : vector<8x1xf32>
    %88 = math.exp %87 : vector<8x1xf32>
    %89 = arith.subf %85, %86 : vector<8x1xf32>
    %90 = math.exp %89 : vector<8x1xf32>
    %91 = arith.addf %88, %90 : vector<8x1xf32>
    %92 = tpu.reciprocal %91 {approx = true} : vector<8x1xf32> -> vector<8x1xf32>
    %93 = arith.mulf %88, %92 : vector<8x1xf32>
    %94 = vector.broadcast %93 : vector<8x1xf32> to vector<8x32xf32>
    %95 = arith.mulf %94, %1 : vector<8x32xf32>
    %96 = arith.mulf %90, %92 : vector<8x1xf32>
    %97 = vector.broadcast %96 : vector<8x1xf32> to vector<8x32xf32>
    %98 = arith.mulf %97, %2 : vector<8x32xf32>
    %99 = arith.addf %95, %98 : vector<8x32xf32>
    %100 = tpu.concatenate %66, %99 in 1 : vector<8x32xf32>, vector<8x32xf32> -> vector<8x64xf32>
    %101 = arith.truncf %100 : vector<8x64xf32> to vector<8x64xbf16>
    %cst_42 = arith.constant dense<0.000000e+00> : vector<8x32xf32>
    %102 = tpu.matmul %101, %7, %cst_42 {dimension_numbers = #tpu.dot_dimension_numbers<[1], [0], [0], [1], [0, 0, 1, 1], [], []>} : vector<8x64xbf16>, vector<64x32xbf16>, vector<8x32xf32> -> vector<8x32xf32>
    %103 = arith.addf %102, %20 : vector<8x32xf32>
    %cst_43 = arith.constant 0.000000e+00 : f32
    %104 = vector.broadcast %cst_43 : f32 to vector<8x32xf32>
    %105 = arith.cmpf ogt, %103, %104 : vector<8x32xf32>
    %106 = math.exp %103 : vector<8x32xf32>
    %cst_44 = arith.constant 1.000000e+00 : f32
    %107 = vector.broadcast %cst_44 : f32 to vector<8x32xf32>
    %108 = arith.subf %106, %107 : vector<8x32xf32>
    %cst_45 = arith.constant 1.67326319 : f32
    %109 = vector.broadcast %cst_45 : f32 to vector<8x32xf32>
    %110 = arith.mulf %109, %108 : vector<8x32xf32>
    %111 = arith.select %105, %103, %110 : vector<8x32xi1>, vector<8x32xf32>
    %cst_46 = arith.constant 1.05070102 : f32
    %112 = vector.broadcast %cst_46 : f32 to vector<8x32xf32>
    %113 = arith.mulf %112, %111 : vector<8x32xf32>
    %114 = arith.truncf %113 : vector<8x32xf32> to vector<8x32xbf16>
    %cst_47 = arith.constant dense<0.000000e+00> : vector<8x128xf32>
    %115 = tpu.matmul %114, %8, %cst_47 {dimension_numbers = #tpu.dot_dimension_numbers<[1], [0], [0], [1], [0, 0, 1, 1], [], []>} : vector<8x32xbf16>, vector<32x128xbf16>, vector<8x128xf32> -> vector<8x128xf32>
    %116 = arith.addf %115, %23 : vector<8x128xf32>
    %117 = arith.maximumf %25, %32 : vector<8x128xf32>
    %cst_48 = arith.constant 0.000000e+00 : f32
    %118 = vector.broadcast %cst_48 : f32 to vector<8x128xf32>
    %119 = arith.cmpf ogt, %117, %118 : vector<8x128xf32>
    %cst_49 = arith.constant -1.000000e+07 : f32
    %120 = vector.broadcast %cst_49 : f32 to vector<8x128xf32>
    %121 = arith.select %119, %120, %116 : vector<8x128xi1>, vector<8x128xf32>
    %122 = arith.index_cast %c0_i32 : i32 to index
    %c0_50 = arith.constant 0 : index
    %c0_51 = arith.constant 0 : index
    %123 = vector.load %arg16[%122, %c0_50, %c0_51] : memref<8x8x128xf32, #tpu.memory_space<vmem>>, vector<1x8x128xf32>
    %124 = vector.shape_cast %123 : vector<1x8x128xf32> to vector<8x128xf32>
    %125 = vector.shape_cast %121 : vector<8x128xf32> to vector<1x8x128xf32>
    tpu.vector_store %arg16[%122, %c0_50, %c0_51], %125 {strides = array<i32>} : memref<8x8x128xf32, #tpu.memory_space<vmem>>, vector<1x8x128xf32>,
    %c1_i32 = arith.constant 1 : i32
    %126 = arith.index_cast %c1_i32 : i32 to index
    %c0_52 = arith.constant 0 : index
    %c0_53 = arith.constant 0 : index
    %127 = vector.load %arg1[%126, %c0_52, %c0_53] : memref<8x8x1xi32, #tpu.memory_space<vmem>>, vector<1x8x1xi32>
    %128 = vector.shape_cast %127 : vector<1x8x1xi32> to vector<8x1xi32>
    %129 = vector.broadcast %128 : vector<8x1xi32> to vector<8x128xi32>
    %130 = arith.cmpi eq, %0, %129 : vector<8x128xi32>
    %131 = arith.extui %130 : vector<8x128xi1> to vector<8x128xi32>
    %132 = arith.sitofp %131 : vector<8x128xi32> to vector<8x128xf32>
    %133 = arith.truncf %132 : vector<8x128xf32> to vector<8x128xbf16>
    %cst_54 = arith.constant dense<0.000000e+00> : vector<8x32xf32>
    %134 = tpu.matmul %133, %3, %cst_54 {dimension_numbers = #tpu.dot_dimension_numbers<[1], [0], [0], [1], [0, 0, 1, 1], [], []>} : vector<8x128xbf16>, vector<128x32xbf16>, vector<8x32xf32> -> vector<8x32xf32>
    %135 = arith.truncf %134 : vector<8x32xf32> to vector<8x32xbf16>
    %cst_55 = arith.constant dense<0.000000e+00> : vector<8x96xf32>
    %136 = tpu.matmul %135, %4, %cst_55 {dimension_numbers = #tpu.dot_dimension_numbers<[1], [0], [0], [1], [0, 0, 1, 1], [], []>} : vector<8x32xbf16>, vector<32x96xbf16>, vector<8x96xf32> -> vector<8x96xf32>
    %137 = arith.addf %136, %11 : vector<8x96xf32>
    %138 = arith.truncf %66 : vector<8x32xf32> to vector<8x32xbf16>
    %cst_56 = arith.constant dense<0.000000e+00> : vector<8x96xf32>
    %139 = tpu.matmul %138, %5, %cst_56 {dimension_numbers = #tpu.dot_dimension_numbers<[1], [0], [0], [1], [0, 0, 1, 1], [], []>} : vector<8x32xbf16>, vector<32x96xbf16>, vector<8x96xf32> -> vector<8x96xf32>
    %140 = arith.addf %139, %14 : vector<8x96xf32>
    %141 = vector.extract_strided_slice %137 {offsets = [0, 0], sizes = [8, 32], strides = [1, 1]} : vector<8x96xf32> to vector<8x32xf32>
    %142 = vector.extract_strided_slice %140 {offsets = [0, 0], sizes = [8, 32], strides = [1, 1]} : vector<8x96xf32> to vector<8x32xf32>
    %143 = arith.addf %141, %142 : vector<8x32xf32>
    %144 = arith.negf %143 : vector<8x32xf32>
    %145 = math.exp %144 : vector<8x32xf32>
    %cst_57 = arith.constant 1.000000e+00 : f32
    %146 = vector.broadcast %cst_57 : f32 to vector<8x32xf32>
    %147 = arith.addf %146, %145 : vector<8x32xf32>
    %148 = arith.divf %146, %147 : vector<8x32xf32>
    %149 = vector.extract_strided_slice %137 {offsets = [0, 32], sizes = [8, 32], strides = [1, 1]} : vector<8x96xf32> to vector<8x32xf32>
    %150 = vector.extract_strided_slice %140 {offsets = [0, 32], sizes = [8, 32], strides = [1, 1]} : vector<8x96xf32> to vector<8x32xf32>
    %151 = arith.addf %149, %150 : vector<8x32xf32>
    %152 = arith.negf %151 : vector<8x32xf32>
    %153 = math.exp %152 : vector<8x32xf32>
    %cst_58 = arith.constant 1.000000e+00 : f32
    %154 = vector.broadcast %cst_58 : f32 to vector<8x32xf32>
    %155 = arith.addf %154, %153 : vector<8x32xf32>
    %156 = arith.divf %154, %155 : vector<8x32xf32>
    %157 = vector.extract_strided_slice %137 {offsets = [0, 64], sizes = [8, 32], strides = [1, 1]} : vector<8x96xf32> to vector<8x32xf32>
    %158 = vector.extract_strided_slice %140 {offsets = [0, 64], sizes = [8, 32], strides = [1, 1]} : vector<8x96xf32> to vector<8x32xf32>
    %159 = arith.mulf %148, %158 : vector<8x32xf32>
    %160 = arith.addf %157, %159 : vector<8x32xf32>
    %161 = math.tanh %160 : vector<8x32xf32>
    %cst_59 = arith.constant 1.000000e+00 : f32
    %162 = vector.broadcast %cst_59 : f32 to vector<8x32xf32>
    %163 = arith.subf %162, %156 : vector<8x32xf32>
    %164 = arith.mulf %163, %161 : vector<8x32xf32>
    %165 = arith.mulf %156, %66 : vector<8x32xf32>
    %166 = arith.addf %164, %165 : vector<8x32xf32>
    %167 = arith.truncf %166 : vector<8x32xf32> to vector<8x32xbf16>
    %cst_60 = arith.constant dense<0.000000e+00> : vector<8x32xf32>
    %168 = tpu.matmul %167, %6, %cst_60 {dimension_numbers = #tpu.dot_dimension_numbers<[1], [0], [0], [1], [0, 0, 1, 1], [], []>} : vector<8x32xbf16>, vector<32x32xbf16>, vector<8x32xf32> -> vector<8x32xf32>
    %169 = arith.addf %168, %17 : vector<8x32xf32>
    %cst_61 = arith.constant 0.000000e+00 : f32
    %170 = vector.broadcast %cst_61 : f32 to vector<8x32xf32>
    %171 = arith.cmpf ogt, %169, %170 : vector<8x32xf32>
    %172 = math.exp %169 : vector<8x32xf32>
    %cst_62 = arith.constant 1.000000e+00 : f32
    %173 = vector.broadcast %cst_62 : f32 to vector<8x32xf32>
    %174 = arith.subf %172, %173 : vector<8x32xf32>
    %cst_63 = arith.constant 1.67326319 : f32
    %175 = vector.broadcast %cst_63 : f32 to vector<8x32xf32>
    %176 = arith.mulf %175, %174 : vector<8x32xf32>
    %177 = arith.select %171, %169, %176 : vector<8x32xi1>, vector<8x32xf32>
    %cst_64 = arith.constant 1.05070102 : f32
    %178 = vector.broadcast %cst_64 : f32 to vector<8x32xf32>
    %179 = arith.mulf %178, %177 : vector<8x32xf32>
    %180 = arith.mulf %1, %179 : vector<8x32xf32>
    %cst_65 = arith.constant dense<0.000000e+00> : vector<8xf32>
    %181 = vector.multi_reduction <add>, %180, %cst_65 [1] : vector<8x32xf32> to vector<8xf32>
    %182 = vector.shape_cast %181 : vector<8xf32> to vector<8x1xf32>
    %183 = arith.mulf %2, %179 : vector<8x32xf32>
    %cst_66 = arith.constant dense<0.000000e+00> : vector<8xf32>
    %184 = vector.multi_reduction <add>, %183, %cst_66 [1] : vector<8x32xf32> to vector<8xf32>
    %185 = vector.shape_cast %184 : vector<8xf32> to vector<8x1xf32>
    %186 = arith.maximumf %182, %185 : vector<8x1xf32>
    %187 = arith.subf %182, %186 : vector<8x1xf32>
    %188 = math.exp %187 : vector<8x1xf32>
    %189 = arith.subf %185, %186 : vector<8x1xf32>
    %190 = math.exp %189 : vector<8x1xf32>
    %191 = arith.addf %188, %190 : vector<8x1xf32>
    %192 = tpu.reciprocal %191 {approx = true} : vector<8x1xf32> -> vector<8x1xf32>
    %193 = arith.mulf %188, %192 : vector<8x1xf32>
    %194 = vector.broadcast %193 : vector<8x1xf32> to vector<8x32xf32>
    %195 = arith.mulf %194, %1 : vector<8x32xf32>
    %196 = arith.mulf %190, %192 : vector<8x1xf32>
    %197 = vector.broadcast %196 : vector<8x1xf32> to vector<8x32xf32>
    %198 = arith.mulf %197, %2 : vector<8x32xf32>
    %199 = arith.addf %195, %198 : vector<8x32xf32>
    %200 = tpu.concatenate %166, %199 in 1 : vector<8x32xf32>, vector<8x32xf32> -> vector<8x64xf32>
    %201 = arith.truncf %200 : vector<8x64xf32> to vector<8x64xbf16>
    %cst_67 = arith.constant dense<0.000000e+00> : vector<8x32xf32>
    %202 = tpu.matmul %201, %7, %cst_67 {dimension_numbers = #tpu.dot_dimension_numbers<[1], [0], [0], [1], [0, 0, 1, 1], [], []>} : vector<8x64xbf16>, vector<64x32xbf16>, vector<8x32xf32> -> vector<8x32xf32>
    %203 = arith.addf %202, %20 : vector<8x32xf32>
    %cst_68 = arith.constant 0.000000e+00 : f32
    %204 = vector.broadcast %cst_68 : f32 to vector<8x32xf32>
    %205 = arith.cmpf ogt, %203, %204 : vector<8x32xf32>
    %206 = math.exp %203 : vector<8x32xf32>
    %cst_69 = arith.constant 1.000000e+00 : f32
    %207 = vector.broadcast %cst_69 : f32 to vector<8x32xf32>
    %208 = arith.subf %206, %207 : vector<8x32xf32>
    %cst_70 = arith.constant 1.67326319 : f32
    %209 = vector.broadcast %cst_70 : f32 to vector<8x32xf32>
    %210 = arith.mulf %209, %208 : vector<8x32xf32>
    %211 = arith.select %205, %203, %210 : vector<8x32xi1>, vector<8x32xf32>
    %cst_71 = arith.constant 1.05070102 : f32
    %212 = vector.broadcast %cst_71 : f32 to vector<8x32xf32>
    %213 = arith.mulf %212, %211 : vector<8x32xf32>
    %214 = arith.truncf %213 : vector<8x32xf32> to vector<8x32xbf16>
    %cst_72 = arith.constant dense<0.000000e+00> : vector<8x128xf32>
    %215 = tpu.matmul %214, %8, %cst_72 {dimension_numbers = #tpu.dot_dimension_numbers<[1], [0], [0], [1], [0, 0, 1, 1], [], []>} : vector<8x32xbf16>, vector<32x128xbf16>, vector<8x128xf32> -> vector<8x128xf32>
    %216 = arith.addf %215, %23 : vector<8x128xf32>
    %217 = arith.maximumf %117, %132 : vector<8x128xf32>
    %cst_73 = arith.constant 0.000000e+00 : f32
    %218 = vector.broadcast %cst_73 : f32 to vector<8x128xf32>
    %219 = arith.cmpf ogt, %217, %218 : vector<8x128xf32>
    %cst_74 = arith.constant -1.000000e+07 : f32
    %220 = vector.broadcast %cst_74 : f32 to vector<8x128xf32>
    %221 = arith.select %219, %220, %216 : vector<8x128xi1>, vector<8x128xf32>
    %222 = arith.index_cast %c1_i32 : i32 to index
    %c0_75 = arith.constant 0 : index
    %c0_76 = arith.constant 0 : index
    %223 = vector.load %arg16[%222, %c0_75, %c0_76] : memref<8x8x128xf32, #tpu.memory_space<vmem>>, vector<1x8x128xf32>
    %224 = vector.shape_cast %223 : vector<1x8x128xf32> to vector<8x128xf32>
    %225 = vector.shape_cast %221 : vector<8x128xf32> to vector<1x8x128xf32>
    tpu.vector_store %arg16[%222, %c0_75, %c0_76], %225 {strides = array<i32>} : memref<8x8x128xf32, #tpu.memory_space<vmem>>, vector<1x8x128xf32>,
    %c2_i32 = arith.constant 2 : i32
    %226 = arith.index_cast %c2_i32 : i32 to index
    %c0_77 = arith.constant 0 : index
    %c0_78 = arith.constant 0 : index
    %227 = vector.load %arg1[%226, %c0_77, %c0_78] : memref<8x8x1xi32, #tpu.memory_space<vmem>>, vector<1x8x1xi32>
    %228 = vector.shape_cast %227 : vector<1x8x1xi32> to vector<8x1xi32>
    %229 = vector.broadcast %228 : vector<8x1xi32> to vector<8x128xi32>
    %230 = arith.cmpi eq, %0, %229 : vector<8x128xi32>
    %231 = arith.extui %230 : vector<8x128xi1> to vector<8x128xi32>
    %232 = arith.sitofp %231 : vector<8x128xi32> to vector<8x128xf32>
    %233 = arith.truncf %232 : vector<8x128xf32> to vector<8x128xbf16>
    %cst_79 = arith.constant dense<0.000000e+00> : vector<8x32xf32>
    %234 = tpu.matmul %233, %3, %cst_79 {dimension_numbers = #tpu.dot_dimension_numbers<[1], [0], [0], [1], [0, 0, 1, 1], [], []>} : vector<8x128xbf16>, vector<128x32xbf16>, vector<8x32xf32> -> vector<8x32xf32>
    %235 = arith.truncf %234 : vector<8x32xf32> to vector<8x32xbf16>
    %cst_80 = arith.constant dense<0.000000e+00> : vector<8x96xf32>
    %236 = tpu.matmul %235, %4, %cst_80 {dimension_numbers = #tpu.dot_dimension_numbers<[1], [0], [0], [1], [0, 0, 1, 1], [], []>} : vector<8x32xbf16>, vector<32x96xbf16>, vector<8x96xf32> -> vector<8x96xf32>
    %237 = arith.addf %236, %11 : vector<8x96xf32>
    %238 = arith.truncf %166 : vector<8x32xf32> to vector<8x32xbf16>
    %cst_81 = arith.constant dense<0.000000e+00> : vector<8x96xf32>
    %239 = tpu.matmul %238, %5, %cst_81 {dimension_numbers = #tpu.dot_dimension_numbers<[1], [0], [0], [1], [0, 0, 1, 1], [], []>} : vector<8x32xbf16>, vector<32x96xbf16>, vector<8x96xf32> -> vector<8x96xf32>
    %240 = arith.addf %239, %14 : vector<8x96xf32>
    %241 = vector.extract_strided_slice %237 {offsets = [0, 0], sizes = [8, 32], strides = [1, 1]} : vector<8x96xf32> to vector<8x32xf32>
    %242 = vector.extract_strided_slice %240 {offsets = [0, 0], sizes = [8, 32], strides = [1, 1]} : vector<8x96xf32> to vector<8x32xf32>
    %243 = arith.addf %241, %242 : vector<8x32xf32>
    %244 = arith.negf %243 : vector<8x32xf32>
    %245 = math.exp %244 : vector<8x32xf32>
    %cst_82 = arith.constant 1.000000e+00 : f32
    %246 = vector.broadcast %cst_82 : f32 to vector<8x32xf32>
    %247 = arith.addf %246, %245 : vector<8x32xf32>
    %248 = arith.divf %246, %247 : vector<8x32xf32>
    %249 = vector.extract_strided_slice %237 {offsets = [0, 32], sizes = [8, 32], strides = [1, 1]} : vector<8x96xf32> to vector<8x32xf32>
    %250 = vector.extract_strided_slice %240 {offsets = [0, 32], sizes = [8, 32], strides = [1, 1]} : vector<8x96xf32> to vector<8x32xf32>
    %251 = arith.addf %249, %250 : vector<8x32xf32>
    %252 = arith.negf %251 : vector<8x32xf32>
    %253 = math.exp %252 : vector<8x32xf32>
    %cst_83 = arith.constant 1.000000e+00 : f32
    %254 = vector.broadcast %cst_83 : f32 to vector<8x32xf32>
    %255 = arith.addf %254, %253 : vector<8x32xf32>
    %256 = arith.divf %254, %255 : vector<8x32xf32>
    %257 = vector.extract_strided_slice %237 {offsets = [0, 64], sizes = [8, 32], strides = [1, 1]} : vector<8x96xf32> to vector<8x32xf32>
    %258 = vector.extract_strided_slice %240 {offsets = [0, 64], sizes = [8, 32], strides = [1, 1]} : vector<8x96xf32> to vector<8x32xf32>
    %259 = arith.mulf %248, %258 : vector<8x32xf32>
    %260 = arith.addf %257, %259 : vector<8x32xf32>
    %261 = math.tanh %260 : vector<8x32xf32>
    %cst_84 = arith.constant 1.000000e+00 : f32
    %262 = vector.broadcast %cst_84 : f32 to vector<8x32xf32>
    %263 = arith.subf %262, %256 : vector<8x32xf32>
    %264 = arith.mulf %263, %261 : vector<8x32xf32>
    %265 = arith.mulf %256, %166 : vector<8x32xf32>
    %266 = arith.addf %264, %265 : vector<8x32xf32>
    %267 = arith.truncf %266 : vector<8x32xf32> to vector<8x32xbf16>
    %cst_85 = arith.constant dense<0.000000e+00> : vector<8x32xf32>
    %268 = tpu.matmul %267, %6, %cst_85 {dimension_numbers = #tpu.dot_dimension_numbers<[1], [0], [0], [1], [0, 0, 1, 1], [], []>} : vector<8x32xbf16>, vector<32x32xbf16>, vector<8x32xf32> -> vector<8x32xf32>
    %269 = arith.addf %268, %17 : vector<8x32xf32>
    %cst_86 = arith.constant 0.000000e+00 : f32
    %270 = vector.broadcast %cst_86 : f32 to vector<8x32xf32>
    %271 = arith.cmpf ogt, %269, %270 : vector<8x32xf32>
    %272 = math.exp %269 : vector<8x32xf32>
    %cst_87 = arith.constant 1.000000e+00 : f32
    %273 = vector.broadcast %cst_87 : f32 to vector<8x32xf32>
    %274 = arith.subf %272, %273 : vector<8x32xf32>
    %cst_88 = arith.constant 1.67326319 : f32
    %275 = vector.broadcast %cst_88 : f32 to vector<8x32xf32>
    %276 = arith.mulf %275, %274 : vector<8x32xf32>
    %277 = arith.select %271, %269, %276 : vector<8x32xi1>, vector<8x32xf32>
    %cst_89 = arith.constant 1.05070102 : f32
    %278 = vector.broadcast %cst_89 : f32 to vector<8x32xf32>
    %279 = arith.mulf %278, %277 : vector<8x32xf32>
    %280 = arith.mulf %1, %279 : vector<8x32xf32>
    %cst_90 = arith.constant dense<0.000000e+00> : vector<8xf32>
    %281 = vector.multi_reduction <add>, %280, %cst_90 [1] : vector<8x32xf32> to vector<8xf32>
    %282 = vector.shape_cast %281 : vector<8xf32> to vector<8x1xf32>
    %283 = arith.mulf %2, %279 : vector<8x32xf32>
    %cst_91 = arith.constant dense<0.000000e+00> : vector<8xf32>
    %284 = vector.multi_reduction <add>, %283, %cst_91 [1] : vector<8x32xf32> to vector<8xf32>
    %285 = vector.shape_cast %284 : vector<8xf32> to vector<8x1xf32>
    %286 = arith.maximumf %282, %285 : vector<8x1xf32>
    %287 = arith.subf %282, %286 : vector<8x1xf32>
    %288 = math.exp %287 : vector<8x1xf32>
    %289 = arith.subf %285, %286 : vector<8x1xf32>
    %290 = math.exp %289 : vector<8x1xf32>
    %291 = arith.addf %288, %290 : vector<8x1xf32>
    %292 = tpu.reciprocal %291 {approx = true} : vector<8x1xf32> -> vector<8x1xf32>
    %293 = arith.mulf %288, %292 : vector<8x1xf32>
    %294 = vector.broadcast %293 : vector<8x1xf32> to vector<8x32xf32>
    %295 = arith.mulf %294, %1 : vector<8x32xf32>
    %296 = arith.mulf %290, %292 : vector<8x1xf32>
    %297 = vector.broadcast %296 : vector<8x1xf32> to vector<8x32xf32>
    %298 = arith.mulf %297, %2 : vector<8x32xf32>
    %299 = arith.addf %295, %298 : vector<8x32xf32>
    %300 = tpu.concatenate %266, %299 in 1 : vector<8x32xf32>, vector<8x32xf32> -> vector<8x64xf32>
    %301 = arith.truncf %300 : vector<8x64xf32> to vector<8x64xbf16>
    %cst_92 = arith.constant dense<0.000000e+00> : vector<8x32xf32>
    %302 = tpu.matmul %301, %7, %cst_92 {dimension_numbers = #tpu.dot_dimension_numbers<[1], [0], [0], [1], [0, 0, 1, 1], [], []>} : vector<8x64xbf16>, vector<64x32xbf16>, vector<8x32xf32> -> vector<8x32xf32>
    %303 = arith.addf %302, %20 : vector<8x32xf32>
    %cst_93 = arith.constant 0.000000e+00 : f32
    %304 = vector.broadcast %cst_93 : f32 to vector<8x32xf32>
    %305 = arith.cmpf ogt, %303, %304 : vector<8x32xf32>
    %306 = math.exp %303 : vector<8x32xf32>
    %cst_94 = arith.constant 1.000000e+00 : f32
    %307 = vector.broadcast %cst_94 : f32 to vector<8x32xf32>
    %308 = arith.subf %306, %307 : vector<8x32xf32>
    %cst_95 = arith.constant 1.67326319 : f32
    %309 = vector.broadcast %cst_95 : f32 to vector<8x32xf32>
    %310 = arith.mulf %309, %308 : vector<8x32xf32>
    %311 = arith.select %305, %303, %310 : vector<8x32xi1>, vector<8x32xf32>
    %cst_96 = arith.constant 1.05070102 : f32
    %312 = vector.broadcast %cst_96 : f32 to vector<8x32xf32>
    %313 = arith.mulf %312, %311 : vector<8x32xf32>
    %314 = arith.truncf %313 : vector<8x32xf32> to vector<8x32xbf16>
    %cst_97 = arith.constant dense<0.000000e+00> : vector<8x128xf32>
    %315 = tpu.matmul %314, %8, %cst_97 {dimension_numbers = #tpu.dot_dimension_numbers<[1], [0], [0], [1], [0, 0, 1, 1], [], []>} : vector<8x32xbf16>, vector<32x128xbf16>, vector<8x128xf32> -> vector<8x128xf32>
    %316 = arith.addf %315, %23 : vector<8x128xf32>
    %317 = arith.maximumf %217, %232 : vector<8x128xf32>
    %cst_98 = arith.constant 0.000000e+00 : f32
    %318 = vector.broadcast %cst_98 : f32 to vector<8x128xf32>
    %319 = arith.cmpf ogt, %317, %318 : vector<8x128xf32>
    %cst_99 = arith.constant -1.000000e+07 : f32
    %320 = vector.broadcast %cst_99 : f32 to vector<8x128xf32>
    %321 = arith.select %319, %320, %316 : vector<8x128xi1>, vector<8x128xf32>
    %322 = arith.index_cast %c2_i32 : i32 to index
    %c0_100 = arith.constant 0 : index
    %c0_101 = arith.constant 0 : index
    %323 = vector.load %arg16[%322, %c0_100, %c0_101] : memref<8x8x128xf32, #tpu.memory_space<vmem>>, vector<1x8x128xf32>
    %324 = vector.shape_cast %323 : vector<1x8x128xf32> to vector<8x128xf32>
    %325 = vector.shape_cast %321 : vector<8x128xf32> to vector<1x8x128xf32>
    tpu.vector_store %arg16[%322, %c0_100, %c0_101], %325 {strides = array<i32>} : memref<8x8x128xf32, #tpu.memory_space<vmem>>, vector<1x8x128xf32>,
    %c3_i32 = arith.constant 3 : i32
    %326 = arith.index_cast %c3_i32 : i32 to index
    %c0_102 = arith.constant 0 : index
    %c0_103 = arith.constant 0 : index
    %327 = vector.load %arg1[%326, %c0_102, %c0_103] : memref<8x8x1xi32, #tpu.memory_space<vmem>>, vector<1x8x1xi32>
    %328 = vector.shape_cast %327 : vector<1x8x1xi32> to vector<8x1xi32>
    %329 = vector.broadcast %328 : vector<8x1xi32> to vector<8x128xi32>
    %330 = arith.cmpi eq, %0, %329 : vector<8x128xi32>
    %331 = arith.extui %330 : vector<8x128xi1> to vector<8x128xi32>
    %332 = arith.sitofp %331 : vector<8x128xi32> to vector<8x128xf32>
    %333 = arith.truncf %332 : vector<8x128xf32> to vector<8x128xbf16>
    %cst_104 = arith.constant dense<0.000000e+00> : vector<8x32xf32>
    %334 = tpu.matmul %333, %3, %cst_104 {dimension_numbers = #tpu.dot_dimension_numbers<[1], [0], [0], [1], [0, 0, 1, 1], [], []>} : vector<8x128xbf16>, vector<128x32xbf16>, vector<8x32xf32> -> vector<8x32xf32>
    %335 = arith.truncf %334 : vector<8x32xf32> to vector<8x32xbf16>
    %cst_105 = arith.constant dense<0.000000e+00> : vector<8x96xf32>
    %336 = tpu.matmul %335, %4, %cst_105 {dimension_numbers = #tpu.dot_dimension_numbers<[1], [0], [0], [1], [0, 0, 1, 1], [], []>} : vector<8x32xbf16>, vector<32x96xbf16>, vector<8x96xf32> -> vector<8x96xf32>
    %337 = arith.addf %336, %11 : vector<8x96xf32>
    %338 = arith.truncf %266 : vector<8x32xf32> to vector<8x32xbf16>
    %cst_106 = arith.constant dense<0.000000e+00> : vector<8x96xf32>
    %339 = tpu.matmul %338, %5, %cst_106 {dimension_numbers = #tpu.dot_dimension_numbers<[1], [0], [0], [1], [0, 0, 1, 1], [], []>} : vector<8x32xbf16>, vector<32x96xbf16>, vector<8x96xf32> -> vector<8x96xf32>
    %340 = arith.addf %339, %14 : vector<8x96xf32>
    %341 = vector.extract_strided_slice %337 {offsets = [0, 0], sizes = [8, 32], strides = [1, 1]} : vector<8x96xf32> to vector<8x32xf32>
    %342 = vector.extract_strided_slice %340 {offsets = [0, 0], sizes = [8, 32], strides = [1, 1]} : vector<8x96xf32> to vector<8x32xf32>
    %343 = arith.addf %341, %342 : vector<8x32xf32>
    %344 = arith.negf %343 : vector<8x32xf32>
    %345 = math.exp %344 : vector<8x32xf32>
    %cst_107 = arith.constant 1.000000e+00 : f32
    %346 = vector.broadcast %cst_107 : f32 to vector<8x32xf32>
    %347 = arith.addf %346, %345 : vector<8x32xf32>
    %348 = arith.divf %346, %347 : vector<8x32xf32>
    %349 = vector.extract_strided_slice %337 {offsets = [0, 32], sizes = [8, 32], strides = [1, 1]} : vector<8x96xf32> to vector<8x32xf32>
    %350 = vector.extract_strided_slice %340 {offsets = [0, 32], sizes = [8, 32], strides = [1, 1]} : vector<8x96xf32> to vector<8x32xf32>
    %351 = arith.addf %349, %350 : vector<8x32xf32>
    %352 = arith.negf %351 : vector<8x32xf32>
    %353 = math.exp %352 : vector<8x32xf32>
    %cst_108 = arith.constant 1.000000e+00 : f32
    %354 = vector.broadcast %cst_108 : f32 to vector<8x32xf32>
    %355 = arith.addf %354, %353 : vector<8x32xf32>
    %356 = arith.divf %354, %355 : vector<8x32xf32>
    %357 = vector.extract_strided_slice %337 {offsets = [0, 64], sizes = [8, 32], strides = [1, 1]} : vector<8x96xf32> to vector<8x32xf32>
    %358 = vector.extract_strided_slice %340 {offsets = [0, 64], sizes = [8, 32], strides = [1, 1]} : vector<8x96xf32> to vector<8x32xf32>
    %359 = arith.mulf %348, %358 : vector<8x32xf32>
    %360 = arith.addf %357, %359 : vector<8x32xf32>
    %361 = math.tanh %360 : vector<8x32xf32>
    %cst_109 = arith.constant 1.000000e+00 : f32
    %362 = vector.broadcast %cst_109 : f32 to vector<8x32xf32>
    %363 = arith.subf %362, %356 : vector<8x32xf32>
    %364 = arith.mulf %363, %361 : vector<8x32xf32>
    %365 = arith.mulf %356, %266 : vector<8x32xf32>
    %366 = arith.addf %364, %365 : vector<8x32xf32>
    %367 = arith.truncf %366 : vector<8x32xf32> to vector<8x32xbf16>
    %cst_110 = arith.constant dense<0.000000e+00> : vector<8x32xf32>
    %368 = tpu.matmul %367, %6, %cst_110 {dimension_numbers = #tpu.dot_dimension_numbers<[1], [0], [0], [1], [0, 0, 1, 1], [], []>} : vector<8x32xbf16>, vector<32x32xbf16>, vector<8x32xf32> -> vector<8x32xf32>
    %369 = arith.addf %368, %17 : vector<8x32xf32>
    %cst_111 = arith.constant 0.000000e+00 : f32
    %370 = vector.broadcast %cst_111 : f32 to vector<8x32xf32>
    %371 = arith.cmpf ogt, %369, %370 : vector<8x32xf32>
    %372 = math.exp %369 : vector<8x32xf32>
    %cst_112 = arith.constant 1.000000e+00 : f32
    %373 = vector.broadcast %cst_112 : f32 to vector<8x32xf32>
    %374 = arith.subf %372, %373 : vector<8x32xf32>
    %cst_113 = arith.constant 1.67326319 : f32
    %375 = vector.broadcast %cst_113 : f32 to vector<8x32xf32>
    %376 = arith.mulf %375, %374 : vector<8x32xf32>
    %377 = arith.select %371, %369, %376 : vector<8x32xi1>, vector<8x32xf32>
    %cst_114 = arith.constant 1.05070102 : f32
    %378 = vector.broadcast %cst_114 : f32 to vector<8x32xf32>
    %379 = arith.mulf %378, %377 : vector<8x32xf32>
    %380 = arith.mulf %1, %379 : vector<8x32xf32>
    %cst_115 = arith.constant dense<0.000000e+00> : vector<8xf32>
    %381 = vector.multi_reduction <add>, %380, %cst_115 [1] : vector<8x32xf32> to vector<8xf32>
    %382 = vector.shape_cast %381 : vector<8xf32> to vector<8x1xf32>
    %383 = arith.mulf %2, %379 : vector<8x32xf32>
    %cst_116 = arith.constant dense<0.000000e+00> : vector<8xf32>
    %384 = vector.multi_reduction <add>, %383, %cst_116 [1] : vector<8x32xf32> to vector<8xf32>
    %385 = vector.shape_cast %384 : vector<8xf32> to vector<8x1xf32>
    %386 = arith.maximumf %382, %385 : vector<8x1xf32>
    %387 = arith.subf %382, %386 : vector<8x1xf32>
    %388 = math.exp %387 : vector<8x1xf32>
    %389 = arith.subf %385, %386 : vector<8x1xf32>
    %390 = math.exp %389 : vector<8x1xf32>
    %391 = arith.addf %388, %390 : vector<8x1xf32>
    %392 = tpu.reciprocal %391 {approx = true} : vector<8x1xf32> -> vector<8x1xf32>
    %393 = arith.mulf %388, %392 : vector<8x1xf32>
    %394 = vector.broadcast %393 : vector<8x1xf32> to vector<8x32xf32>
    %395 = arith.mulf %394, %1 : vector<8x32xf32>
    %396 = arith.mulf %390, %392 : vector<8x1xf32>
    %397 = vector.broadcast %396 : vector<8x1xf32> to vector<8x32xf32>
    %398 = arith.mulf %397, %2 : vector<8x32xf32>
    %399 = arith.addf %395, %398 : vector<8x32xf32>
    %400 = tpu.concatenate %366, %399 in 1 : vector<8x32xf32>, vector<8x32xf32> -> vector<8x64xf32>
    %401 = arith.truncf %400 : vector<8x64xf32> to vector<8x64xbf16>
    %cst_117 = arith.constant dense<0.000000e+00> : vector<8x32xf32>
    %402 = tpu.matmul %401, %7, %cst_117 {dimension_numbers = #tpu.dot_dimension_numbers<[1], [0], [0], [1], [0, 0, 1, 1], [], []>} : vector<8x64xbf16>, vector<64x32xbf16>, vector<8x32xf32> -> vector<8x32xf32>
    %403 = arith.addf %402, %20 : vector<8x32xf32>
    %cst_118 = arith.constant 0.000000e+00 : f32
    %404 = vector.broadcast %cst_118 : f32 to vector<8x32xf32>
    %405 = arith.cmpf ogt, %403, %404 : vector<8x32xf32>
    %406 = math.exp %403 : vector<8x32xf32>
    %cst_119 = arith.constant 1.000000e+00 : f32
    %407 = vector.broadcast %cst_119 : f32 to vector<8x32xf32>
    %408 = arith.subf %406, %407 : vector<8x32xf32>
    %cst_120 = arith.constant 1.67326319 : f32
    %409 = vector.broadcast %cst_120 : f32 to vector<8x32xf32>
    %410 = arith.mulf %409, %408 : vector<8x32xf32>
    %411 = arith.select %405, %403, %410 : vector<8x32xi1>, vector<8x32xf32>
    %cst_121 = arith.constant 1.05070102 : f32
    %412 = vector.broadcast %cst_121 : f32 to vector<8x32xf32>
    %413 = arith.mulf %412, %411 : vector<8x32xf32>
    %414 = arith.truncf %413 : vector<8x32xf32> to vector<8x32xbf16>
    %cst_122 = arith.constant dense<0.000000e+00> : vector<8x128xf32>
    %415 = tpu.matmul %414, %8, %cst_122 {dimension_numbers = #tpu.dot_dimension_numbers<[1], [0], [0], [1], [0, 0, 1, 1], [], []>} : vector<8x32xbf16>, vector<32x128xbf16>, vector<8x128xf32> -> vector<8x128xf32>
    %416 = arith.addf %415, %23 : vector<8x128xf32>
    %417 = arith.maximumf %317, %332 : vector<8x128xf32>
    %cst_123 = arith.constant 0.000000e+00 : f32
    %418 = vector.broadcast %cst_123 : f32 to vector<8x128xf32>
    %419 = arith.cmpf ogt, %417, %418 : vector<8x128xf32>
    %cst_124 = arith.constant -1.000000e+07 : f32
    %420 = vector.broadcast %cst_124 : f32 to vector<8x128xf32>
    %421 = arith.select %419, %420, %416 : vector<8x128xi1>, vector<8x128xf32>
    %422 = arith.index_cast %c3_i32 : i32 to index
    %c0_125 = arith.constant 0 : index
    %c0_126 = arith.constant 0 : index
    %423 = vector.load %arg16[%422, %c0_125, %c0_126] : memref<8x8x128xf32, #tpu.memory_space<vmem>>, vector<1x8x128xf32>
    %424 = vector.shape_cast %423 : vector<1x8x128xf32> to vector<8x128xf32>
    %425 = vector.shape_cast %421 : vector<8x128xf32> to vector<1x8x128xf32>
    tpu.vector_store %arg16[%422, %c0_125, %c0_126], %425 {strides = array<i32>} : memref<8x8x128xf32, #tpu.memory_space<vmem>>, vector<1x8x128xf32>,
    %c4_i32 = arith.constant 4 : i32
    %426 = arith.index_cast %c4_i32 : i32 to index
    %c0_127 = arith.constant 0 : index
    %c0_128 = arith.constant 0 : index
    %427 = vector.load %arg1[%426, %c0_127, %c0_128] : memref<8x8x1xi32, #tpu.memory_space<vmem>>, vector<1x8x1xi32>
    %428 = vector.shape_cast %427 : vector<1x8x1xi32> to vector<8x1xi32>
    %429 = vector.broadcast %428 : vector<8x1xi32> to vector<8x128xi32>
    %430 = arith.cmpi eq, %0, %429 : vector<8x128xi32>
    %431 = arith.extui %430 : vector<8x128xi1> to vector<8x128xi32>
    %432 = arith.sitofp %431 : vector<8x128xi32> to vector<8x128xf32>
    %433 = arith.truncf %432 : vector<8x128xf32> to vector<8x128xbf16>
    %cst_129 = arith.constant dense<0.000000e+00> : vector<8x32xf32>
    %434 = tpu.matmul %433, %3, %cst_129 {dimension_numbers = #tpu.dot_dimension_numbers<[1], [0], [0], [1], [0, 0, 1, 1], [], []>} : vector<8x128xbf16>, vector<128x32xbf16>, vector<8x32xf32> -> vector<8x32xf32>
    %435 = arith.truncf %434 : vector<8x32xf32> to vector<8x32xbf16>
    %cst_130 = arith.constant dense<0.000000e+00> : vector<8x96xf32>
    %436 = tpu.matmul %435, %4, %cst_130 {dimension_numbers = #tpu.dot_dimension_numbers<[1], [0], [0], [1], [0, 0, 1, 1], [], []>} : vector<8x32xbf16>, vector<32x96xbf16>, vector<8x96xf32> -> vector<8x96xf32>
    %437 = arith.addf %436, %11 : vector<8x96xf32>
    %438 = arith.truncf %366 : vector<8x32xf32> to vector<8x32xbf16>
    %cst_131 = arith.constant dense<0.000000e+00> : vector<8x96xf32>
    %439 = tpu.matmul %438, %5, %cst_131 {dimension_numbers = #tpu.dot_dimension_numbers<[1], [0], [0], [1], [0, 0, 1, 1], [], []>} : vector<8x32xbf16>, vector<32x96xbf16>, vector<8x96xf32> -> vector<8x96xf32>
    %440 = arith.addf %439, %14 : vector<8x96xf32>
    %441 = vector.extract_strided_slice %437 {offsets = [0, 0], sizes = [8, 32], strides = [1, 1]} : vector<8x96xf32> to vector<8x32xf32>
    %442 = vector.extract_strided_slice %440 {offsets = [0, 0], sizes = [8, 32], strides = [1, 1]} : vector<8x96xf32> to vector<8x32xf32>
    %443 = arith.addf %441, %442 : vector<8x32xf32>
    %444 = arith.negf %443 : vector<8x32xf32>
    %445 = math.exp %444 : vector<8x32xf32>
    %cst_132 = arith.constant 1.000000e+00 : f32
    %446 = vector.broadcast %cst_132 : f32 to vector<8x32xf32>
    %447 = arith.addf %446, %445 : vector<8x32xf32>
    %448 = arith.divf %446, %447 : vector<8x32xf32>
    %449 = vector.extract_strided_slice %437 {offsets = [0, 32], sizes = [8, 32], strides = [1, 1]} : vector<8x96xf32> to vector<8x32xf32>
    %450 = vector.extract_strided_slice %440 {offsets = [0, 32], sizes = [8, 32], strides = [1, 1]} : vector<8x96xf32> to vector<8x32xf32>
    %451 = arith.addf %449, %450 : vector<8x32xf32>
    %452 = arith.negf %451 : vector<8x32xf32>
    %453 = math.exp %452 : vector<8x32xf32>
    %cst_133 = arith.constant 1.000000e+00 : f32
    %454 = vector.broadcast %cst_133 : f32 to vector<8x32xf32>
    %455 = arith.addf %454, %453 : vector<8x32xf32>
    %456 = arith.divf %454, %455 : vector<8x32xf32>
    %457 = vector.extract_strided_slice %437 {offsets = [0, 64], sizes = [8, 32], strides = [1, 1]} : vector<8x96xf32> to vector<8x32xf32>
    %458 = vector.extract_strided_slice %440 {offsets = [0, 64], sizes = [8, 32], strides = [1, 1]} : vector<8x96xf32> to vector<8x32xf32>
    %459 = arith.mulf %448, %458 : vector<8x32xf32>
    %460 = arith.addf %457, %459 : vector<8x32xf32>
    %461 = math.tanh %460 : vector<8x32xf32>
    %cst_134 = arith.constant 1.000000e+00 : f32
    %462 = vector.broadcast %cst_134 : f32 to vector<8x32xf32>
    %463 = arith.subf %462, %456 : vector<8x32xf32>
    %464 = arith.mulf %463, %461 : vector<8x32xf32>
    %465 = arith.mulf %456, %366 : vector<8x32xf32>
    %466 = arith.addf %464, %465 : vector<8x32xf32>
    %467 = arith.truncf %466 : vector<8x32xf32> to vector<8x32xbf16>
    %cst_135 = arith.constant dense<0.000000e+00> : vector<8x32xf32>
    %468 = tpu.matmul %467, %6, %cst_135 {dimension_numbers = #tpu.dot_dimension_numbers<[1], [0], [0], [1], [0, 0, 1, 1], [], []>} : vector<8x32xbf16>, vector<32x32xbf16>, vector<8x32xf32> -> vector<8x32xf32>
    %469 = arith.addf %468, %17 : vector<8x32xf32>
    %cst_136 = arith.constant 0.000000e+00 : f32
    %470 = vector.broadcast %cst_136 : f32 to vector<8x32xf32>
    %471 = arith.cmpf ogt, %469, %470 : vector<8x32xf32>
    %472 = math.exp %469 : vector<8x32xf32>
    %cst_137 = arith.constant 1.000000e+00 : f32
    %473 = vector.broadcast %cst_137 : f32 to vector<8x32xf32>
    %474 = arith.subf %472, %473 : vector<8x32xf32>
    %cst_138 = arith.constant 1.67326319 : f32
    %475 = vector.broadcast %cst_138 : f32 to vector<8x32xf32>
    %476 = arith.mulf %475, %474 : vector<8x32xf32>
    %477 = arith.select %471, %469, %476 : vector<8x32xi1>, vector<8x32xf32>
    %cst_139 = arith.constant 1.05070102 : f32
    %478 = vector.broadcast %cst_139 : f32 to vector<8x32xf32>
    %479 = arith.mulf %478, %477 : vector<8x32xf32>
    %480 = arith.mulf %1, %479 : vector<8x32xf32>
    %cst_140 = arith.constant dense<0.000000e+00> : vector<8xf32>
    %481 = vector.multi_reduction <add>, %480, %cst_140 [1] : vector<8x32xf32> to vector<8xf32>
    %482 = vector.shape_cast %481 : vector<8xf32> to vector<8x1xf32>
    %483 = arith.mulf %2, %479 : vector<8x32xf32>
    %cst_141 = arith.constant dense<0.000000e+00> : vector<8xf32>
    %484 = vector.multi_reduction <add>, %483, %cst_141 [1] : vector<8x32xf32> to vector<8xf32>
    %485 = vector.shape_cast %484 : vector<8xf32> to vector<8x1xf32>
    %486 = arith.maximumf %482, %485 : vector<8x1xf32>
    %487 = arith.subf %482, %486 : vector<8x1xf32>
    %488 = math.exp %487 : vector<8x1xf32>
    %489 = arith.subf %485, %486 : vector<8x1xf32>
    %490 = math.exp %489 : vector<8x1xf32>
    %491 = arith.addf %488, %490 : vector<8x1xf32>
    %492 = tpu.reciprocal %491 {approx = true} : vector<8x1xf32> -> vector<8x1xf32>
    %493 = arith.mulf %488, %492 : vector<8x1xf32>
    %494 = vector.broadcast %493 : vector<8x1xf32> to vector<8x32xf32>
    %495 = arith.mulf %494, %1 : vector<8x32xf32>
    %496 = arith.mulf %490, %492 : vector<8x1xf32>
    %497 = vector.broadcast %496 : vector<8x1xf32> to vector<8x32xf32>
    %498 = arith.mulf %497, %2 : vector<8x32xf32>
    %499 = arith.addf %495, %498 : vector<8x32xf32>
    %500 = tpu.concatenate %466, %499 in 1 : vector<8x32xf32>, vector<8x32xf32> -> vector<8x64xf32>
    %501 = arith.truncf %500 : vector<8x64xf32> to vector<8x64xbf16>
    %cst_142 = arith.constant dense<0.000000e+00> : vector<8x32xf32>
    %502 = tpu.matmul %501, %7, %cst_142 {dimension_numbers = #tpu.dot_dimension_numbers<[1], [0], [0], [1], [0, 0, 1, 1], [], []>} : vector<8x64xbf16>, vector<64x32xbf16>, vector<8x32xf32> -> vector<8x32xf32>
    %503 = arith.addf %502, %20 : vector<8x32xf32>
    %cst_143 = arith.constant 0.000000e+00 : f32
    %504 = vector.broadcast %cst_143 : f32 to vector<8x32xf32>
    %505 = arith.cmpf ogt, %503, %504 : vector<8x32xf32>
    %506 = math.exp %503 : vector<8x32xf32>
    %cst_144 = arith.constant 1.000000e+00 : f32
    %507 = vector.broadcast %cst_144 : f32 to vector<8x32xf32>
    %508 = arith.subf %506, %507 : vector<8x32xf32>
    %cst_145 = arith.constant 1.67326319 : f32
    %509 = vector.broadcast %cst_145 : f32 to vector<8x32xf32>
    %510 = arith.mulf %509, %508 : vector<8x32xf32>
    %511 = arith.select %505, %503, %510 : vector<8x32xi1>, vector<8x32xf32>
    %cst_146 = arith.constant 1.05070102 : f32
    %512 = vector.broadcast %cst_146 : f32 to vector<8x32xf32>
    %513 = arith.mulf %512, %511 : vector<8x32xf32>
    %514 = arith.truncf %513 : vector<8x32xf32> to vector<8x32xbf16>
    %cst_147 = arith.constant dense<0.000000e+00> : vector<8x128xf32>
    %515 = tpu.matmul %514, %8, %cst_147 {dimension_numbers = #tpu.dot_dimension_numbers<[1], [0], [0], [1], [0, 0, 1, 1], [], []>} : vector<8x32xbf16>, vector<32x128xbf16>, vector<8x128xf32> -> vector<8x128xf32>
    %516 = arith.addf %515, %23 : vector<8x128xf32>
    %517 = arith.maximumf %417, %432 : vector<8x128xf32>
    %cst_148 = arith.constant 0.000000e+00 : f32
    %518 = vector.broadcast %cst_148 : f32 to vector<8x128xf32>
    %519 = arith.cmpf ogt, %517, %518 : vector<8x128xf32>
    %cst_149 = arith.constant -1.000000e+07 : f32
    %520 = vector.broadcast %cst_149 : f32 to vector<8x128xf32>
    %521 = arith.select %519, %520, %516 : vector<8x128xi1>, vector<8x128xf32>
    %522 = arith.index_cast %c4_i32 : i32 to index
    %c0_150 = arith.constant 0 : index
    %c0_151 = arith.constant 0 : index
    %523 = vector.load %arg16[%522, %c0_150, %c0_151] : memref<8x8x128xf32, #tpu.memory_space<vmem>>, vector<1x8x128xf32>
    %524 = vector.shape_cast %523 : vector<1x8x128xf32> to vector<8x128xf32>
    %525 = vector.shape_cast %521 : vector<8x128xf32> to vector<1x8x128xf32>
    tpu.vector_store %arg16[%522, %c0_150, %c0_151], %525 {strides = array<i32>} : memref<8x8x128xf32, #tpu.memory_space<vmem>>, vector<1x8x128xf32>,
    %c5_i32 = arith.constant 5 : i32
    %526 = arith.index_cast %c5_i32 : i32 to index
    %c0_152 = arith.constant 0 : index
    %c0_153 = arith.constant 0 : index
    %527 = vector.load %arg1[%526, %c0_152, %c0_153] : memref<8x8x1xi32, #tpu.memory_space<vmem>>, vector<1x8x1xi32>
    %528 = vector.shape_cast %527 : vector<1x8x1xi32> to vector<8x1xi32>
    %529 = vector.broadcast %528 : vector<8x1xi32> to vector<8x128xi32>
    %530 = arith.cmpi eq, %0, %529 : vector<8x128xi32>
    %531 = arith.extui %530 : vector<8x128xi1> to vector<8x128xi32>
    %532 = arith.sitofp %531 : vector<8x128xi32> to vector<8x128xf32>
    %533 = arith.truncf %532 : vector<8x128xf32> to vector<8x128xbf16>
    %cst_154 = arith.constant dense<0.000000e+00> : vector<8x32xf32>
    %534 = tpu.matmul %533, %3, %cst_154 {dimension_numbers = #tpu.dot_dimension_numbers<[1], [0], [0], [1], [0, 0, 1, 1], [], []>} : vector<8x128xbf16>, vector<128x32xbf16>, vector<8x32xf32> -> vector<8x32xf32>
    %535 = arith.truncf %534 : vector<8x32xf32> to vector<8x32xbf16>
    %cst_155 = arith.constant dense<0.000000e+00> : vector<8x96xf32>
    %536 = tpu.matmul %535, %4, %cst_155 {dimension_numbers = #tpu.dot_dimension_numbers<[1], [0], [0], [1], [0, 0, 1, 1], [], []>} : vector<8x32xbf16>, vector<32x96xbf16>, vector<8x96xf32> -> vector<8x96xf32>
    %537 = arith.addf %536, %11 : vector<8x96xf32>
    %538 = arith.truncf %466 : vector<8x32xf32> to vector<8x32xbf16>
    %cst_156 = arith.constant dense<0.000000e+00> : vector<8x96xf32>
    %539 = tpu.matmul %538, %5, %cst_156 {dimension_numbers = #tpu.dot_dimension_numbers<[1], [0], [0], [1], [0, 0, 1, 1], [], []>} : vector<8x32xbf16>, vector<32x96xbf16>, vector<8x96xf32> -> vector<8x96xf32>
    %540 = arith.addf %539, %14 : vector<8x96xf32>
    %541 = vector.extract_strided_slice %537 {offsets = [0, 0], sizes = [8, 32], strides = [1, 1]} : vector<8x96xf32> to vector<8x32xf32>
    %542 = vector.extract_strided_slice %540 {offsets = [0, 0], sizes = [8, 32], strides = [1, 1]} : vector<8x96xf32> to vector<8x32xf32>
    %543 = arith.addf %541, %542 : vector<8x32xf32>
    %544 = arith.negf %543 : vector<8x32xf32>
    %545 = math.exp %544 : vector<8x32xf32>
    %cst_157 = arith.constant 1.000000e+00 : f32
    %546 = vector.broadcast %cst_157 : f32 to vector<8x32xf32>
    %547 = arith.addf %546, %545 : vector<8x32xf32>
    %548 = arith.divf %546, %547 : vector<8x32xf32>
    %549 = vector.extract_strided_slice %537 {offsets = [0, 32], sizes = [8, 32], strides = [1, 1]} : vector<8x96xf32> to vector<8x32xf32>
    %550 = vector.extract_strided_slice %540 {offsets = [0, 32], sizes = [8, 32], strides = [1, 1]} : vector<8x96xf32> to vector<8x32xf32>
    %551 = arith.addf %549, %550 : vector<8x32xf32>
    %552 = arith.negf %551 : vector<8x32xf32>
    %553 = math.exp %552 : vector<8x32xf32>
    %cst_158 = arith.constant 1.000000e+00 : f32
    %554 = vector.broadcast %cst_158 : f32 to vector<8x32xf32>
    %555 = arith.addf %554, %553 : vector<8x32xf32>
    %556 = arith.divf %554, %555 : vector<8x32xf32>
    %557 = vector.extract_strided_slice %537 {offsets = [0, 64], sizes = [8, 32], strides = [1, 1]} : vector<8x96xf32> to vector<8x32xf32>
    %558 = vector.extract_strided_slice %540 {offsets = [0, 64], sizes = [8, 32], strides = [1, 1]} : vector<8x96xf32> to vector<8x32xf32>
    %559 = arith.mulf %548, %558 : vector<8x32xf32>
    %560 = arith.addf %557, %559 : vector<8x32xf32>
    %561 = math.tanh %560 : vector<8x32xf32>
    %cst_159 = arith.constant 1.000000e+00 : f32
    %562 = vector.broadcast %cst_159 : f32 to vector<8x32xf32>
    %563 = arith.subf %562, %556 : vector<8x32xf32>
    %564 = arith.mulf %563, %561 : vector<8x32xf32>
    %565 = arith.mulf %556, %466 : vector<8x32xf32>
    %566 = arith.addf %564, %565 : vector<8x32xf32>
    %567 = arith.truncf %566 : vector<8x32xf32> to vector<8x32xbf16>
    %cst_160 = arith.constant dense<0.000000e+00> : vector<8x32xf32>
    %568 = tpu.matmul %567, %6, %cst_160 {dimension_numbers = #tpu.dot_dimension_numbers<[1], [0], [0], [1], [0, 0, 1, 1], [], []>} : vector<8x32xbf16>, vector<32x32xbf16>, vector<8x32xf32> -> vector<8x32xf32>
    %569 = arith.addf %568, %17 : vector<8x32xf32>
    %cst_161 = arith.constant 0.000000e+00 : f32
    %570 = vector.broadcast %cst_161 : f32 to vector<8x32xf32>
    %571 = arith.cmpf ogt, %569, %570 : vector<8x32xf32>
    %572 = math.exp %569 : vector<8x32xf32>
    %cst_162 = arith.constant 1.000000e+00 : f32
    %573 = vector.broadcast %cst_162 : f32 to vector<8x32xf32>
    %574 = arith.subf %572, %573 : vector<8x32xf32>
    %cst_163 = arith.constant 1.67326319 : f32
    %575 = vector.broadcast %cst_163 : f32 to vector<8x32xf32>
    %576 = arith.mulf %575, %574 : vector<8x32xf32>
    %577 = arith.select %571, %569, %576 : vector<8x32xi1>, vector<8x32xf32>
    %cst_164 = arith.constant 1.05070102 : f32
    %578 = vector.broadcast %cst_164 : f32 to vector<8x32xf32>
    %579 = arith.mulf %578, %577 : vector<8x32xf32>
    %580 = arith.mulf %1, %579 : vector<8x32xf32>
    %cst_165 = arith.constant dense<0.000000e+00> : vector<8xf32>
    %581 = vector.multi_reduction <add>, %580, %cst_165 [1] : vector<8x32xf32> to vector<8xf32>
    %582 = vector.shape_cast %581 : vector<8xf32> to vector<8x1xf32>
    %583 = arith.mulf %2, %579 : vector<8x32xf32>
    %cst_166 = arith.constant dense<0.000000e+00> : vector<8xf32>
    %584 = vector.multi_reduction <add>, %583, %cst_166 [1] : vector<8x32xf32> to vector<8xf32>
    %585 = vector.shape_cast %584 : vector<8xf32> to vector<8x1xf32>
    %586 = arith.maximumf %582, %585 : vector<8x1xf32>
    %587 = arith.subf %582, %586 : vector<8x1xf32>
    %588 = math.exp %587 : vector<8x1xf32>
    %589 = arith.subf %585, %586 : vector<8x1xf32>
    %590 = math.exp %589 : vector<8x1xf32>
    %591 = arith.addf %588, %590 : vector<8x1xf32>
    %592 = tpu.reciprocal %591 {approx = true} : vector<8x1xf32> -> vector<8x1xf32>
    %593 = arith.mulf %588, %592 : vector<8x1xf32>
    %594 = vector.broadcast %593 : vector<8x1xf32> to vector<8x32xf32>
    %595 = arith.mulf %594, %1 : vector<8x32xf32>
    %596 = arith.mulf %590, %592 : vector<8x1xf32>
    %597 = vector.broadcast %596 : vector<8x1xf32> to vector<8x32xf32>
    %598 = arith.mulf %597, %2 : vector<8x32xf32>
    %599 = arith.addf %595, %598 : vector<8x32xf32>
    %600 = tpu.concatenate %566, %599 in 1 : vector<8x32xf32>, vector<8x32xf32> -> vector<8x64xf32>
    %601 = arith.truncf %600 : vector<8x64xf32> to vector<8x64xbf16>
    %cst_167 = arith.constant dense<0.000000e+00> : vector<8x32xf32>
    %602 = tpu.matmul %601, %7, %cst_167 {dimension_numbers = #tpu.dot_dimension_numbers<[1], [0], [0], [1], [0, 0, 1, 1], [], []>} : vector<8x64xbf16>, vector<64x32xbf16>, vector<8x32xf32> -> vector<8x32xf32>
    %603 = arith.addf %602, %20 : vector<8x32xf32>
    %cst_168 = arith.constant 0.000000e+00 : f32
    %604 = vector.broadcast %cst_168 : f32 to vector<8x32xf32>
    %605 = arith.cmpf ogt, %603, %604 : vector<8x32xf32>
    %606 = math.exp %603 : vector<8x32xf32>
    %cst_169 = arith.constant 1.000000e+00 : f32
    %607 = vector.broadcast %cst_169 : f32 to vector<8x32xf32>
    %608 = arith.subf %606, %607 : vector<8x32xf32>
    %cst_170 = arith.constant 1.67326319 : f32
    %609 = vector.broadcast %cst_170 : f32 to vector<8x32xf32>
    %610 = arith.mulf %609, %608 : vector<8x32xf32>
    %611 = arith.select %605, %603, %610 : vector<8x32xi1>, vector<8x32xf32>
    %cst_171 = arith.constant 1.05070102 : f32
    %612 = vector.broadcast %cst_171 : f32 to vector<8x32xf32>
    %613 = arith.mulf %612, %611 : vector<8x32xf32>
    %614 = arith.truncf %613 : vector<8x32xf32> to vector<8x32xbf16>
    %cst_172 = arith.constant dense<0.000000e+00> : vector<8x128xf32>
    %615 = tpu.matmul %614, %8, %cst_172 {dimension_numbers = #tpu.dot_dimension_numbers<[1], [0], [0], [1], [0, 0, 1, 1], [], []>} : vector<8x32xbf16>, vector<32x128xbf16>, vector<8x128xf32> -> vector<8x128xf32>
    %616 = arith.addf %615, %23 : vector<8x128xf32>
    %617 = arith.maximumf %517, %532 : vector<8x128xf32>
    %cst_173 = arith.constant 0.000000e+00 : f32
    %618 = vector.broadcast %cst_173 : f32 to vector<8x128xf32>
    %619 = arith.cmpf ogt, %617, %618 : vector<8x128xf32>
    %cst_174 = arith.constant -1.000000e+07 : f32
    %620 = vector.broadcast %cst_174 : f32 to vector<8x128xf32>
    %621 = arith.select %619, %620, %616 : vector<8x128xi1>, vector<8x128xf32>
    %622 = arith.index_cast %c5_i32 : i32 to index
    %c0_175 = arith.constant 0 : index
    %c0_176 = arith.constant 0 : index
    %623 = vector.load %arg16[%622, %c0_175, %c0_176] : memref<8x8x128xf32, #tpu.memory_space<vmem>>, vector<1x8x128xf32>
    %624 = vector.shape_cast %623 : vector<1x8x128xf32> to vector<8x128xf32>
    %625 = vector.shape_cast %621 : vector<8x128xf32> to vector<1x8x128xf32>
    tpu.vector_store %arg16[%622, %c0_175, %c0_176], %625 {strides = array<i32>} : memref<8x8x128xf32, #tpu.memory_space<vmem>>, vector<1x8x128xf32>,
    %c6_i32 = arith.constant 6 : i32
    %626 = arith.index_cast %c6_i32 : i32 to index
    %c0_177 = arith.constant 0 : index
    %c0_178 = arith.constant 0 : index
    %627 = vector.load %arg1[%626, %c0_177, %c0_178] : memref<8x8x1xi32, #tpu.memory_space<vmem>>, vector<1x8x1xi32>
    %628 = vector.shape_cast %627 : vector<1x8x1xi32> to vector<8x1xi32>
    %629 = vector.broadcast %628 : vector<8x1xi32> to vector<8x128xi32>
    %630 = arith.cmpi eq, %0, %629 : vector<8x128xi32>
    %631 = arith.extui %630 : vector<8x128xi1> to vector<8x128xi32>
    %632 = arith.sitofp %631 : vector<8x128xi32> to vector<8x128xf32>
    %633 = arith.truncf %632 : vector<8x128xf32> to vector<8x128xbf16>
    %cst_179 = arith.constant dense<0.000000e+00> : vector<8x32xf32>
    %634 = tpu.matmul %633, %3, %cst_179 {dimension_numbers = #tpu.dot_dimension_numbers<[1], [0], [0], [1], [0, 0, 1, 1], [], []>} : vector<8x128xbf16>, vector<128x32xbf16>, vector<8x32xf32> -> vector<8x32xf32>
    %635 = arith.truncf %634 : vector<8x32xf32> to vector<8x32xbf16>
    %cst_180 = arith.constant dense<0.000000e+00> : vector<8x96xf32>
    %636 = tpu.matmul %635, %4, %cst_180 {dimension_numbers = #tpu.dot_dimension_numbers<[1], [0], [0], [1], [0, 0, 1, 1], [], []>} : vector<8x32xbf16>, vector<32x96xbf16>, vector<8x96xf32> -> vector<8x96xf32>
    %637 = arith.addf %636, %11 : vector<8x96xf32>
    %638 = arith.truncf %566 : vector<8x32xf32> to vector<8x32xbf16>
    %cst_181 = arith.constant dense<0.000000e+00> : vector<8x96xf32>
    %639 = tpu.matmul %638, %5, %cst_181 {dimension_numbers = #tpu.dot_dimension_numbers<[1], [0], [0], [1], [0, 0, 1, 1], [], []>} : vector<8x32xbf16>, vector<32x96xbf16>, vector<8x96xf32> -> vector<8x96xf32>
    %640 = arith.addf %639, %14 : vector<8x96xf32>
    %641 = vector.extract_strided_slice %637 {offsets = [0, 0], sizes = [8, 32], strides = [1, 1]} : vector<8x96xf32> to vector<8x32xf32>
    %642 = vector.extract_strided_slice %640 {offsets = [0, 0], sizes = [8, 32], strides = [1, 1]} : vector<8x96xf32> to vector<8x32xf32>
    %643 = arith.addf %641, %642 : vector<8x32xf32>
    %644 = arith.negf %643 : vector<8x32xf32>
    %645 = math.exp %644 : vector<8x32xf32>
    %cst_182 = arith.constant 1.000000e+00 : f32
    %646 = vector.broadcast %cst_182 : f32 to vector<8x32xf32>
    %647 = arith.addf %646, %645 : vector<8x32xf32>
    %648 = arith.divf %646, %647 : vector<8x32xf32>
    %649 = vector.extract_strided_slice %637 {offsets = [0, 32], sizes = [8, 32], strides = [1, 1]} : vector<8x96xf32> to vector<8x32xf32>
    %650 = vector.extract_strided_slice %640 {offsets = [0, 32], sizes = [8, 32], strides = [1, 1]} : vector<8x96xf32> to vector<8x32xf32>
    %651 = arith.addf %649, %650 : vector<8x32xf32>
    %652 = arith.negf %651 : vector<8x32xf32>
    %653 = math.exp %652 : vector<8x32xf32>
    %cst_183 = arith.constant 1.000000e+00 : f32
    %654 = vector.broadcast %cst_183 : f32 to vector<8x32xf32>
    %655 = arith.addf %654, %653 : vector<8x32xf32>
    %656 = arith.divf %654, %655 : vector<8x32xf32>
    %657 = vector.extract_strided_slice %637 {offsets = [0, 64], sizes = [8, 32], strides = [1, 1]} : vector<8x96xf32> to vector<8x32xf32>
    %658 = vector.extract_strided_slice %640 {offsets = [0, 64], sizes = [8, 32], strides = [1, 1]} : vector<8x96xf32> to vector<8x32xf32>
    %659 = arith.mulf %648, %658 : vector<8x32xf32>
    %660 = arith.addf %657, %659 : vector<8x32xf32>
    %661 = math.tanh %660 : vector<8x32xf32>
    %cst_184 = arith.constant 1.000000e+00 : f32
    %662 = vector.broadcast %cst_184 : f32 to vector<8x32xf32>
    %663 = arith.subf %662, %656 : vector<8x32xf32>
    %664 = arith.mulf %663, %661 : vector<8x32xf32>
    %665 = arith.mulf %656, %566 : vector<8x32xf32>
    %666 = arith.addf %664, %665 : vector<8x32xf32>
    %667 = arith.truncf %666 : vector<8x32xf32> to vector<8x32xbf16>
    %cst_185 = arith.constant dense<0.000000e+00> : vector<8x32xf32>
    %668 = tpu.matmul %667, %6, %cst_185 {dimension_numbers = #tpu.dot_dimension_numbers<[1], [0], [0], [1], [0, 0, 1, 1], [], []>} : vector<8x32xbf16>, vector<32x32xbf16>, vector<8x32xf32> -> vector<8x32xf32>
    %669 = arith.addf %668, %17 : vector<8x32xf32>
    %cst_186 = arith.constant 0.000000e+00 : f32
    %670 = vector.broadcast %cst_186 : f32 to vector<8x32xf32>
    %671 = arith.cmpf ogt, %669, %670 : vector<8x32xf32>
    %672 = math.exp %669 : vector<8x32xf32>
    %cst_187 = arith.constant 1.000000e+00 : f32
    %673 = vector.broadcast %cst_187 : f32 to vector<8x32xf32>
    %674 = arith.subf %672, %673 : vector<8x32xf32>
    %cst_188 = arith.constant 1.67326319 : f32
    %675 = vector.broadcast %cst_188 : f32 to vector<8x32xf32>
    %676 = arith.mulf %675, %674 : vector<8x32xf32>
    %677 = arith.select %671, %669, %676 : vector<8x32xi1>, vector<8x32xf32>
    %cst_189 = arith.constant 1.05070102 : f32
    %678 = vector.broadcast %cst_189 : f32 to vector<8x32xf32>
    %679 = arith.mulf %678, %677 : vector<8x32xf32>
    %680 = arith.mulf %1, %679 : vector<8x32xf32>
    %cst_190 = arith.constant dense<0.000000e+00> : vector<8xf32>
    %681 = vector.multi_reduction <add>, %680, %cst_190 [1] : vector<8x32xf32> to vector<8xf32>
    %682 = vector.shape_cast %681 : vector<8xf32> to vector<8x1xf32>
    %683 = arith.mulf %2, %679 : vector<8x32xf32>
    %cst_191 = arith.constant dense<0.000000e+00> : vector<8xf32>
    %684 = vector.multi_reduction <add>, %683, %cst_191 [1] : vector<8x32xf32> to vector<8xf32>
    %685 = vector.shape_cast %684 : vector<8xf32> to vector<8x1xf32>
    %686 = arith.maximumf %682, %685 : vector<8x1xf32>
    %687 = arith.subf %682, %686 : vector<8x1xf32>
    %688 = math.exp %687 : vector<8x1xf32>
    %689 = arith.subf %685, %686 : vector<8x1xf32>
    %690 = math.exp %689 : vector<8x1xf32>
    %691 = arith.addf %688, %690 : vector<8x1xf32>
    %692 = tpu.reciprocal %691 {approx = true} : vector<8x1xf32> -> vector<8x1xf32>
    %693 = arith.mulf %688, %692 : vector<8x1xf32>
    %694 = vector.broadcast %693 : vector<8x1xf32> to vector<8x32xf32>
    %695 = arith.mulf %694, %1 : vector<8x32xf32>
    %696 = arith.mulf %690, %692 : vector<8x1xf32>
    %697 = vector.broadcast %696 : vector<8x1xf32> to vector<8x32xf32>
    %698 = arith.mulf %697, %2 : vector<8x32xf32>
    %699 = arith.addf %695, %698 : vector<8x32xf32>
    %700 = tpu.concatenate %666, %699 in 1 : vector<8x32xf32>, vector<8x32xf32> -> vector<8x64xf32>
    %701 = arith.truncf %700 : vector<8x64xf32> to vector<8x64xbf16>
    %cst_192 = arith.constant dense<0.000000e+00> : vector<8x32xf32>
    %702 = tpu.matmul %701, %7, %cst_192 {dimension_numbers = #tpu.dot_dimension_numbers<[1], [0], [0], [1], [0, 0, 1, 1], [], []>} : vector<8x64xbf16>, vector<64x32xbf16>, vector<8x32xf32> -> vector<8x32xf32>
    %703 = arith.addf %702, %20 : vector<8x32xf32>
    %cst_193 = arith.constant 0.000000e+00 : f32
    %704 = vector.broadcast %cst_193 : f32 to vector<8x32xf32>
    %705 = arith.cmpf ogt, %703, %704 : vector<8x32xf32>
    %706 = math.exp %703 : vector<8x32xf32>
    %cst_194 = arith.constant 1.000000e+00 : f32
    %707 = vector.broadcast %cst_194 : f32 to vector<8x32xf32>
    %708 = arith.subf %706, %707 : vector<8x32xf32>
    %cst_195 = arith.constant 1.67326319 : f32
    %709 = vector.broadcast %cst_195 : f32 to vector<8x32xf32>
    %710 = arith.mulf %709, %708 : vector<8x32xf32>
    %711 = arith.select %705, %703, %710 : vector<8x32xi1>, vector<8x32xf32>
    %cst_196 = arith.constant 1.05070102 : f32
    %712 = vector.broadcast %cst_196 : f32 to vector<8x32xf32>
    %713 = arith.mulf %712, %711 : vector<8x32xf32>
    %714 = arith.truncf %713 : vector<8x32xf32> to vector<8x32xbf16>
    %cst_197 = arith.constant dense<0.000000e+00> : vector<8x128xf32>
    %715 = tpu.matmul %714, %8, %cst_197 {dimension_numbers = #tpu.dot_dimension_numbers<[1], [0], [0], [1], [0, 0, 1, 1], [], []>} : vector<8x32xbf16>, vector<32x128xbf16>, vector<8x128xf32> -> vector<8x128xf32>
    %716 = arith.addf %715, %23 : vector<8x128xf32>
    %717 = arith.maximumf %617, %632 : vector<8x128xf32>
    %cst_198 = arith.constant 0.000000e+00 : f32
    %718 = vector.broadcast %cst_198 : f32 to vector<8x128xf32>
    %719 = arith.cmpf ogt, %717, %718 : vector<8x128xf32>
    %cst_199 = arith.constant -1.000000e+07 : f32
    %720 = vector.broadcast %cst_199 : f32 to vector<8x128xf32>
    %721 = arith.select %719, %720, %716 : vector<8x128xi1>, vector<8x128xf32>
    %722 = arith.index_cast %c6_i32 : i32 to index
    %c0_200 = arith.constant 0 : index
    %c0_201 = arith.constant 0 : index
    %723 = vector.load %arg16[%722, %c0_200, %c0_201] : memref<8x8x128xf32, #tpu.memory_space<vmem>>, vector<1x8x128xf32>
    %724 = vector.shape_cast %723 : vector<1x8x128xf32> to vector<8x128xf32>
    %725 = vector.shape_cast %721 : vector<8x128xf32> to vector<1x8x128xf32>
    tpu.vector_store %arg16[%722, %c0_200, %c0_201], %725 {strides = array<i32>} : memref<8x8x128xf32, #tpu.memory_space<vmem>>, vector<1x8x128xf32>,
    %c7_i32 = arith.constant 7 : i32
    %726 = arith.index_cast %c7_i32 : i32 to index
    %c0_202 = arith.constant 0 : index
    %c0_203 = arith.constant 0 : index
    %727 = vector.load %arg1[%726, %c0_202, %c0_203] : memref<8x8x1xi32, #tpu.memory_space<vmem>>, vector<1x8x1xi32>
    %728 = vector.shape_cast %727 : vector<1x8x1xi32> to vector<8x1xi32>
    %729 = vector.broadcast %728 : vector<8x1xi32> to vector<8x128xi32>
    %730 = arith.cmpi eq, %0, %729 : vector<8x128xi32>
    %731 = arith.extui %730 : vector<8x128xi1> to vector<8x128xi32>
    %732 = arith.sitofp %731 : vector<8x128xi32> to vector<8x128xf32>
    %733 = arith.truncf %732 : vector<8x128xf32> to vector<8x128xbf16>
    %cst_204 = arith.constant dense<0.000000e+00> : vector<8x32xf32>
    %734 = tpu.matmul %733, %3, %cst_204 {dimension_numbers = #tpu.dot_dimension_numbers<[1], [0], [0], [1], [0, 0, 1, 1], [], []>} : vector<8x128xbf16>, vector<128x32xbf16>, vector<8x32xf32> -> vector<8x32xf32>
    %735 = arith.truncf %734 : vector<8x32xf32> to vector<8x32xbf16>
    %cst_205 = arith.constant dense<0.000000e+00> : vector<8x96xf32>
    %736 = tpu.matmul %735, %4, %cst_205 {dimension_numbers = #tpu.dot_dimension_numbers<[1], [0], [0], [1], [0, 0, 1, 1], [], []>} : vector<8x32xbf16>, vector<32x96xbf16>, vector<8x96xf32> -> vector<8x96xf32>
    %737 = arith.addf %736, %11 : vector<8x96xf32>
    %738 = arith.truncf %666 : vector<8x32xf32> to vector<8x32xbf16>
    %cst_206 = arith.constant dense<0.000000e+00> : vector<8x96xf32>
    %739 = tpu.matmul %738, %5, %cst_206 {dimension_numbers = #tpu.dot_dimension_numbers<[1], [0], [0], [1], [0, 0, 1, 1], [], []>} : vector<8x32xbf16>, vector<32x96xbf16>, vector<8x96xf32> -> vector<8x96xf32>
    %740 = arith.addf %739, %14 : vector<8x96xf32>
    %741 = vector.extract_strided_slice %737 {offsets = [0, 0], sizes = [8, 32], strides = [1, 1]} : vector<8x96xf32> to vector<8x32xf32>
    %742 = vector.extract_strided_slice %740 {offsets = [0, 0], sizes = [8, 32], strides = [1, 1]} : vector<8x96xf32> to vector<8x32xf32>
    %743 = arith.addf %741, %742 : vector<8x32xf32>
    %744 = arith.negf %743 : vector<8x32xf32>
    %745 = math.exp %744 : vector<8x32xf32>
    %cst_207 = arith.constant 1.000000e+00 : f32
    %746 = vector.broadcast %cst_207 : f32 to vector<8x32xf32>
    %747 = arith.addf %746, %745 : vector<8x32xf32>
    %748 = arith.divf %746, %747 : vector<8x32xf32>
    %749 = vector.extract_strided_slice %737 {offsets = [0, 32], sizes = [8, 32], strides = [1, 1]} : vector<8x96xf32> to vector<8x32xf32>
    %750 = vector.extract_strided_slice %740 {offsets = [0, 32], sizes = [8, 32], strides = [1, 1]} : vector<8x96xf32> to vector<8x32xf32>
    %751 = arith.addf %749, %750 : vector<8x32xf32>
    %752 = arith.negf %751 : vector<8x32xf32>
    %753 = math.exp %752 : vector<8x32xf32>
    %cst_208 = arith.constant 1.000000e+00 : f32
    %754 = vector.broadcast %cst_208 : f32 to vector<8x32xf32>
    %755 = arith.addf %754, %753 : vector<8x32xf32>
    %756 = arith.divf %754, %755 : vector<8x32xf32>
    %757 = vector.extract_strided_slice %737 {offsets = [0, 64], sizes = [8, 32], strides = [1, 1]} : vector<8x96xf32> to vector<8x32xf32>
    %758 = vector.extract_strided_slice %740 {offsets = [0, 64], sizes = [8, 32], strides = [1, 1]} : vector<8x96xf32> to vector<8x32xf32>
    %759 = arith.mulf %748, %758 : vector<8x32xf32>
    %760 = arith.addf %757, %759 : vector<8x32xf32>
    %761 = math.tanh %760 : vector<8x32xf32>
    %cst_209 = arith.constant 1.000000e+00 : f32
    %762 = vector.broadcast %cst_209 : f32 to vector<8x32xf32>
    %763 = arith.subf %762, %756 : vector<8x32xf32>
    %764 = arith.mulf %763, %761 : vector<8x32xf32>
    %765 = arith.mulf %756, %666 : vector<8x32xf32>
    %766 = arith.addf %764, %765 : vector<8x32xf32>
    %767 = arith.truncf %766 : vector<8x32xf32> to vector<8x32xbf16>
    %cst_210 = arith.constant dense<0.000000e+00> : vector<8x32xf32>
    %768 = tpu.matmul %767, %6, %cst_210 {dimension_numbers = #tpu.dot_dimension_numbers<[1], [0], [0], [1], [0, 0, 1, 1], [], []>} : vector<8x32xbf16>, vector<32x32xbf16>, vector<8x32xf32> -> vector<8x32xf32>
    %769 = arith.addf %768, %17 : vector<8x32xf32>
    %cst_211 = arith.constant 0.000000e+00 : f32
    %770 = vector.broadcast %cst_211 : f32 to vector<8x32xf32>
    %771 = arith.cmpf ogt, %769, %770 : vector<8x32xf32>
    %772 = math.exp %769 : vector<8x32xf32>
    %cst_212 = arith.constant 1.000000e+00 : f32
    %773 = vector.broadcast %cst_212 : f32 to vector<8x32xf32>
    %774 = arith.subf %772, %773 : vector<8x32xf32>
    %cst_213 = arith.constant 1.67326319 : f32
    %775 = vector.broadcast %cst_213 : f32 to vector<8x32xf32>
    %776 = arith.mulf %775, %774 : vector<8x32xf32>
    %777 = arith.select %771, %769, %776 : vector<8x32xi1>, vector<8x32xf32>
    %cst_214 = arith.constant 1.05070102 : f32
    %778 = vector.broadcast %cst_214 : f32 to vector<8x32xf32>
    %779 = arith.mulf %778, %777 : vector<8x32xf32>
    %780 = arith.mulf %1, %779 : vector<8x32xf32>
    %cst_215 = arith.constant dense<0.000000e+00> : vector<8xf32>
    %781 = vector.multi_reduction <add>, %780, %cst_215 [1] : vector<8x32xf32> to vector<8xf32>
    %782 = vector.shape_cast %781 : vector<8xf32> to vector<8x1xf32>
    %783 = arith.mulf %2, %779 : vector<8x32xf32>
    %cst_216 = arith.constant dense<0.000000e+00> : vector<8xf32>
    %784 = vector.multi_reduction <add>, %783, %cst_216 [1] : vector<8x32xf32> to vector<8xf32>
    %785 = vector.shape_cast %784 : vector<8xf32> to vector<8x1xf32>
    %786 = arith.maximumf %782, %785 : vector<8x1xf32>
    %787 = arith.subf %782, %786 : vector<8x1xf32>
    %788 = math.exp %787 : vector<8x1xf32>
    %789 = arith.subf %785, %786 : vector<8x1xf32>
    %790 = math.exp %789 : vector<8x1xf32>
    %791 = arith.addf %788, %790 : vector<8x1xf32>
    %792 = tpu.reciprocal %791 {approx = true} : vector<8x1xf32> -> vector<8x1xf32>
    %793 = arith.mulf %788, %792 : vector<8x1xf32>
    %794 = vector.broadcast %793 : vector<8x1xf32> to vector<8x32xf32>
    %795 = arith.mulf %794, %1 : vector<8x32xf32>
    %796 = arith.mulf %790, %792 : vector<8x1xf32>
    %797 = vector.broadcast %796 : vector<8x1xf32> to vector<8x32xf32>
    %798 = arith.mulf %797, %2 : vector<8x32xf32>
    %799 = arith.addf %795, %798 : vector<8x32xf32>
    %800 = tpu.concatenate %766, %799 in 1 : vector<8x32xf32>, vector<8x32xf32> -> vector<8x64xf32>
    %801 = arith.truncf %800 : vector<8x64xf32> to vector<8x64xbf16>
    %cst_217 = arith.constant dense<0.000000e+00> : vector<8x32xf32>
    %802 = tpu.matmul %801, %7, %cst_217 {dimension_numbers = #tpu.dot_dimension_numbers<[1], [0], [0], [1], [0, 0, 1, 1], [], []>} : vector<8x64xbf16>, vector<64x32xbf16>, vector<8x32xf32> -> vector<8x32xf32>
    %803 = arith.addf %802, %20 : vector<8x32xf32>
    %cst_218 = arith.constant 0.000000e+00 : f32
    %804 = vector.broadcast %cst_218 : f32 to vector<8x32xf32>
    %805 = arith.cmpf ogt, %803, %804 : vector<8x32xf32>
    %806 = math.exp %803 : vector<8x32xf32>
    %cst_219 = arith.constant 1.000000e+00 : f32
    %807 = vector.broadcast %cst_219 : f32 to vector<8x32xf32>
    %808 = arith.subf %806, %807 : vector<8x32xf32>
    %cst_220 = arith.constant 1.67326319 : f32
    %809 = vector.broadcast %cst_220 : f32 to vector<8x32xf32>
    %810 = arith.mulf %809, %808 : vector<8x32xf32>
    %811 = arith.select %805, %803, %810 : vector<8x32xi1>, vector<8x32xf32>
    %cst_221 = arith.constant 1.05070102 : f32
    %812 = vector.broadcast %cst_221 : f32 to vector<8x32xf32>
    %813 = arith.mulf %812, %811 : vector<8x32xf32>
    %814 = arith.truncf %813 : vector<8x32xf32> to vector<8x32xbf16>
    %cst_222 = arith.constant dense<0.000000e+00> : vector<8x128xf32>
    %815 = tpu.matmul %814, %8, %cst_222 {dimension_numbers = #tpu.dot_dimension_numbers<[1], [0], [0], [1], [0, 0, 1, 1], [], []>} : vector<8x32xbf16>, vector<32x128xbf16>, vector<8x128xf32> -> vector<8x128xf32>
    %816 = arith.addf %815, %23 : vector<8x128xf32>
    %817 = arith.maximumf %717, %732 : vector<8x128xf32>
    %cst_223 = arith.constant 0.000000e+00 : f32
    %818 = vector.broadcast %cst_223 : f32 to vector<8x128xf32>
    %819 = arith.cmpf ogt, %817, %818 : vector<8x128xf32>
    %cst_224 = arith.constant -1.000000e+07 : f32
    %820 = vector.broadcast %cst_224 : f32 to vector<8x128xf32>
    %821 = arith.select %819, %820, %816 : vector<8x128xi1>, vector<8x128xf32>
    %822 = arith.index_cast %c7_i32 : i32 to index
    %c0_225 = arith.constant 0 : index
    %c0_226 = arith.constant 0 : index
    %823 = vector.load %arg16[%822, %c0_225, %c0_226] : memref<8x8x128xf32, #tpu.memory_space<vmem>>, vector<1x8x128xf32>
    %824 = vector.shape_cast %823 : vector<1x8x128xf32> to vector<8x128xf32>
    %825 = vector.shape_cast %821 : vector<8x128xf32> to vector<1x8x128xf32>
    tpu.vector_store %arg16[%822, %c0_225, %c0_226], %825 {strides = array<i32>} : memref<8x8x128xf32, #tpu.memory_space<vmem>>, vector<1x8x128xf32>,
    %c8_i32 = arith.constant 8 : i32
    return
  }
  func.func @transform_0(%arg0: i32) -> (i32, i32, i32) {
    %c0_i32 = arith.constant 0 : i32
    %c0_i32_0 = arith.constant 0 : i32
    %c0_i32_1 = arith.constant 0 : i32
    %c0_i32_2 = arith.constant 0 : i32
    return %c0_i32, %c0_i32_0, %c0_i32_1 : i32, i32, i32
  }
  func.func @transform_1(%arg0: i32) -> (i32, i32) {
    %c0_i32 = arith.constant 0 : i32
    %c0_i32_0 = arith.constant 0 : i32
    %c0_i32_1 = arith.constant 0 : i32
    return %c0_i32, %c0_i32_0 : i32, i32
  }
  func.func @transform_2(%arg0: i32) -> (i32, i32) {
    %c0_i32 = arith.constant 0 : i32
    %c0_i32_0 = arith.constant 0 : i32
    %c0_i32_1 = arith.constant 0 : i32
    return %c0_i32, %c0_i32_0 : i32, i32
  }
  func.func @transform_3(%arg0: i32) -> (i32, i32) {
    %c0_i32 = arith.constant 0 : i32
    %c0_i32_0 = arith.constant 0 : i32
    %c0_i32_1 = arith.constant 0 : i32
    return %c0_i32, %c0_i32_0 : i32, i32
  }
  func.func @transform_4(%arg0: i32) -> (i32, i32) {
    %c0_i32 = arith.constant 0 : i32
    %c0_i32_0 = arith.constant 0 : i32
    %c0_i32_1 = arith.constant 0 : i32
    return %c0_i32, %c0_i32_0 : i32, i32
  }
  func.func @transform_5(%arg0: i32) -> (i32, i32) {
    %c0_i32 = arith.constant 0 : i32
    %c0_i32_0 = arith.constant 0 : i32
    %c0_i32_1 = arith.constant 0 : i32
    return %c0_i32, %c0_i32_0 : i32, i32
  }
  func.func @transform_6(%arg0: i32) -> (i32, i32) {
    %c0_i32 = arith.constant 0 : i32
    %c0_i32_0 = arith.constant 0 : i32
    %c0_i32_1 = arith.constant 0 : i32
    return %c0_i32, %c0_i32_0 : i32, i32
  }
  func.func @transform_7(%arg0: i32) -> (i32, i32) {
    %c0_i32 = arith.constant 0 : i32
    %c0_i32_0 = arith.constant 0 : i32
    %c0_i32_1 = arith.constant 0 : i32
    return %c0_i32, %c0_i32_0 : i32, i32
  }
  func.func @transform_8(%arg0: i32) -> (i32, i32) {
    %c0_i32 = arith.constant 0 : i32
    %c0_i32_0 = arith.constant 0 : i32
    %c0_i32_1 = arith.constant 0 : i32
    return %c0_i32, %c0_i32_0 : i32, i32
  }
  func.func @transform_9(%arg0: i32) -> (i32, i32) {
    %c0_i32 = arith.constant 0 : i32
    %c0_i32_0 = arith.constant 0 : i32
    %c0_i32_1 = arith.constant 0 : i32
    return %c0_i32, %c0_i32_0 : i32, i32
  }
  func.func @transform_10(%arg0: i32) -> (i32, i32) {
    %c0_i32 = arith.constant 0 : i32
    %c0_i32_0 = arith.constant 0 : i32
    %c0_i32_1 = arith.constant 0 : i32
    return %c0_i32, %c0_i32_0 : i32, i32
  }
  func.func @transform_11(%arg0: i32) -> (i32, i32) {
    %c0_i32 = arith.constant 0 : i32
    %c0_i32_0 = arith.constant 0 : i32
    %c0_i32_1 = arith.constant 0 : i32
    return %c0_i32, %c0_i32_0 : i32, i32
  }
  func.func @transform_12(%arg0: i32) -> (i32, i32) {
    %c0_i32 = arith.constant 0 : i32
    %c0_i32_0 = arith.constant 0 : i32
    %c0_i32_1 = arith.constant 0 : i32
    return %c0_i32, %c0_i32_0 : i32, i32
  }
  func.func @transform_13(%arg0: i32) -> (i32, i32) {
    %c0_i32 = arith.constant 0 : i32
    %c0_i32_0 = arith.constant 0 : i32
    %c0_i32_1 = arith.constant 0 : i32
    return %c0_i32, %c0_i32_0 : i32, i32
  }
  func.func @transform_14(%arg0: i32) -> (i32, i32) {
    %c0_i32 = arith.constant 0 : i32
    %c0_i32_0 = arith.constant 0 : i32
    %c0_i32_1 = arith.constant 0 : i32
    return %c0_i32, %c0_i32_0 : i32, i32
  }
  func.func @transform_15(%arg0: i32) -> (i32, i32, i32) {
    %c0_i32 = arith.constant 0 : i32
    %c0_i32_0 = arith.constant 0 : i32
    %c0_i32_1 = arith.constant 0 : i32
    %c0_i32_2 = arith.constant 0 : i32
    return %c0_i32, %c0_i32_0, %c0_i32_1 : i32, i32, i32
  }
}

</mosaic_0001>

<bundles_post_ra>
// kernel: tpu_custom_call.1
= control target key start
LH: loop header
LB: loop body
LE: loop exit
PB: predicated region body
PF: predicated region fallthrough
CT: control target
= control target key end

     0   :  { %v4096_v2 = vmov 0   ;;  %v4097_v3 = vmov 0.0   ;;  %vm4098_vm0 = vmmov 0   ;;  %s5343_s0 = inlined_call_operand.vmem [shape: s32[8,8,1], index: 0, kind: input, shape index: {}]   ;;  %s5344_s1 = inlined_call_operand.vmem [shape: f32[8,32], index: 1, kind: input, shape index: {}]   ;;  %s5345_s2 = inlined_call_operand.vmem [shape: f32[8,32], index: 2, kind: input, shape index: {}]   ;;  %s5346_s3 = inlined_call_operand.vmem [shape: f32[8,32], index: 3, kind: input, shape index: {}]   ;;  %s5347_s4 = inlined_call_operand.vmem [shape: bf16[128,32], index: 4, kind: input, shape index: {}]   ;;  %s5348_s5 = inlined_call_operand.vmem [shape: bf16[32,96], index: 5, kind: input, shape index: {}]   ;;  %s5349_s6 = inlined_call_operand.vmem [shape: bf16[32,96], index: 6, kind: input, shape index: {}]   ;;  %s5350_s7 = inlined_call_operand.vmem [shape: f32[1,96], index: 7, kind: input, shape index: {}]   ;;  %s5351_s8 = inlined_call_operand.vmem [shape: f32[1,96], index: 8, kind: input, shape index: {}]   ;;  %s5352_s9 = inlined_call_operand.vmem [shape: bf16[32,32], index: 9, kind: input, shape index: {}]   ;;  %s5353_s10 = inlined_call_operand.vmem [shape: f32[1,32], index: 10, kind: input, shape index: {}]   ;;  %s5354_s11 = inlined_call_operand.vmem [shape: bf16[64,32], index: 11, kind: input, shape index: {}]   ;;  %s5355_s12 = inlined_call_operand.vmem [shape: f32[1,32], index: 12, kind: input, shape index: {}]   ;;  %s5356_s13 = inlined_call_operand.vmem [shape: bf16[32,128], index: 13, kind: input, shape index: {}]   ;;  %s5357_s14 = inlined_call_operand.vmem [shape: f32[1,128], index: 14, kind: input, shape index: {}]   ;;  %s5358_s15 = inlined_call_operand.hbm [shape: f32[8,8,128], index: 15, kind: output, shape index: {}]  }
   0x1   :  { %v132_v0 = vld [vmem:[%s5343_s0] sm:$0xff]  ;;  %3878 = vset.pattern.permute.xlu0 %v4096_v2  ;;  %3356 = vmatprep.subr.bf16.mxu0 %v4097_v3  ;;  %v4199_v4 = vld [vmem:[%s5347_s4 + $0x8] sm:$0xff]   ;;  %v4211_v5 = vld [vmem:[%s5347_s4 + $0x10] sm:$0xff]  }
   0x2   :  { %v4192_v1 = vld [vmem:[%s5347_s4] sm:$0xff]   ;;  %134 = vperm.xlu0 %3878, %v132_v0   ;;  %3376 = vmatprep.subr.bf16.mxu1 %v4097_v3  ;;  %v4217_v6 = vld [vmem:[%s5347_s4 + $0x18] sm:$0xff]   ;;  %v4229_v8 = vld [vmem:[%s5348_s5 + $0x8] sm:$0xff]  }
   0x3   :  { %3357 = vmatpush3.bf16.msra.mxu0 %v4192_v1  ;;  %3372 = vmatprep.mubr.msk.bf16.mxu0 %vm4098_vm0, %v4097_v3  ;;  %v4222_v7 = vld [vmem:[%s5348_s5] sm:$0xff]  }
   0x4   :  { %3358 = vmatprep.subr.bf16.mxu0 %v4097_v3  ;;  %3380 = vmatprep.mubr.msk.bf16.mxu1 %vm4098_vm0, %v4097_v3  ;;  %v4236_v9 = vld [vmem:[%s5347_s4 + $0x20] sm:$0xff]  }
   0x5   :  { %3879 = vset.pattern.permute.xlu1 %v4096_v2  ;;  %3377 = vmatpush3.bf16.msra.mxu1 %v4222_v7 }
   0x6   :  { %3378 = vmatprep.subr.bf16.mxu1 %v4097_v3 }
   0x7   :  { %3359 = vmatpush3.bf16.msra.mxu0 %v4199_v4 }
   0x8   :  { %3360 = vmatprep.subr.bf16.mxu0 %v4097_v3 }
   0x9   :  { %3379 = vmatpush3.bf16.msra.mxu1 %v4229_v8 }
   0xa   :  { %3384 = vmatprep.subr.bf16.mxu1 %v4097_v3 }
   0xb   :  { %3361 = vmatpush3.bf16.msra.mxu0 %v4211_v5 }
   0xc   :  { %3362 = vmatprep.subr.bf16.mxu0 %v4097_v3 }
   0xf   :  { %3363 = vmatpush3.bf16.msra.mxu0 %v4217_v6 }
  0x10   :  { %3364 = vmatprep.subr.bf16.mxu0 %v4097_v3 }
  0x11   :  { %20 = vsyncpa [#allocation3], 0  ;;  %v4246_v10 = vld [vmem:[%s5347_s4 + $0x28] sm:$0xff]   ;;  %v4253_v11 = vld [vmem:[%s5347_s4 + $0x30] sm:$0xff]   ;;  %v52_v13 = vlaneseq  ;;  %v4099_v16 = vmov 1.0|1.0  }
  0x12   :  { %v4260_v12 = vld [vmem:[%s5347_s4 + $0x38] sm:$0xff]   ;;  %vm241_vm3 = vcmask 261120   ;;  %v4281_v18 = vld [vmem:[%s5349_s6] sm:$0xff]   ;;  %v4288_v23 = vld [vmem:[%s5349_s6 + $0x8] sm:$0xff]   ;;  %s4101_s18 = smov 32   ;;  %s4102_s25 = smov 96  }
  0x13   :  { %3365 = vmatpush3.bf16.msra.mxu0 %v4236_v9  ;;  %v4265_v14 = vand.u32 127, %v52_v13  ;;  %v131_v24 = vld [vmem:[%s5346_s3] sm:$0xff]  ;;  %s4100_s3 = smov 64   ;;  %v4325_v48 = vld [vmem:[%s5352_s9 + $0x8] sm:$0xff]   ;;  %vm493_vm5 = vcmask 523264  }
  0x14   :  { %3366 = vmatprep.subr.bf16.mxu0 %v4097_v3  ;;  %v285_v25 = vpack.c.bf16 %v131_v24, %v131_v24  ;;  %v4304_v30 = vld [vmem:[%s5351_s8] ss:$0 sm:$0xff] }
  0x15   :  { %v4312_v36 = vld [vmem:[%s5350_s7] ss:$0 sm:$0xff] }
  0x16   :  { %v4319_v47 = vld [vmem:[%s5352_s9] sm:$0xff]  }
  0x17   :  { %3367 = vmatpush3.bf16.msra.mxu0 %v4246_v10  ;;  %v4345_v58 = vld [vmem:[%s5353_s10] ss:$0 sm:$0xff] }
  0x18   :  { %3368 = vmatprep.subr.bf16.mxu0 %v4097_v3 }
  0x1b   :  { %3369 = vmatpush3.bf16.msra.mxu0 %v4253_v11 }
  0x1c   :  { %3370 = vmatprep.subr.bf16.mxu0 %v4097_v3 }
  0x1f   :  { %3371 = vmatpush3.bf16.msra.mxu0 %v4260_v12 }
  0x20   :  { %3412 = vmatprep.subr.bf16.mxu0 %v4097_v3 }
  0x81   :  { %v4267_v15 = vpop.permute.xlu0 %134 }
  0x82   :  { %vm136_vm1 = vcmp.eq.s32.totalorder %v4265_v14, %v4267_v15 }
  0x83   :  { %vm3042_vm2 = vmpackc.low %vm136_vm1, %vm136_vm1 }
  0x84   :  { %3373 = vmatmul.mubr.msk.bf16.vlgmr.msra.gmra.mrb[0].mxu0 %vm3042_vm2, %v4099_v16 }
  0x85   :  { %3416 = vmatprep.mubr.msk.bf16.mxu0 %vm4098_vm0, %v4097_v3 }
 0x157   :  { %v222_v17 = vpop.f32.mrb[0].mxu0 }
 0x158   :  { %v228_v19 = vpack.c.bf16 %v222_v17, %v222_v17  ;;  %v3374_v20 = vpop.f32.mrb[1].mxu0 }
 0x159   :  { %v225_v21 = vpop.f32.mrb[2].mxu0 }
 0x15a   :  { %v3375_v22 = vpop.f32.mrb[3].mxu0  ;;  %3381 = vmatmul.mubr.msk.bf16.vlgmr.msra.gmra.mrb[0].mxu1 %vm241_vm3, %v228_v19  ;;  %v4351_v19 = vld [vmem:[%s5345_s2] sm:$0xff] }
 0x15b   :  { %3385 = vmatpush3.bf16.msra.mxu1 %v4281_v18  ;;  %3388 = vmatprep.mubr.msk.bf16.mxu1 %vm4098_vm0, %v4097_v3  ;;  %v4356_v21 = vld [vmem:[%s5344_s1] sm:$0xff] }
 0x15c   :  { %3386 = vmatprep.subr.bf16.mxu1 %v4097_v3 }
 0x15f   :  { %3387 = vmatpush3.bf16.msra.mxu1 %v4288_v23 }
 0x160   :  { %3392 = vmatprep.subr.bf16.mxu1 %v4097_v3 }
 0x162   :  { %3389 = vmatmul.mubr.msk.bf16.vlgmr.msra.gmra.mrb[4].mxu1 %vm241_vm3, %v285_v25 }
 0x163   :  { %3396 = vmatprep.mubr.msk.bf16.mxu1 %vm4098_vm0, %v4097_v3  ;;  %3393 = vmatpush3.bf16.msra.mxu1 %v4319_v47 }
 0x164   :  { %3394 = vmatprep.subr.bf16.mxu1 %v4097_v3 }
 0x167   :  { %3395 = vmatpush3.bf16.msra.mxu1 %v4325_v48 }
 0x168   :  { %3400 = vmatprep.subr.bf16.mxu1 %v4097_v3 }
 0x22d   :  { %v279_v26 = vpop.f32.mrb[0].mxu1 }
 0x22e   :  { %v3382_v27 = vpop.f32.mrb[1].mxu1  ;;  %v280_v37 = vadd.f32 %v4312_v36, %v279_v26 }
 0x22f   :  { %v282_v28 = vpop.f32.mrb[2].mxu1 }
 0x230   :  { %v3383_v29 = vpop.f32.mrb[3].mxu1  ;;  %v3064_v28 = vld [vmem:[%s5343_s0 + $0x8] sm:$0xff] }
 0x231   :  { %v4370_v29 = vld [vmem:[%s5354_s11] sm:$0xff]  }
 0x235   :  { %v335_v31 = vpop.f32.mrb[4].mxu1 }
 0x236   :  { %v336_v32 = vadd.f32 %v4304_v30, %v335_v31  ;;  %v3390_v33 = vpop.f32.mrb[5].mxu1  ;;  %v4376_v31 = vld [vmem:[%s5354_s11 + $0x8] sm:$0xff]  }
 0x237   :  { %v338_v34 = vpop.f32.mrb[6].mxu1 }
 0x238   :  { %349 = vrot.lane.b32.xlu0 %v336_v32, %s4100_s3  ;;  %v3391_v35 = vpop.f32.mrb[7].mxu1  ;;  %v341_v38 = vadd.f32 %v336_v32, %v280_v37  ;;  %v4383_v32 = vld [vmem:[%s5354_s11 + $0x10] sm:$0xff]  }
 0x23a   :  { %v3050_v39 = vmul.f32 -1.442695, %v341_v38 }
 0x23c   :  { %366 = vrot.lane.b32.xlu0 %v131_v24, %s4101_s18  ;;  %3900 = vpow2.f32 %v3050_v39 }
 0x246   :  { %v3901_v40 = vpop.eup %3900 }
 0x247   :  { %v345_v41 = vadd.f32 1.0, %v3901_v40 }
 0x249   :  { %3902 = vrcp.f32 %v345_v41 }
 0x253   :  { %v3903_v42 = vpop.eup %3902 }
 0x254   :  { %v359_v51 = vsub.f32 1.0, %v3903_v42 }
 0x2aa   :  { %v350_v43 = vpop.permute.xlu0 %349 }
 0x2ab   :  { %v352_v44 = vmul.f32 %v3903_v42, %v350_v43 }
 0x2ad   :  { %354 = vrot.lane.b32.xlu1 %v352_v44, %s4100_s3  ;;  %v4391_v44 = vld [vmem:[%s5354_s11 + $0x18] sm:$0xff]  }
 0x2ae   :  { %v367_v50 = vpop.permute.xlu0 %366 }
 0x2af   :  { %v369_v53 = vmul.f32 %v3903_v42, %v367_v50 }
 0x31f   :  { %v355_v45 = vpop.permute.xlu1 %354 }
 0x320   :  { %v357_v46 = vadd.f32 %v355_v45, %v280_v37 }
 0x322   :  { %3904 = vtanh.f32 %v357_v46 }
 0x32c   :  { %v3905_v49 = vpop.eup %3904 }
 0x32d   :  { %361 = vrot.lane.b32.xlu1 %v3905_v49, %s4102_s25 }
 0x39f   :  { %v362_v52 = vpop.permute.xlu1 %361 }
 0x3a0   :  { %v364_v54 = vmul.f32 %v362_v52, %v359_v51 }
 0x3a2   :  { %v4331_v55 = vadd.f32 %v369_v53, %v364_v54 }
 0x3a4   :  { %v371_v56 = vpack.c.bf16 %v4331_v55, %v4331_v55 }
 0x3a6   :  { %373 = vrot.lane.b32.xlu1 %v371_v56, %s4102_s25 }
 0x418   :  { %v4336_v57 = vpop.permute.xlu1 %373 }
 0x419   :  { %3397 = vmatmul.mubr.msk.bf16.vlgmr.msra.gmra.mrb[8].mxu1 %vm241_vm3, %v4336_v57 }
 0x41a   :  { %3408 = vmatprep.mubr.msk.bf16.mxu1 %vm4098_vm0, %v4097_v3  ;;  %3401 = vmatpush3.bf16.msra.mxu1 %v4370_v29 }
 0x41b   :  { %3402 = vmatprep.subr.bf16.mxu1 %v4097_v3 }
 0x41e   :  { %3403 = vmatpush3.bf16.msra.mxu1 %v4376_v31 }
 0x41f   :  { %3404 = vmatprep.subr.bf16.mxu1 %v4097_v3 }
 0x422   :  { %3405 = vmatpush3.bf16.msra.mxu1 %v4383_v32 }
 0x423   :  { %3406 = vmatprep.subr.bf16.mxu1 %v4097_v3 }
 0x426   :  { %3407 = vmatpush3.bf16.msra.mxu1 %v4391_v44 }
 0x427   :  { %3440 = vmatprep.subr.bf16.mxu1 %v4097_v3 }
 0x4ec   :  { %v424_v59 = vpop.f32.mrb[8].mxu1 }
 0x4ed   :  { %v425_v60 = vadd.f32 %v4345_v58, %v424_v59  ;;  %v3398_v61 = vpop.f32.mrb[9].mxu1 }
 0x4ee   :  { %v427_v62 = vpop.f32.mrb[10].mxu1  ;;  %v4416_v61 = vld [vmem:[%s5356_s13 + $0x8] sm:$0xff]  }
 0x4ef   :  { %v431_v63 = vmul.f32 1.442695, %v425_v60  ;;  %v3399_v0 = vpop.f32.mrb[11].mxu1  ;;  %vm430_vm4 = vcmp.gt.f32.partialorder %v425_v60, 0.0  ;;  %v4423_v62 = vld [vmem:[%s5355_s12] ss:$0 sm:$0xff] }
 0x4f1   :  { %3906 = vpow2.f32 %v431_v63 }
 0x4fb   :  { %v3907_v2 = vpop.eup %3906 }
 0x4fc   :  { %v3054_v13 = vadd.f32 -1.0, %v3907_v2 }
 0x4fe   :  { %v434_v17 = vmul.f32 1.6732632, %v3054_v13 }
 0x500   :  { %v435_v20 = vsel %vm430_vm4, %v425_v60, %v434_v17  ;;  %v4409_v60 = vld [vmem:[%s5356_s13] sm:$0xff]  }
 0x501   :  { %v436_v22 = vmul.f32 1.050701, %v435_v20  ;;  %3413 = vmatpush3.bf16.msra.mxu0 %v4409_v60 }
 0x502   :  { %3414 = vmatprep.subr.bf16.mxu0 %v4097_v3 }
 0x503   :  { %v441_v24 = vmul.f32 %v436_v22, %v4351_v19  ;;  %v437_v25 = vmul.f32 %v436_v22, %v4356_v21 }
 0x505   :  { %v442_v26 = vsel %vm241_vm3, %v441_v24, 0.0  ;;  %v438_v27 = vsel %vm241_vm3, %v437_v25, 0.0  ;;  %3415 = vmatpush3.bf16.msra.mxu0 %v4416_v61 }
 0x506   :  { %443 = vadd.xlane.f32.xlu1 %v442_v26  ;;  %439 = vadd.xlane.f32.xlu0 %v438_v27 }
 0x507   :  { %3420 = vmatprep.subr.bf16.mxu0 %v4097_v3 }
 0x51c   :  { %460 = vrot.lane.b32.xlu0 %v4331_v55, %s4102_s25 }
 0x520   :  { %607 = vperm.xlu0 %3878, %v3064_v28  }
 0x593   :  { %v444_v33 = vpop.xlane.xlu1 %443  ;;  %v440_v34 = vpop.xlane.xlu0 %439 }
 0x594   :  { %v445_v35 = vmax.f32 %v440_v34, %v444_v33 }
 0x596   :  { %v446_v37 = vsub.f32 %v440_v34, %v445_v35  ;;  %v449_v38 = vsub.f32 %v444_v33, %v445_v35  ;;  %v4464_v34 = vsel %vm136_vm1, 1.0, %v4097_v3 }
 0x597   :  { %v461_v53 = vpop.permute.xlu0 %460  ;;  %v600_v35 = vmax.f32 %v4464_v34, 0.0 }
 0x598   :  { %v447_v39 = vmul.f32 1.442695, %v446_v37  ;;  %v450_v40 = vmul.f32 1.442695, %v449_v38  ;;  %v4470_v37 = vld [vmem:[%s5357_s14] ss:$0 sm:$0xff] }
 0x599   :  { %vm601_vm9 = vcmp.gt.f32.partialorder %v600_v35, 0.0 }
 0x59a   :  { %3908 = vpow2.f32 %v447_v39 }
 0x59b   :  { %3910 = vpow2.f32 %v450_v40 }
 0x59f   :  { %v4441_v33 = vpop.permute.xlu0 %607 }
 0x5a0   :  { %vm609_vm7 = vcmp.eq.s32.totalorder %v4265_v14, %v4441_v33 }
 0x5a1   :  { %vm3066_vm8 = vmpackc.low %vm609_vm7, %vm609_vm7 }
 0x5a4   :  { %v3909_v41 = vpop.eup %3908 }
 0x5a5   :  { %v3911_v42 = vpop.eup %3910 }
 0x5a6   :  { %v452_v43 = vadd.f32 %v3911_v42, %v3909_v41 }
 0x5a8   :  { %3912 = vrcp.f32 %v452_v43 }
 0x5b2   :  { %v3913_v45 = vpop.eup %3912 }
 0x5b3   :  { %v454_v46 = vmul.f32 %v3913_v45, %v3909_v41  ;;  %v456_v49 = vmul.f32 %v3913_v45, %v3911_v42 }
 0x5b5   :  { %v455_v50 = vmul.f32 %v454_v46, %v4356_v21  ;;  %v457_v51 = vmul.f32 %v456_v49, %v4351_v19 }
 0x5b7   :  { %v458_v52 = vadd.f32 %v457_v51, %v455_v50 }
 0x5b9   :  { %464 = vrot.lane.b32.xlu1 %v458_v52, %s4101_s18 }
 0x62b   :  { %v465_v54 = vpop.permute.xlu1 %464 }
 0x62c   :  { %v467_v56 = vsel %vm241_vm3, %v461_v53, %v465_v54 }
 0x62d   :  { %v468_v59 = vpack.c.bf16 %v467_v56, %v467_v56 }
 0x62f   :  { %3409 = vmatmul.mubr.msk.bf16.vlgmr.msra.gmra.mrb[12].mxu1 %vm493_vm5, %v468_v59 }
 0x630   :  { %3441 = vmatpush3.bf16.msra.mxu1 %v4222_v7  ;;  %3444 = vmatprep.mubr.msk.bf16.mxu1 %vm4098_vm0, %v4097_v3 }
 0x631   :  { %3442 = vmatprep.subr.bf16.mxu1 %v4097_v3 }
 0x634   :  { %3443 = vmatpush3.bf16.msra.mxu1 %v4229_v8 }
 0x635   :  { %3448 = vmatprep.subr.bf16.mxu1 %v4097_v3 }
 0x702   :  { %v531_v63 = vpop.f32.mrb[12].mxu1 }
 0x703   :  { %v532_v0 = vadd.f32 %v4423_v62, %v531_v63  ;;  %v3410_v2 = vpop.f32.mrb[13].mxu1 }
 0x704   :  { %v534_v13 = vpop.f32.mrb[14].mxu1 }
 0x705   :  { %v538_v17 = vmul.f32 1.442695, %v532_v0  ;;  %v3411_v20 = vpop.f32.mrb[15].mxu1  ;;  %vm537_vm6 = vcmp.gt.f32.partialorder %v532_v0, 0.0 }
 0x707   :  { %3914 = vpow2.f32 %v538_v17 }
 0x711   :  { %v3915_v22 = vpop.eup %3914 }
 0x712   :  { %v3060_v24 = vadd.f32 -1.0, %v3915_v22 }
 0x714   :  { %v541_v25 = vmul.f32 1.6732632, %v3060_v24 }
 0x716   :  { %v542_v26 = vsel %vm537_vm6, %v532_v0, %v541_v25 }
 0x717   :  { %v543_v27 = vmul.f32 1.050701, %v542_v26 }
 0x719   :  { %v544_v28 = vpack.c.bf16 %v543_v27, %v543_v27 }
 0x71b   :  { %3417 = vmatmul.mubr.msk.bf16.vlgmr.msra.gmra.mrb[4].mxu0 %vm241_vm3, %v544_v28 }
 0x71c   :  { %3421 = vmatpush3.bf16.msra.mxu0 %v4192_v1  ;;  %3436 = vmatprep.mubr.msk.bf16.mxu0 %vm4098_vm0, %v4097_v3 }
 0x71d   :  { %3422 = vmatprep.subr.bf16.mxu0 %v4097_v3 }
 0x720   :  { %3423 = vmatpush3.bf16.msra.mxu0 %v4199_v4 }
 0x721   :  { %3424 = vmatprep.subr.bf16.mxu0 %v4097_v3 }
 0x724   :  { %3425 = vmatpush3.bf16.msra.mxu0 %v4211_v5 }
 0x725   :  { %3426 = vmatprep.subr.bf16.mxu0 %v4097_v3 }
 0x728   :  { %3427 = vmatpush3.bf16.msra.mxu0 %v4217_v6 }
 0x729   :  { %3428 = vmatprep.subr.bf16.mxu0 %v4097_v3 }
 0x72c   :  { %3429 = vmatpush3.bf16.msra.mxu0 %v4236_v9 }
 0x72d   :  { %3430 = vmatprep.subr.bf16.mxu0 %v4097_v3 }
 0x730   :  { %3431 = vmatpush3.bf16.msra.mxu0 %v4246_v10 }
 0x731   :  { %3432 = vmatprep.subr.bf16.mxu0 %v4097_v3 }
 0x734   :  { %3433 = vmatpush3.bf16.msra.mxu0 %v4253_v11 }
 0x735   :  { %3434 = vmatprep.subr.bf16.mxu0 %v4097_v3 }
 0x738   :  { %3435 = vmatpush3.bf16.msra.mxu0 %v4260_v12 }
 0x739   :  { %3476 = vmatprep.subr.bf16.mxu0 %v4097_v3 }
 0x73b   :  { %3437 = vmatmul.mubr.msk.bf16.vlgmr.msra.gmra.mrb[8].mxu0 %vm3066_vm8, %v4099_v16 }
 0x73c   :  { %3477 = vmatpush3.bf16.msra.mxu0 %v4409_v60  ;;  %3480 = vmatprep.mubr.msk.bf16.mxu0 %vm4098_vm0, %v4097_v3 }
 0x73d   :  { %3478 = vmatprep.subr.bf16.mxu0 %v4097_v3 }
 0x740   :  { %3479 = vmatpush3.bf16.msra.mxu0 %v4416_v61 }
 0x741   :  { %3484 = vmatprep.subr.bf16.mxu0 %v4097_v3 }
 0x7ee   :  { %v594_v38 = vpop.f32.mrb[4].mxu0 }
 0x7ef   :  { %v595_v39 = vadd.f32 %v4470_v37, %v594_v38  ;;  %v3418_v40 = vpop.f32.mrb[5].mxu0 }
 0x7f0   :  { %v597_v41 = vpop.f32.mrb[6].mxu0 }
 0x7f1   :  { %v602_v42 = vsel %vm601_vm9, -10000000.0, %v595_v39  ;;  %v3419_v43 = vpop.f32.mrb[7].mxu0 }
 0x7f2   :  { %603 = vst [vmem:[#allocation2] sm:$0xff] %v602_v42 }
 0x80e   :  { %v647_v15 = vpop.f32.mrb[8].mxu0 }
 0x80f   :  { %v653_v45 = vpack.c.bf16 %v647_v15, %v647_v15  ;;  %v3438_v46 = vpop.f32.mrb[9].mxu0 }
 0x810   :  { %v650_v49 = vpop.f32.mrb[10].mxu0 }
 0x811   :  { %v3439_v50 = vpop.f32.mrb[11].mxu0  ;;  %3445 = vmatmul.mubr.msk.bf16.vlgmr.msra.gmra.mrb[16].mxu1 %vm241_vm3, %v653_v45 }
 0x812   :  { %3449 = vmatpush3.bf16.msra.mxu1 %v4281_v18  ;;  %3452 = vmatprep.mubr.msk.bf16.mxu1 %vm4098_vm0, %v4097_v3 }
 0x813   :  { %3450 = vmatprep.subr.bf16.mxu1 %v4097_v3 }
 0x816   :  { %3451 = vmatpush3.bf16.msra.mxu1 %v4288_v23 }
 0x817   :  { %3456 = vmatprep.subr.bf16.mxu1 %v4097_v3 }
 0x819   :  { %3453 = vmatmul.mubr.msk.bf16.vlgmr.msra.gmra.mrb[20].mxu1 %vm241_vm3, %v4336_v57 }
 0x81a   :  { %3457 = vmatpush3.bf16.msra.mxu1 %v4319_v47  ;;  %3460 = vmatprep.mubr.msk.bf16.mxu1 %vm4098_vm0, %v4097_v3 }
 0x81b   :  { %3458 = vmatprep.subr.bf16.mxu1 %v4097_v3 }
 0x81e   :  { %3459 = vmatpush3.bf16.msra.mxu1 %v4325_v48 }
 0x81f   :  { %3464 = vmatprep.subr.bf16.mxu1 %v4097_v3 }
 0x8e4   :  { %v691_v51 = vpop.f32.mrb[16].mxu1 }
 0x8e5   :  { %v3446_v52 = vpop.f32.mrb[17].mxu1  ;;  %v692_v2 = vadd.f32 %v4312_v36, %v691_v51 }
 0x8e6   :  { %v694_v53 = vpop.f32.mrb[18].mxu1 }
 0x8e7   :  { %v3447_v54 = vpop.f32.mrb[19].mxu1 }
 0x8ec   :  { %v731_v56 = vpop.f32.mrb[20].mxu1 }
 0x8ed   :  { %v732_v59 = vadd.f32 %v4304_v30, %v731_v56  ;;  %v3454_v63 = vpop.f32.mrb[21].mxu1 }
 0x8ee   :  { %v734_v57 = vpop.f32.mrb[22].mxu1 }
 0x8ef   :  { %745 = vrot.lane.b32.xlu1 %v732_v59, %s4100_s3  ;;  %v3455_v0 = vpop.f32.mrb[23].mxu1  ;;  %v737_v13 = vadd.f32 %v732_v59, %v692_v2 }
 0x8f1   :  { %v3070_v17 = vmul.f32 -1.442695, %v737_v13 }
 0x8f3   :  { %3916 = vpow2.f32 %v3070_v17 }
 0x8fd   :  { %v3917_v20 = vpop.eup %3916 }
 0x8fe   :  { %v741_v22 = vadd.f32 1.0, %v3917_v20 }
 0x900   :  { %3918 = vrcp.f32 %v741_v22 }
 0x90a   :  { %v3919_v24 = vpop.eup %3918 }
 0x90b   :  { %v755_v39 = vsub.f32 1.0, %v3919_v24  ;;  %v761_v41 = vmul.f32 %v3919_v24, %v4331_v55 }
 0x961   :  { %v746_v25 = vpop.permute.xlu1 %745 }
 0x962   :  { %v748_v26 = vmul.f32 %v3919_v24, %v746_v25 }
 0x964   :  { %750 = vrot.lane.b32.xlu0 %v748_v26, %s4100_s3 }
 0x9d6   :  { %v751_v27 = vpop.permute.xlu0 %750 }
 0x9d7   :  { %v753_v28 = vadd.f32 %v751_v27, %v692_v2 }
 0x9d9   :  { %3920 = vtanh.f32 %v753_v28 }
 0x9e3   :  { %v3921_v38 = vpop.eup %3920 }
 0x9e4   :  { %757 = vrot.lane.b32.xlu1 %v3921_v38, %s4102_s25 }
 0xa56   :  { %v758_v40 = vpop.permute.xlu1 %757 }
 0xa57   :  { %v760_v42 = vmul.f32 %v758_v40, %v755_v39 }
 0xa59   :  { %v4496_v43 = vadd.f32 %v761_v41, %v760_v42 }
 0xa5b   :  { %v763_v15 = vpack.c.bf16 %v4496_v43, %v4496_v43 }
 0xa5d   :  { %765 = vrot.lane.b32.xlu0 %v763_v15, %s4102_s25 }
 0xacf   :  { %v4501_v45 = vpop.permute.xlu0 %765 }
 0xad0   :  { %3461 = vmatmul.mubr.msk.bf16.vlgmr.msra.gmra.mrb[24].mxu1 %vm241_vm3, %v4501_v45 }
 0xad1   :  { %3465 = vmatpush3.bf16.msra.mxu1 %v4370_v29  ;;  %3472 = vmatprep.mubr.msk.bf16.mxu1 %vm4098_vm0, %v4097_v3 }
 0xad2   :  { %3466 = vmatprep.subr.bf16.mxu1 %v4097_v3 }
 0xad5   :  { %3467 = vmatpush3.bf16.msra.mxu1 %v4376_v31 }
 0xad6   :  { %3468 = vmatprep.subr.bf16.mxu1 %v4097_v3 }
 0xad9   :  { %3469 = vmatpush3.bf16.msra.mxu1 %v4383_v32 }
 0xada   :  { %3470 = vmatprep.subr.bf16.mxu1 %v4097_v3 }
 0xadd   :  { %3471 = vmatpush3.bf16.msra.mxu1 %v4391_v44 }
 0xade   :  { %3504 = vmatprep.subr.bf16.mxu1 %v4097_v3 }
 0xba3   :  { %v804_v55 = vpop.f32.mrb[24].mxu1 }
 0xba4   :  { %v805_v46 = vadd.f32 %v4345_v58, %v804_v55  ;;  %v3462_v49 = vpop.f32.mrb[25].mxu1 }
 0xba5   :  { %v807_v50 = vpop.f32.mrb[26].mxu1  ;;  %v3076_v49 = vld [vmem:[%s5343_s0 + $0x10] sm:$0xff] }
 0xba6   :  { %v811_v51 = vmul.f32 1.442695, %v805_v46  ;;  %v3463_v52 = vpop.f32.mrb[27].mxu1  ;;  %vm810_vm10 = vcmp.gt.f32.partialorder %v805_v46, 0.0 }
 0xba8   :  { %3922 = vpow2.f32 %v811_v51 }
 0xbb2   :  { %v3923_v53 = vpop.eup %3922 }
 0xbb3   :  { %v3072_v54 = vadd.f32 -1.0, %v3923_v53 }
 0xbb5   :  { %v814_v56 = vmul.f32 1.6732632, %v3072_v54 }
 0xbb7   :  { %v815_v59 = vsel %vm810_vm10, %v805_v46, %v814_v56 }
 0xbb8   :  { %v816_v63 = vmul.f32 1.050701, %v815_v59 }
 0xbba   :  { %v821_v57 = vmul.f32 %v816_v63, %v4351_v19  ;;  %v817_v0 = vmul.f32 %v816_v63, %v4356_v21 }
 0xbbc   :  { %v822_v2 = vsel %vm241_vm3, %v821_v57, 0.0  ;;  %v818_v13 = vsel %vm241_vm3, %v817_v0, 0.0 }
 0xbbd   :  { %823 = vadd.xlane.f32.xlu0 %v822_v2  ;;  %819 = vadd.xlane.f32.xlu1 %v818_v13 }
 0xbd3   :  { %840 = vrot.lane.b32.xlu0 %v4496_v43, %s4102_s25 }
 0xc4a   :  { %v824_v17 = vpop.xlane.xlu0 %823  ;;  %v820_v20 = vpop.xlane.xlu1 %819 }
 0xc4b   :  { %v825_v22 = vmax.f32 %v820_v20, %v824_v17 }
 0xc4d   :  { %v826_v24 = vsub.f32 %v820_v20, %v825_v22  ;;  %v829_v25 = vsub.f32 %v824_v17, %v825_v22 }
 0xc4e   :  { %v841_v50 = vpop.permute.xlu0 %840 }
 0xc4f   :  { %v827_v26 = vmul.f32 1.442695, %v826_v24  ;;  %v830_v27 = vmul.f32 1.442695, %v829_v25 }
 0xc51   :  { %3924 = vpow2.f32 %v827_v26 }
 0xc52   :  { %3926 = vpow2.f32 %v830_v27 }
 0xc5b   :  { %v3925_v28 = vpop.eup %3924 }
 0xc5c   :  { %v3927_v38 = vpop.eup %3926 }
 0xc5d   :  { %v832_v39 = vadd.f32 %v3927_v38, %v3925_v28 }
 0xc5f   :  { %3928 = vrcp.f32 %v832_v39 }
 0xc69   :  { %v3929_v40 = vpop.eup %3928 }
 0xc6a   :  { %v834_v41 = vmul.f32 %v3929_v40, %v3925_v28  ;;  %v836_v42 = vmul.f32 %v3929_v40, %v3927_v38 }
 0xc6c   :  { %v835_v15 = vmul.f32 %v834_v41, %v4356_v21  ;;  %v837_v55 = vmul.f32 %v836_v42, %v4351_v19 }
 0xc6e   :  { %v838_v46 = vadd.f32 %v837_v55, %v835_v15 }
 0xc70   :  { %844 = vrot.lane.b32.xlu1 %v838_v46, %s4101_s18 }
 0xc74   :  { %951 = vperm.xlu1 %3879, %v3076_v49  }
 0xce2   :  { %v845_v51 = vpop.permute.xlu1 %844 }
 0xce3   :  { %v847_v52 = vsel %vm241_vm3, %v841_v50, %v845_v51 }
 0xce4   :  { %v848_v53 = vpack.c.bf16 %v847_v52, %v847_v52 }
 0xce6   :  { %3473 = vmatmul.mubr.msk.bf16.vlgmr.msra.gmra.mrb[28].mxu1 %vm493_vm5, %v848_v53 }
 0xce7   :  { %3505 = vmatpush3.bf16.msra.mxu1 %v4222_v7  ;;  %3508 = vmatprep.mubr.msk.bf16.mxu1 %vm4098_vm0, %v4097_v3 }
 0xce8   :  { %3506 = vmatprep.subr.bf16.mxu1 %v4097_v3 }
 0xceb   :  { %3507 = vmatpush3.bf16.msra.mxu1 %v4229_v8 }
 0xcec   :  { %3512 = vmatprep.subr.bf16.mxu1 %v4097_v3 }
 0xdb9   :  { %v886_v54 = vpop.f32.mrb[28].mxu1 }
 0xdba   :  { %v887_v56 = vadd.f32 %v4423_v62, %v886_v54  ;;  %v3474_v59 = vpop.f32.mrb[29].mxu1 }
 0xdbb   :  { %v889_v63 = vpop.f32.mrb[30].mxu1 }
 0xdbc   :  { %v893_v57 = vmul.f32 1.442695, %v887_v56  ;;  %v3475_v0 = vpop.f32.mrb[31].mxu1  ;;  %vm892_vm11 = vcmp.gt.f32.partialorder %v887_v56, 0.0 }
 0xdbe   :  { %3930 = vpow2.f32 %v893_v57 }
 0xdc8   :  { %v3931_v2 = vpop.eup %3930 }
 0xdc9   :  { %v3074_v13 = vadd.f32 -1.0, %v3931_v2 }
 0xdcb   :  { %v896_v7 = vmul.f32 1.6732632, %v3074_v13 }
 0xdcd   :  { %v897_v17 = vsel %vm892_vm11, %v887_v56, %v896_v7 }
 0xdce   :  { %v898_v20 = vmul.f32 1.050701, %v897_v17 }
 0xdd0   :  { %v899_v22 = vpack.c.bf16 %v898_v20, %v898_v20 }
 0xdd2   :  { %3481 = vmatmul.mubr.msk.bf16.vlgmr.msra.gmra.mrb[12].mxu0 %vm241_vm3, %v899_v22 }
 0xdd3   :  { %3485 = vmatpush3.bf16.msra.mxu0 %v4192_v1  ;;  %3500 = vmatprep.mubr.msk.bf16.mxu0 %vm4098_vm0, %v4097_v3  ;;  %v4552_v1 = vpop.permute.xlu1 %951 }
 0xdd4   :  { %3486 = vmatprep.subr.bf16.mxu0 %v4097_v3  ;;  %vm953_vm12 = vcmp.eq.s32.totalorder %v4265_v14, %v4552_v1  ;;  %v4740_v1 = vld [vmem:[%s5349_s6] sm:$0xff]  }
 0xdd5   :  { %vm3078_vm13 = vmpackc.low %vm953_vm12, %vm953_vm12 }
 0xdd7   :  { %3487 = vmatpush3.bf16.msra.mxu0 %v4199_v4  ;;  %v3065_v4 = vsel %vm609_vm7, 1.0, %v4097_v3 }
 0xdd8   :  { %3488 = vmatprep.subr.bf16.mxu0 %v4097_v3 }
 0xddb   :  { %3489 = vmatpush3.bf16.msra.mxu0 %v4211_v5  ;;  %v4577_v5 = vmax.f32 %v600_v35, %v3065_v4 }
 0xddc   :  { %3490 = vmatprep.subr.bf16.mxu0 %v4097_v3 }
 0xddd   :  { %vm944_vm14 = vcmp.gt.f32.partialorder %v4577_v5, 0.0 }
 0xddf   :  { %3491 = vmatpush3.bf16.msra.mxu0 %v4217_v6 }
 0xde0   :  { %3492 = vmatprep.subr.bf16.mxu0 %v4097_v3 }
 0xde3   :  { %3493 = vmatpush3.bf16.msra.mxu0 %v4236_v9 }
 0xde4   :  { %3494 = vmatprep.subr.bf16.mxu0 %v4097_v3 }
 0xde7   :  { %3495 = vmatpush3.bf16.msra.mxu0 %v4246_v10 }
 0xde8   :  { %3496 = vmatprep.subr.bf16.mxu0 %v4097_v3 }
 0xdeb   :  { %3497 = vmatpush3.bf16.msra.mxu0 %v4253_v11 }
 0xdec   :  { %3498 = vmatprep.subr.bf16.mxu0 %v4097_v3 }
 0xdef   :  { %3499 = vmatpush3.bf16.msra.mxu0 %v4260_v12 }
 0xdf0   :  { %3540 = vmatprep.subr.bf16.mxu0 %v4097_v3 }
 0xdf2   :  { %3501 = vmatmul.mubr.msk.bf16.vlgmr.msra.gmra.mrb[16].mxu0 %vm3078_vm13, %v4099_v16 }
 0xdf3   :  { %3541 = vmatpush3.bf16.msra.mxu0 %v4409_v60  ;;  %3544 = vmatprep.mubr.msk.bf16.mxu0 %vm4098_vm0, %v4097_v3 }
 0xdf4   :  { %3542 = vmatprep.subr.bf16.mxu0 %v4097_v3 }
 0xdf7   :  { %3543 = vmatpush3.bf16.msra.mxu0 %v4416_v61 }
 0xdf8   :  { %3548 = vmatprep.subr.bf16.mxu0 %v4097_v3 }
 0xea5   :  { %v937_v6 = vpop.f32.mrb[12].mxu0 }
 0xea6   :  { %v938_v8 = vadd.f32 %v4470_v37, %v937_v6  ;;  %v3482_v9 = vpop.f32.mrb[13].mxu0 }
 0xea7   :  { %v940_v10 = vpop.f32.mrb[14].mxu0 }
 0xea8   :  { %v945_v11 = vsel %vm944_vm14, -10000000.0, %v938_v8  ;;  %v3483_v12 = vpop.f32.mrb[15].mxu0 }
 0xea9   :  { %947 = vst [vmem:[#allocation2 + $0x8] sm:$0xff] %v945_v11 }
 0xec5   :  { %v991_v24 = vpop.f32.mrb[16].mxu0 }
 0xec6   :  { %v997_v25 = vpack.c.bf16 %v991_v24, %v991_v24  ;;  %v3502_v26 = vpop.f32.mrb[17].mxu0 }
 0xec7   :  { %v994_v27 = vpop.f32.mrb[18].mxu0 }
 0xec8   :  { %v3503_v33 = vpop.f32.mrb[19].mxu0  ;;  %3509 = vmatmul.mubr.msk.bf16.vlgmr.msra.gmra.mrb[32].mxu1 %vm241_vm3, %v997_v25 }
 0xec9   :  { %3513 = vmatpush3.bf16.msra.mxu1 %v4281_v18  ;;  %3516 = vmatprep.mubr.msk.bf16.mxu1 %vm4098_vm0, %v4097_v3 }
 0xeca   :  { %3514 = vmatprep.subr.bf16.mxu1 %v4097_v3 }
 0xecd   :  { %3515 = vmatpush3.bf16.msra.mxu1 %v4288_v23 }
 0xece   :  { %3520 = vmatprep.subr.bf16.mxu1 %v4097_v3 }
 0xed0   :  { %3517 = vmatmul.mubr.msk.bf16.vlgmr.msra.gmra.mrb[36].mxu1 %vm241_vm3, %v4501_v45 }
 0xed1   :  { %3521 = vmatpush3.bf16.msra.mxu1 %v4319_v47  ;;  %3524 = vmatprep.mubr.msk.bf16.mxu1 %vm4098_vm0, %v4097_v3 }
 0xed2   :  { %3522 = vmatprep.subr.bf16.mxu1 %v4097_v3 }
 0xed5   :  { %3523 = vmatpush3.bf16.msra.mxu1 %v4325_v48 }
 0xed6   :  { %3528 = vmatprep.subr.bf16.mxu1 %v4097_v3 }
 0xf9b   :  { %v1035_v18 = vpop.f32.mrb[32].mxu1 }
 0xf9c   :  { %v3510_v34 = vpop.f32.mrb[33].mxu1  ;;  %v1036_v41 = vadd.f32 %v4312_v36, %v1035_v18 }
 0xf9d   :  { %v1038_v35 = vpop.f32.mrb[34].mxu1 }
 0xf9e   :  { %v3511_v23 = vpop.f32.mrb[35].mxu1 }
 0xfa3   :  { %v1075_v28 = vpop.f32.mrb[36].mxu1 }
 0xfa4   :  { %v1076_v38 = vadd.f32 %v4304_v30, %v1075_v28  ;;  %v3518_v39 = vpop.f32.mrb[37].mxu1 }
 0xfa5   :  { %v1078_v45 = vpop.f32.mrb[38].mxu1 }
 0xfa6   :  { %1089 = vrot.lane.b32.xlu0 %v1076_v38, %s4100_s3  ;;  %v3519_v40 = vpop.f32.mrb[39].mxu1  ;;  %v1081_v42 = vadd.f32 %v1076_v38, %v1036_v41 }
 0xfa8   :  { %v3082_v15 = vmul.f32 -1.442695, %v1081_v42 }
 0xfaa   :  { %3932 = vpow2.f32 %v3082_v15 }
 0xfb4   :  { %v3933_v55 = vpop.eup %3932 }
 0xfb5   :  { %v1085_v46 = vadd.f32 1.0, %v3933_v55 }
 0xfb7   :  { %3934 = vrcp.f32 %v1085_v46 }
 0xfc1   :  { %v3935_v49 = vpop.eup %3934 }
 0xfc2   :  { %v1099_v54 = vsub.f32 1.0, %v3935_v49  ;;  %v1105_v36 = vmul.f32 %v3935_v49, %v4496_v43 }
0x1018   :  { %v1090_v50 = vpop.permute.xlu0 %1089 }
0x1019   :  { %v1092_v51 = vmul.f32 %v3935_v49, %v1090_v50 }
0x101b   :  { %1094 = vrot.lane.b32.xlu1 %v1092_v51, %s4100_s3  ;;  %v4639_v51 = vld [vmem:[%s5348_s5] sm:$0xff]  }
0x108d   :  { %v1095_v52 = vpop.permute.xlu1 %1094 }
0x108e   :  { %v1097_v30 = vadd.f32 %v1095_v52, %v1036_v41 }
0x1090   :  { %3936 = vtanh.f32 %v1097_v30 }
0x109a   :  { %v3937_v53 = vpop.eup %3936 }
0x109b   :  { %1101 = vrot.lane.b32.xlu0 %v3937_v53, %s4102_s25 }
0x110d   :  { %v1102_v56 = vpop.permute.xlu0 %1101 }
0x110e   :  { %v1104_v59 = vmul.f32 %v1102_v56, %v1099_v54 }
0x1110   :  { %v4602_v63 = vadd.f32 %v1105_v36, %v1104_v59 }
0x1112   :  { %v1107_v57 = vpack.c.bf16 %v4602_v63, %v4602_v63 }
0x1114   :  { %1109 = vrot.lane.b32.xlu1 %v1107_v57, %s4102_s25 }
0x1186   :  { %v4607_v0 = vpop.permute.xlu1 %1109 }
0x1187   :  { %3525 = vmatmul.mubr.msk.bf16.vlgmr.msra.gmra.mrb[40].mxu1 %vm241_vm3, %v4607_v0 }
0x1188   :  { %3529 = vmatpush3.bf16.msra.mxu1 %v4370_v29  ;;  %3536 = vmatprep.mubr.msk.bf16.mxu1 %vm4098_vm0, %v4097_v3 }
0x1189   :  { %3530 = vmatprep.subr.bf16.mxu1 %v4097_v3 }
0x118c   :  { %3531 = vmatpush3.bf16.msra.mxu1 %v4376_v31 }
0x118d   :  { %3532 = vmatprep.subr.bf16.mxu1 %v4097_v3 }
0x1190   :  { %3533 = vmatpush3.bf16.msra.mxu1 %v4383_v32 }
0x1191   :  { %3534 = vmatprep.subr.bf16.mxu1 %v4097_v3 }
0x1194   :  { %3535 = vmatpush3.bf16.msra.mxu1 %v4391_v44 }
0x1195   :  { %3568 = vmatprep.subr.bf16.mxu1 %v4097_v3 }
0x125a   :  { %v1148_v43 = vpop.f32.mrb[40].mxu1 }
0x125b   :  { %v1149_v2 = vadd.f32 %v4345_v58, %v1148_v43  ;;  %v3526_v13 = vpop.f32.mrb[41].mxu1  ;;  %v3088_v58 = vld [vmem:[%s5343_s0 + $0x18] sm:$0xff] }
0x125c   :  { %v1151_v7 = vpop.f32.mrb[42].mxu1 }
0x125d   :  { %v1155_v17 = vmul.f32 1.442695, %v1149_v2  ;;  %v3527_v20 = vpop.f32.mrb[43].mxu1  ;;  %vm1154_vm15 = vcmp.gt.f32.partialorder %v1149_v2, 0.0  ;;  %v4657_v7 = vld [vmem:[%s5347_s4] sm:$0xff]  }
0x125e   :  { %v4673_v20 = vld [vmem:[%s5347_s4 + $0x10] sm:$0xff]  }
0x125f   :  { %3938 = vpow2.f32 %v1155_v17  ;;  %v4666_v17 = vld [vmem:[%s5347_s4 + $0x8] sm:$0xff]  }
0x1269   :  { %v3939_v22 = vpop.eup %3938 }
0x126a   :  { %v3084_v4 = vadd.f32 -1.0, %v3939_v22  ;;  %v4680_v22 = vld [vmem:[%s5347_s4 + $0x18] sm:$0xff]  }
0x126c   :  { %v1158_v6 = vmul.f32 1.6732632, %v3084_v4  ;;  %v4687_v4 = vld [vmem:[%s5347_s4 + $0x20] sm:$0xff]  }
0x126e   :  { %v1159_v8 = vsel %vm1154_vm15, %v1149_v2, %v1158_v6  ;;  %v4694_v6 = vld [vmem:[%s5347_s4 + $0x28] sm:$0xff]  }
0x126f   :  { %v1160_v9 = vmul.f32 1.050701, %v1159_v8 }
0x1271   :  { %v1165_v10 = vmul.f32 %v1160_v9, %v4351_v19  ;;  %v1161_v11 = vmul.f32 %v1160_v9, %v4356_v21  ;;  %v4703_v9 = vld [vmem:[%s5347_s4 + $0x30] sm:$0xff]  }
0x1273   :  { %v1166_v12 = vsel %vm241_vm3, %v1165_v10, 0.0  ;;  %v1162_v24 = vsel %vm241_vm3, %v1161_v11, 0.0  ;;  %v4712_v10 = vld [vmem:[%s5347_s4 + $0x38] sm:$0xff]   ;;  %v3077_v11 = vsel %vm953_vm12, 1.0, %v4097_v3 }
0x1274   :  { %1167 = vadd.xlane.f32.xlu1 %v1166_v12  ;;  %1163 = vadd.xlane.f32.xlu0 %v1162_v24  ;;  %v4732_v12 = vmax.f32 %v4577_v5, %v3077_v11  ;;  %v4749_v5 = vld [vmem:[%s5349_s6 + $0x8] sm:$0xff]  }
0x1276   :  { %vm1288_vm6 = vcmp.gt.f32.partialorder %v4732_v12, 0.0 }
0x128a   :  { %1184 = vrot.lane.b32.xlu0 %v4602_v63, %s4102_s25 }
0x128e   :  { %1295 = vperm.xlu0 %3878, %v3088_v58  }
0x1301   :  { %v1168_v25 = vpop.xlane.xlu1 %1167  ;;  %v1164_v26 = vpop.xlane.xlu0 %1163 }
0x1302   :  { %v1169_v27 = vmax.f32 %v1164_v26, %v1168_v25 }
0x1304   :  { %v1170_v33 = vsub.f32 %v1164_v26, %v1169_v27  ;;  %v1173_v18 = vsub.f32 %v1168_v25, %v1169_v27 }
0x1305   :  { %v1185_v55 = vpop.permute.xlu0 %1184 }
0x1306   :  { %v1171_v34 = vmul.f32 1.442695, %v1170_v33  ;;  %v1174_v35 = vmul.f32 1.442695, %v1173_v18 }
0x1308   :  { %3940 = vpow2.f32 %v1171_v34 }
0x1309   :  { %3942 = vpow2.f32 %v1174_v35 }
0x130d   :  { %v4698_v8 = vpop.permute.xlu0 %1295 }
0x130e   :  { %vm1297_vm2 = vcmp.eq.s32.totalorder %v4265_v14, %v4698_v8  ;;  %v4907_v8 = vld [vmem:[%s5352_s9 + $0x8] sm:$0xff]  }
0x130f   :  { %vm3090_vm4 = vmpackc.low %vm1297_vm2, %vm1297_vm2 }
0x1312   :  { %v3941_v23 = vpop.eup %3940 }
0x1313   :  { %v3943_v28 = vpop.eup %3942 }
0x1314   :  { %v1176_v38 = vadd.f32 %v3943_v28, %v3941_v23 }
0x1316   :  { %3944 = vrcp.f32 %v1176_v38 }
0x1320   :  { %v3945_v39 = vpop.eup %3944 }
0x1321   :  { %v1178_v45 = vmul.f32 %v3945_v39, %v3941_v23  ;;  %v1180_v40 = vmul.f32 %v3945_v39, %v3943_v28 }
0x1323   :  { %v1179_v41 = vmul.f32 %v1178_v45, %v4356_v21  ;;  %v1181_v42 = vmul.f32 %v1180_v40, %v4351_v19  ;;  %v4648_v19 = vld [vmem:[%s5348_s5 + $0x8] sm:$0xff]  }
0x1325   :  { %v1182_v15 = vadd.f32 %v1181_v42, %v1179_v41 }
0x1327   :  { %1188 = vrot.lane.b32.xlu1 %v1182_v15, %s4101_s18 }
0x1399   :  { %v1189_v46 = vpop.permute.xlu1 %1188 }
0x139a   :  { %v1191_v49 = vsel %vm241_vm3, %v1185_v55, %v1189_v46 }
0x139b   :  { %v1192_v50 = vpack.c.bf16 %v1191_v49, %v1191_v49 }
0x139d   :  { %3537 = vmatmul.mubr.msk.bf16.vlgmr.msra.gmra.mrb[44].mxu1 %vm493_vm5, %v1192_v50 }
0x139e   :  { %3569 = vmatpush3.bf16.msra.mxu1 %v4639_v51  ;;  %3572 = vmatprep.mubr.msk.bf16.mxu1 %vm4098_vm0, %v4097_v3 }
0x139f   :  { %3570 = vmatprep.subr.bf16.mxu1 %v4097_v3 }
0x13a2   :  { %3571 = vmatpush3.bf16.msra.mxu1 %v4648_v19 }
0x13a3   :  { %3576 = vmatprep.subr.bf16.mxu1 %v4097_v3 }
0x1470   :  { %v1230_v21 = vpop.f32.mrb[44].mxu1 }
0x1471   :  { %v1231_v52 = vadd.f32 %v4423_v62, %v1230_v21  ;;  %v3538_v30 = vpop.f32.mrb[45].mxu1 }
0x1472   :  { %v1233_v53 = vpop.f32.mrb[46].mxu1 }
0x1473   :  { %v1237_v54 = vmul.f32 1.442695, %v1231_v52  ;;  %v3539_v56 = vpop.f32.mrb[47].mxu1  ;;  %vm1236_vm1 = vcmp.gt.f32.partialorder %v1231_v52, 0.0 }
0x1475   :  { %3946 = vpow2.f32 %v1237_v54 }
0x147f   :  { %v3947_v36 = vpop.eup %3946 }
0x1480   :  { %v3086_v59 = vadd.f32 -1.0, %v3947_v36 }
0x1482   :  { %v1240_v57 = vmul.f32 1.6732632, %v3086_v59 }
0x1484   :  { %v1241_v43 = vsel %vm1236_vm1, %v1231_v52, %v1240_v57 }
0x1485   :  { %v1242_v2 = vmul.f32 1.050701, %v1241_v43 }
0x1487   :  { %v1243_v13 = vpack.c.bf16 %v1242_v2, %v1242_v2 }
0x1489   :  { %3545 = vmatmul.mubr.msk.bf16.vlgmr.msra.gmra.mrb[20].mxu0 %vm241_vm3, %v1243_v13 }
0x148a   :  { %3549 = vmatpush3.bf16.msra.mxu0 %v4657_v7  ;;  %3564 = vmatprep.mubr.msk.bf16.mxu0 %vm4098_vm0, %v4097_v3 }
0x148b   :  { %3550 = vmatprep.subr.bf16.mxu0 %v4097_v3 }
0x148e   :  { %3551 = vmatpush3.bf16.msra.mxu0 %v4666_v17 }
0x148f   :  { %3552 = vmatprep.subr.bf16.mxu0 %v4097_v3 }
0x1492   :  { %3553 = vmatpush3.bf16.msra.mxu0 %v4673_v20 }
0x1493   :  { %3554 = vmatprep.subr.bf16.mxu0 %v4097_v3 }
0x1496   :  { %3555 = vmatpush3.bf16.msra.mxu0 %v4680_v22 }
0x1497   :  { %3556 = vmatprep.subr.bf16.mxu0 %v4097_v3 }
0x149a   :  { %3557 = vmatpush3.bf16.msra.mxu0 %v4687_v4 }
0x149b   :  { %3558 = vmatprep.subr.bf16.mxu0 %v4097_v3 }
0x149e   :  { %3559 = vmatpush3.bf16.msra.mxu0 %v4694_v6 }
0x149f   :  { %3560 = vmatprep.subr.bf16.mxu0 %v4097_v3 }
0x14a2   :  { %3561 = vmatpush3.bf16.msra.mxu0 %v4703_v9 }
0x14a3   :  { %3562 = vmatprep.subr.bf16.mxu0 %v4097_v3 }
0x14a6   :  { %3563 = vmatpush3.bf16.msra.mxu0 %v4712_v10 }
0x14a7   :  { %3604 = vmatprep.subr.bf16.mxu0 %v4097_v3 }
0x14a9   :  { %3565 = vmatmul.mubr.msk.bf16.vlgmr.msra.gmra.mrb[24].mxu0 %vm3090_vm4, %v4099_v16 }
0x14aa   :  { %3605 = vmatpush3.bf16.msra.mxu0 %v4409_v60  ;;  %3608 = vmatprep.mubr.msk.bf16.mxu0 %vm4098_vm0, %v4097_v3 }
0x14ab   :  { %3606 = vmatprep.subr.bf16.mxu0 %v4097_v3 }
0x14ae   :  { %3607 = vmatpush3.bf16.msra.mxu0 %v4416_v61 }
0x14af   :  { %3612 = vmatprep.subr.bf16.mxu0 %v4097_v3 }
0x155c   :  { %v1281_v24 = vpop.f32.mrb[20].mxu0 }
0x155d   :  { %v1282_v60 = vadd.f32 %v4470_v37, %v1281_v24  ;;  %v3546_v58 = vpop.f32.mrb[21].mxu0 }
0x155e   :  { %v1284_v25 = vpop.f32.mrb[22].mxu0 }
0x155f   :  { %v1289_v26 = vsel %vm1288_vm6, -10000000.0, %v1282_v60  ;;  %v3547_v27 = vpop.f32.mrb[23].mxu0 }
0x1560   :  { %1291 = vst [vmem:[#allocation2 + $0x10] sm:$0xff] %v1289_v26 }
0x157c   :  { %v1335_v61 = vpop.f32.mrb[24].mxu0 }
0x157d   :  { %v1341_v33 = vpack.c.bf16 %v1335_v61, %v1335_v61  ;;  %v3566_v18 = vpop.f32.mrb[25].mxu0 }
0x157e   :  { %v1338_v34 = vpop.f32.mrb[26].mxu0 }
0x157f   :  { %v3567_v35 = vpop.f32.mrb[27].mxu0  ;;  %3573 = vmatmul.mubr.msk.bf16.vlgmr.msra.gmra.mrb[48].mxu1 %vm241_vm3, %v1341_v33  ;;  %v4805_v33 = vld [vmem:[%s5345_s2] sm:$0xff] }
0x1580   :  { %3577 = vmatpush3.bf16.msra.mxu1 %v4740_v1  ;;  %3580 = vmatprep.mubr.msk.bf16.mxu1 %vm4098_vm0, %v4097_v3  ;;  %v4811_v34 = vld [vmem:[%s5344_s1] sm:$0xff] }
0x1581   :  { %3578 = vmatprep.subr.bf16.mxu1 %v4097_v3 }
0x1584   :  { %3579 = vmatpush3.bf16.msra.mxu1 %v4749_v5 }
0x1585   :  { %3584 = vmatprep.subr.bf16.mxu1 %v4097_v3 }
0x1587   :  { %3581 = vmatmul.mubr.msk.bf16.vlgmr.msra.gmra.mrb[52].mxu1 %vm241_vm3, %v4607_v0  ;;  %v4764_v0 = vld [vmem:[%s5351_s8] ss:$0 sm:$0xff] }
0x1588   :  { %3585 = vmatpush3.bf16.msra.mxu1 %v4319_v47  ;;  %3588 = vmatprep.mubr.msk.bf16.mxu1 %vm4098_vm0, %v4097_v3 }
0x1589   :  { %3586 = vmatprep.subr.bf16.mxu1 %v4097_v3 }
0x158c   :  { %3587 = vmatpush3.bf16.msra.mxu1 %v4325_v48  ;;  %v4771_v48 = vld [vmem:[%s5350_s7] ss:$0 sm:$0xff] }
0x158d   :  { %3592 = vmatprep.subr.bf16.mxu1 %v4097_v3 }
0x1652   :  { %v1379_v23 = vpop.f32.mrb[48].mxu1 }
0x1653   :  { %v3574_v28 = vpop.f32.mrb[49].mxu1  ;;  %v1380_v15 = vadd.f32 %v4771_v48, %v1379_v23 }
0x1654   :  { %v1382_v38 = vpop.f32.mrb[50].mxu1 }
0x1655   :  { %v3575_v39 = vpop.f32.mrb[51].mxu1 }
0x165a   :  { %v1419_v45 = vpop.f32.mrb[52].mxu1 }
0x165b   :  { %v1420_v47 = vadd.f32 %v4764_v0, %v1419_v45  ;;  %v3582_v40 = vpop.f32.mrb[53].mxu1 }
0x165c   :  { %v1422_v41 = vpop.f32.mrb[54].mxu1 }
0x165d   :  { %1433 = vrot.lane.b32.xlu1 %v1420_v47, %s4100_s3  ;;  %v3583_v42 = vpop.f32.mrb[55].mxu1  ;;  %v1425_v55 = vadd.f32 %v1420_v47, %v1380_v15 }
0x165f   :  { %v3094_v46 = vmul.f32 -1.442695, %v1425_v55 }
0x1661   :  { %3948 = vpow2.f32 %v3094_v46 }
0x166b   :  { %v3949_v49 = vpop.eup %3948 }
0x166c   :  { %v1429_v50 = vadd.f32 1.0, %v3949_v49 }
0x166e   :  { %3950 = vrcp.f32 %v1429_v50 }
0x1678   :  { %v3951_v21 = vpop.eup %3950 }
0x1679   :  { %v1443_v36 = vsub.f32 1.0, %v3951_v21  ;;  %v1449_v57 = vmul.f32 %v3951_v21, %v4602_v63 }
0x16cf   :  { %v1434_v52 = vpop.permute.xlu1 %1433 }
0x16d0   :  { %v1436_v30 = vmul.f32 %v3951_v21, %v1434_v52 }
0x16d2   :  { %1438 = vrot.lane.b32.xlu0 %v1436_v30, %s4100_s3 }
0x1744   :  { %v1439_v53 = vpop.permute.xlu0 %1438 }
0x1745   :  { %v1441_v54 = vadd.f32 %v1439_v53, %v1380_v15 }
0x1747   :  { %3952 = vtanh.f32 %v1441_v54  ;;  %v3100_v54 = vld [vmem:[%s5343_s0 + $0x20] sm:$0xff] }
0x1751   :  { %v3953_v56 = vpop.eup %3952 }
0x1752   :  { %1445 = vrot.lane.b32.xlu1 %v3953_v56, %s4102_s25 }
0x17c4   :  { %v1446_v59 = vpop.permute.xlu1 %1445 }
0x17c5   :  { %v1448_v43 = vmul.f32 %v1446_v59, %v1443_v36 }
0x17c7   :  { %v4777_v2 = vadd.f32 %v1449_v57, %v1448_v43 }
0x17c9   :  { %v1451_v13 = vpack.c.bf16 %v4777_v2, %v4777_v2 }
0x17cb   :  { %1453 = vrot.lane.b32.xlu0 %v1451_v13, %s4102_s25 }
0x183d   :  { %v4782_v11 = vpop.permute.xlu0 %1453 }
0x183e   :  { %3589 = vmatmul.mubr.msk.bf16.vlgmr.msra.gmra.mrb[56].mxu1 %vm241_vm3, %v4782_v11 }
0x183f   :  { %3593 = vmatpush3.bf16.msra.mxu1 %v4370_v29  ;;  %3600 = vmatprep.mubr.msk.bf16.mxu1 %vm4098_vm0, %v4097_v3  ;;  %v4799_v29 = vld [vmem:[%s5353_s10] ss:$0 sm:$0xff] }
0x1840   :  { %3594 = vmatprep.subr.bf16.mxu1 %v4097_v3 }
0x1843   :  { %3595 = vmatpush3.bf16.msra.mxu1 %v4376_v31 }
0x1844   :  { %3596 = vmatprep.subr.bf16.mxu1 %v4097_v3 }
0x1847   :  { %3597 = vmatpush3.bf16.msra.mxu1 %v4383_v32 }
0x1848   :  { %3598 = vmatprep.subr.bf16.mxu1 %v4097_v3 }
0x184b   :  { %3599 = vmatpush3.bf16.msra.mxu1 %v4391_v44 }
0x184c   :  { %3632 = vmatprep.subr.bf16.mxu1 %v4097_v3 }
0x1911   :  { %v1492_v63 = vpop.f32.mrb[56].mxu1 }
0x1912   :  { %v1493_v24 = vadd.f32 %v4799_v29, %v1492_v63  ;;  %v3590_v60 = vpop.f32.mrb[57].mxu1 }
0x1913   :  { %v1495_v31 = vpop.f32.mrb[58].mxu1 }
0x1914   :  { %v1499_v58 = vmul.f32 1.442695, %v1493_v24  ;;  %v3591_v25 = vpop.f32.mrb[59].mxu1  ;;  %vm1498_vm7 = vcmp.gt.f32.partialorder %v1493_v24, 0.0 }
0x1916   :  { %3954 = vpow2.f32 %v1499_v58 }
0x1920   :  { %v3955_v32 = vpop.eup %3954 }
0x1921   :  { %v3096_v26 = vadd.f32 -1.0, %v3955_v32 }
0x1923   :  { %v1502_v27 = vmul.f32 1.6732632, %v3096_v26 }
0x1925   :  { %v1503_v44 = vsel %vm1498_vm7, %v1493_v24, %v1502_v27 }
0x1926   :  { %v1504_v61 = vmul.f32 1.050701, %v1503_v44 }
0x1928   :  { %v1509_v18 = vmul.f32 %v4805_v33, %v1504_v61  ;;  %v1505_v35 = vmul.f32 %v4811_v34, %v1504_v61  ;;  %v4864_v61 = vld [vmem:[%s5356_s13] sm:$0xff]  }
0x192a   :  { %v1510_v23 = vsel %vm241_vm3, %v1509_v18, 0.0  ;;  %v1506_v28 = vsel %vm241_vm3, %v1505_v35, 0.0  ;;  %v4873_v18 = vld [vmem:[%s5356_s13 + $0x8] sm:$0xff]   ;;  %v3089_v35 = vsel %vm1297_vm2, 1.0, %v4097_v3 }
0x192b   :  { %1511 = vadd.xlane.f32.xlu0 %v1510_v23  ;;  %1507 = vadd.xlane.f32.xlu1 %v1506_v28  ;;  %v4882_v23 = vmax.f32 %v4732_v12, %v3089_v35 }
0x192d   :  { %vm1632_vm11 = vcmp.gt.f32.partialorder %v4882_v23, 0.0 }
0x1941   :  { %1528 = vrot.lane.b32.xlu0 %v4777_v2, %s4102_s25 }
0x19b8   :  { %v1512_v38 = vpop.xlane.xlu0 %1511  ;;  %v1508_v39 = vpop.xlane.xlu1 %1507 }
0x19b9   :  { %v1513_v45 = vmax.f32 %v1508_v39, %v1512_v38 }
0x19bb   :  { %v1514_v47 = vsub.f32 %v1508_v39, %v1513_v45  ;;  %v1517_v40 = vsub.f32 %v1512_v38, %v1513_v45 }
0x19bc   :  { %v1529_v56 = vpop.permute.xlu0 %1528 }
0x19bd   :  { %v1515_v41 = vmul.f32 1.442695, %v1514_v47  ;;  %v1518_v42 = vmul.f32 1.442695, %v1517_v40 }
0x19bf   :  { %3956 = vpow2.f32 %v1515_v41 }
0x19c0   :  { %3958 = vpow2.f32 %v1518_v42 }
0x19c9   :  { %v3957_v15 = vpop.eup %3956 }
0x19ca   :  { %v3959_v55 = vpop.eup %3958 }
0x19cb   :  { %v1520_v46 = vadd.f32 %v3959_v55, %v3957_v15 }
0x19cd   :  { %3960 = vrcp.f32 %v1520_v46 }
0x19d7   :  { %v3961_v49 = vpop.eup %3960 }
0x19d8   :  { %v1522_v50 = vmul.f32 %v3961_v49, %v3957_v15  ;;  %v1524_v21 = vmul.f32 %v3961_v49, %v3959_v55 }
0x19da   :  { %v1523_v52 = vmul.f32 %v4811_v34, %v1522_v50  ;;  %v1525_v30 = vmul.f32 %v4805_v33, %v1524_v21 }
0x19dc   :  { %v1526_v53 = vadd.f32 %v1525_v30, %v1523_v52 }
0x19de   :  { %1532 = vrot.lane.b32.xlu1 %v1526_v53, %s4101_s18 }
0x19e2   :  { %1639 = vperm.xlu1 %3879, %v3100_v54  }
0x1a50   :  { %v1533_v36 = vpop.permute.xlu1 %1532 }
0x1a51   :  { %v1535_v59 = vsel %vm241_vm3, %v1529_v56, %v1533_v36 }
0x1a52   :  { %v1536_v57 = vpack.c.bf16 %v1535_v59, %v1535_v59 }
0x1a54   :  { %3601 = vmatmul.mubr.msk.bf16.vlgmr.msra.gmra.mrb[60].mxu1 %vm493_vm5, %v1536_v57 }
0x1a55   :  { %3633 = vmatpush3.bf16.msra.mxu1 %v4639_v51  ;;  %3636 = vmatprep.mubr.msk.bf16.mxu1 %vm4098_vm0, %v4097_v3 }
0x1a56   :  { %3634 = vmatprep.subr.bf16.mxu1 %v4097_v3 }
0x1a59   :  { %3635 = vmatpush3.bf16.msra.mxu1 %v4648_v19 }
0x1a5a   :  { %3640 = vmatprep.subr.bf16.mxu1 %v4097_v3 }
0x1b27   :  { %v1574_v43 = vpop.f32.mrb[60].mxu1 }
0x1b28   :  { %v1575_v13 = vadd.f32 %v4423_v62, %v1574_v43  ;;  %v3602_v63 = vpop.f32.mrb[61].mxu1  ;;  %v4848_v62 = vpop.permute.xlu1 %1639 }
0x1b29   :  { %v1577_v24 = vpop.f32.mrb[62].mxu1  ;;  %vm1641_vm9 = vcmp.eq.s32.totalorder %v4265_v14, %v4848_v62 }
0x1b2a   :  { %v1581_v60 = vmul.f32 1.442695, %v1575_v13  ;;  %v3603_v31 = vpop.f32.mrb[63].mxu1  ;;  %vm1580_vm8 = vcmp.gt.f32.partialorder %v1575_v13, 0.0  ;;  %vm3102_vm10 = vmpackc.low %vm1641_vm9, %vm1641_vm9 }
0x1b2c   :  { %3962 = vpow2.f32 %v1581_v60 }
0x1b36   :  { %v3963_v58 = vpop.eup %3962 }
0x1b37   :  { %v3098_v25 = vadd.f32 -1.0, %v3963_v58 }
0x1b39   :  { %v1584_v32 = vmul.f32 1.6732632, %v3098_v25 }
0x1b3b   :  { %v1585_v26 = vsel %vm1580_vm8, %v1575_v13, %v1584_v32 }
0x1b3c   :  { %v1586_v27 = vmul.f32 1.050701, %v1585_v26 }
0x1b3e   :  { %v1587_v44 = vpack.c.bf16 %v1586_v27, %v1586_v27 }
0x1b40   :  { %3609 = vmatmul.mubr.msk.bf16.vlgmr.msra.gmra.mrb[28].mxu0 %vm241_vm3, %v1587_v44 }
0x1b41   :  { %3613 = vmatpush3.bf16.msra.mxu0 %v4657_v7  ;;  %3628 = vmatprep.mubr.msk.bf16.mxu0 %vm4098_vm0, %v4097_v3 }
0x1b42   :  { %3614 = vmatprep.subr.bf16.mxu0 %v4097_v3 }
0x1b45   :  { %3615 = vmatpush3.bf16.msra.mxu0 %v4666_v17 }
0x1b46   :  { %3616 = vmatprep.subr.bf16.mxu0 %v4097_v3 }
0x1b49   :  { %3617 = vmatpush3.bf16.msra.mxu0 %v4673_v20 }
0x1b4a   :  { %3618 = vmatprep.subr.bf16.mxu0 %v4097_v3 }
0x1b4d   :  { %3619 = vmatpush3.bf16.msra.mxu0 %v4680_v22 }
0x1b4e   :  { %3620 = vmatprep.subr.bf16.mxu0 %v4097_v3 }
0x1b51   :  { %3621 = vmatpush3.bf16.msra.mxu0 %v4687_v4 }
0x1b52   :  { %3622 = vmatprep.subr.bf16.mxu0 %v4097_v3 }
0x1b55   :  { %3623 = vmatpush3.bf16.msra.mxu0 %v4694_v6 }
0x1b56   :  { %3624 = vmatprep.subr.bf16.mxu0 %v4097_v3 }
0x1b59   :  { %3625 = vmatpush3.bf16.msra.mxu0 %v4703_v9 }
0x1b5a   :  { %3626 = vmatprep.subr.bf16.mxu0 %v4097_v3 }
0x1b5d   :  { %3627 = vmatpush3.bf16.msra.mxu0 %v4712_v10 }
0x1b5e   :  { %3668 = vmatprep.subr.bf16.mxu0 %v4097_v3 }
0x1b60   :  { %3629 = vmatmul.mubr.msk.bf16.vlgmr.msra.gmra.mrb[32].mxu0 %vm3102_vm10, %v4099_v16 }
0x1b61   :  { %3669 = vmatpush3.bf16.msra.mxu0 %v4864_v61  ;;  %3672 = vmatprep.mubr.msk.bf16.mxu0 %vm4098_vm0, %v4097_v3 }
0x1b62   :  { %3670 = vmatprep.subr.bf16.mxu0 %v4097_v3 }
0x1b65   :  { %3671 = vmatpush3.bf16.msra.mxu0 %v4873_v18 }
0x1b66   :  { %3676 = vmatprep.subr.bf16.mxu0 %v4097_v3 }
0x1c13   :  { %v1625_v28 = vpop.f32.mrb[28].mxu0 }
0x1c14   :  { %v1626_v38 = vadd.f32 %v4470_v37, %v1625_v28  ;;  %v3610_v39 = vpop.f32.mrb[29].mxu0  ;;  %v4898_v37 = vld [vmem:[%s5352_s9] sm:$0xff]  }
0x1c15   :  { %v1628_v45 = vpop.f32.mrb[30].mxu0  ;;  %v4945_v39 = vld [vmem:[%s5354_s11 + $0x10] sm:$0xff]  }
0x1c16   :  { %v1633_v47 = vsel %vm1632_vm11, -10000000.0, %v1626_v38  ;;  %v3611_v40 = vpop.f32.mrb[31].mxu0  ;;  %v4929_v38 = vld [vmem:[%s5354_s11] sm:$0xff]   ;;  %v4952_v45 = vld [vmem:[%s5354_s11 + $0x18] sm:$0xff]  }
0x1c17   :  { %1635 = vst [vmem:[#allocation2 + $0x18] sm:$0xff] %v1633_v47 }
0x1c33   :  { %v1679_v41 = vpop.f32.mrb[32].mxu0 }
0x1c34   :  { %v1685_v42 = vpack.c.bf16 %v1679_v41, %v1679_v41  ;;  %v3630_v15 = vpop.f32.mrb[33].mxu0 }
0x1c35   :  { %v1682_v55 = vpop.f32.mrb[34].mxu0 }
0x1c36   :  { %v3631_v46 = vpop.f32.mrb[35].mxu0  ;;  %3637 = vmatmul.mubr.msk.bf16.vlgmr.msra.gmra.mrb[64].mxu1 %vm241_vm3, %v1685_v42 }
0x1c37   :  { %3641 = vmatpush3.bf16.msra.mxu1 %v4740_v1  ;;  %3644 = vmatprep.mubr.msk.bf16.mxu1 %vm4098_vm0, %v4097_v3 }
0x1c38   :  { %3642 = vmatprep.subr.bf16.mxu1 %v4097_v3 }
0x1c3b   :  { %3643 = vmatpush3.bf16.msra.mxu1 %v4749_v5 }
0x1c3c   :  { %3648 = vmatprep.subr.bf16.mxu1 %v4097_v3 }
0x1c3e   :  { %3645 = vmatmul.mubr.msk.bf16.vlgmr.msra.gmra.mrb[68].mxu1 %vm241_vm3, %v4782_v11 }
0x1c3f   :  { %3649 = vmatpush3.bf16.msra.mxu1 %v4898_v37  ;;  %3652 = vmatprep.mubr.msk.bf16.mxu1 %vm4098_vm0, %v4097_v3 }
0x1c40   :  { %3650 = vmatprep.subr.bf16.mxu1 %v4097_v3 }
0x1c43   :  { %3651 = vmatpush3.bf16.msra.mxu1 %v4907_v8 }
0x1c44   :  { %3656 = vmatprep.subr.bf16.mxu1 %v4097_v3 }
0x1d09   :  { %v1723_v12 = vpop.f32.mrb[64].mxu1 }
0x1d0a   :  { %v3638_v11 = vpop.f32.mrb[65].mxu1  ;;  %v1724_v56 = vadd.f32 %v4771_v48, %v1723_v12 }
0x1d0b   :  { %v1726_v49 = vpop.f32.mrb[66].mxu1 }
0x1d0c   :  { %v3639_v50 = vpop.f32.mrb[67].mxu1 }
0x1d11   :  { %v1763_v21 = vpop.f32.mrb[68].mxu1 }
0x1d12   :  { %v1764_v52 = vadd.f32 %v4764_v0, %v1763_v21  ;;  %v3646_v30 = vpop.f32.mrb[69].mxu1 }
0x1d13   :  { %v1766_v53 = vpop.f32.mrb[70].mxu1 }
0x1d14   :  { %1777 = vrot.lane.b32.xlu0 %v1764_v52, %s4100_s3  ;;  %v3647_v54 = vpop.f32.mrb[71].mxu1  ;;  %v1769_v36 = vadd.f32 %v1764_v52, %v1724_v56 }
0x1d15   :  { %v3112_v54 = vld [vmem:[%s5343_s0 + $0x28] sm:$0xff] }
0x1d16   :  { %v3106_v59 = vmul.f32 -1.442695, %v1769_v36 }
0x1d18   :  { %3964 = vpow2.f32 %v3106_v59 }
0x1d22   :  { %v3965_v57 = vpop.eup %3964 }
0x1d23   :  { %v1773_v43 = vadd.f32 1.0, %v3965_v57 }
0x1d25   :  { %3966 = vrcp.f32 %v1773_v43 }
0x1d2f   :  { %v3967_v13 = vpop.eup %3966 }
0x1d30   :  { %v1787_v25 = vsub.f32 1.0, %v3967_v13  ;;  %v1793_v26 = vmul.f32 %v3967_v13, %v4777_v2  ;;  %v4938_v2 = vld [vmem:[%s5354_s11 + $0x8] sm:$0xff]  }
0x1d86   :  { %v1778_v63 = vpop.permute.xlu0 %1777 }
0x1d87   :  { %v1780_v24 = vmul.f32 %v3967_v13, %v1778_v63 }
0x1d89   :  { %1782 = vrot.lane.b32.xlu1 %v1780_v24, %s4100_s3 }
0x1dfb   :  { %v1783_v60 = vpop.permute.xlu1 %1782 }
0x1dfc   :  { %v1785_v31 = vadd.f32 %v1783_v60, %v1724_v56 }
0x1dfe   :  { %3968 = vtanh.f32 %v1785_v31 }
0x1e08   :  { %v3969_v58 = vpop.eup %3968 }
0x1e09   :  { %1789 = vrot.lane.b32.xlu0 %v3969_v58, %s4102_s25 }
0x1e7b   :  { %v1790_v32 = vpop.permute.xlu0 %1789 }
0x1e7c   :  { %v1792_v27 = vmul.f32 %v1790_v32, %v1787_v25 }
0x1e7e   :  { %v4917_v44 = vadd.f32 %v1793_v26, %v1792_v27 }
0x1e80   :  { %v1795_v35 = vpack.c.bf16 %v4917_v44, %v4917_v44 }
0x1e82   :  { %1797 = vrot.lane.b32.xlu1 %v1795_v35, %s4102_s25 }
0x1ef4   :  { %v4922_v28 = vpop.permute.xlu1 %1797 }
0x1ef5   :  { %3653 = vmatmul.mubr.msk.bf16.vlgmr.msra.gmra.mrb[72].mxu1 %vm241_vm3, %v4922_v28 }
0x1ef6   :  { %3657 = vmatpush3.bf16.msra.mxu1 %v4929_v38  ;;  %3664 = vmatprep.mubr.msk.bf16.mxu1 %vm4098_vm0, %v4097_v3 }
0x1ef7   :  { %3658 = vmatprep.subr.bf16.mxu1 %v4097_v3 }
0x1efa   :  { %3659 = vmatpush3.bf16.msra.mxu1 %v4938_v2 }
0x1efb   :  { %3660 = vmatprep.subr.bf16.mxu1 %v4097_v3 }
0x1efe   :  { %3661 = vmatpush3.bf16.msra.mxu1 %v4945_v39 }
0x1eff   :  { %3662 = vmatprep.subr.bf16.mxu1 %v4097_v3 }
0x1f02   :  { %3663 = vmatpush3.bf16.msra.mxu1 %v4952_v45 }
0x1f03   :  { %3696 = vmatprep.subr.bf16.mxu1 %v4097_v3 }
0x1fc8   :  { %v1836_v47 = vpop.f32.mrb[72].mxu1 }
0x1fc9   :  { %v1837_v40 = vadd.f32 %v4799_v29, %v1836_v47  ;;  %v3654_v41 = vpop.f32.mrb[73].mxu1 }
0x1fca   :  { %v1839_v42 = vpop.f32.mrb[74].mxu1 }
0x1fcb   :  { %v1843_v15 = vmul.f32 1.442695, %v1837_v40  ;;  %v3655_v55 = vpop.f32.mrb[75].mxu1  ;;  %vm1842_vm12 = vcmp.gt.f32.partialorder %v1837_v40, 0.0 }
0x1fcc   :  { %v4980_v55 = vld [vmem:[%s5355_s12] ss:$0 sm:$0xff] }
0x1fcd   :  { %3970 = vpow2.f32 %v1843_v15 }
0x1fd7   :  { %v3971_v46 = vpop.eup %3970 }
0x1fd8   :  { %v3108_v12 = vadd.f32 -1.0, %v3971_v46 }
0x1fda   :  { %v1846_v11 = vmul.f32 1.6732632, %v3108_v12 }
0x1fdc   :  { %v1847_v49 = vsel %vm1842_vm12, %v1837_v40, %v1846_v11 }
0x1fdd   :  { %v1848_v50 = vmul.f32 1.050701, %v1847_v49 }
0x1fdf   :  { %v1853_v21 = vmul.f32 %v4805_v33, %v1848_v50  ;;  %v1849_v52 = vmul.f32 %v4811_v34, %v1848_v50 }
0x1fe1   :  { %v1854_v30 = vsel %vm241_vm3, %v1853_v21, 0.0  ;;  %v1850_v53 = vsel %vm241_vm3, %v1849_v52, 0.0 }
0x1fe2   :  { %1855 = vadd.xlane.f32.xlu1 %v1854_v30  ;;  %1851 = vadd.xlane.f32.xlu0 %v1850_v53 }
0x1ff8   :  { %1872 = vrot.lane.b32.xlu0 %v4917_v44, %s4102_s25 }
0x1ffc   :  { %1983 = vperm.xlu0 %3878, %v3112_v54  }
0x206f   :  { %v1856_v56 = vpop.xlane.xlu1 %1855  ;;  %v1852_v36 = vpop.xlane.xlu0 %1851 }
0x2070   :  { %v1857_v59 = vmax.f32 %v1852_v36, %v1856_v56 }
0x2072   :  { %v1858_v57 = vsub.f32 %v1852_v36, %v1857_v59  ;;  %v1861_v43 = vsub.f32 %v1856_v56, %v1857_v59  ;;  %v3101_v59 = vsel %vm1641_vm9, 1.0, %v4097_v3 }
0x2073   :  { %v1873_v47 = vpop.permute.xlu0 %1872 }
0x2074   :  { %v1859_v13 = vmul.f32 1.442695, %v1858_v57  ;;  %v1862_v63 = vmul.f32 1.442695, %v1861_v43  ;;  %v5022_v57 = vmax.f32 %v4882_v23, %v3101_v59 }
0x2076   :  { %3972 = vpow2.f32 %v1859_v13  ;;  %v5027_v13 = vld [vmem:[%s5357_s14] ss:$0 sm:$0xff]  ;;  %vm1976_vm1 = vcmp.gt.f32.partialorder %v5022_v57, 0.0 }
0x2077   :  { %3974 = vpow2.f32 %v1862_v63 }
0x207b   :  { %v4998_v36 = vpop.permute.xlu0 %1983 }
0x207c   :  { %vm1985_vm14 = vcmp.eq.s32.totalorder %v4265_v14, %v4998_v36 }
0x207d   :  { %vm3114_vm15 = vmpackc.low %vm1985_vm14, %vm1985_vm14 }
0x2080   :  { %v3973_v24 = vpop.eup %3972 }
0x2081   :  { %v3975_v60 = vpop.eup %3974 }
0x2082   :  { %v1864_v31 = vadd.f32 %v3975_v60, %v3973_v24 }
0x2084   :  { %3976 = vrcp.f32 %v1864_v31 }
0x208e   :  { %v3977_v58 = vpop.eup %3976 }
0x208f   :  { %v1866_v25 = vmul.f32 %v3977_v58, %v3973_v24  ;;  %v1868_v32 = vmul.f32 %v3977_v58, %v3975_v60 }
0x2091   :  { %v1867_v26 = vmul.f32 %v4811_v34, %v1866_v25  ;;  %v1869_v27 = vmul.f32 %v4805_v33, %v1868_v32 }
0x2093   :  { %v1870_v35 = vadd.f32 %v1869_v27, %v1867_v26 }
0x2095   :  { %1876 = vrot.lane.b32.xlu1 %v1870_v35, %s4101_s18 }
0x2107   :  { %v1877_v40 = vpop.permute.xlu1 %1876 }
0x2108   :  { %v1879_v41 = vsel %vm241_vm3, %v1873_v47, %v1877_v40 }
0x2109   :  { %v1880_v42 = vpack.c.bf16 %v1879_v41, %v1879_v41 }
0x210b   :  { %3665 = vmatmul.mubr.msk.bf16.vlgmr.msra.gmra.mrb[76].mxu1 %vm493_vm5, %v1880_v42 }
0x210c   :  { %3697 = vmatpush3.bf16.msra.mxu1 %v4639_v51  ;;  %3700 = vmatprep.mubr.msk.bf16.mxu1 %vm4098_vm0, %v4097_v3 }
0x210d   :  { %3698 = vmatprep.subr.bf16.mxu1 %v4097_v3 }
0x2110   :  { %3699 = vmatpush3.bf16.msra.mxu1 %v4648_v19 }
0x2111   :  { %3704 = vmatprep.subr.bf16.mxu1 %v4097_v3 }
0x21de   :  { %v1918_v15 = vpop.f32.mrb[76].mxu1 }
0x21df   :  { %v1919_v46 = vadd.f32 %v4980_v55, %v1918_v15  ;;  %v3666_v12 = vpop.f32.mrb[77].mxu1 }
0x21e0   :  { %v1921_v11 = vpop.f32.mrb[78].mxu1 }
0x21e1   :  { %v1925_v49 = vmul.f32 1.442695, %v1919_v46  ;;  %v3667_v50 = vpop.f32.mrb[79].mxu1  ;;  %vm1924_vm13 = vcmp.gt.f32.partialorder %v1919_v46, 0.0 }
0x21e3   :  { %3978 = vpow2.f32 %v1925_v49 }
0x21ed   :  { %v3979_v21 = vpop.eup %3978 }
0x21ee   :  { %v3110_v52 = vadd.f32 -1.0, %v3979_v21 }
0x21f0   :  { %v1928_v30 = vmul.f32 1.6732632, %v3110_v52 }
0x21f2   :  { %v1929_v53 = vsel %vm1924_vm13, %v1919_v46, %v1928_v30 }
0x21f3   :  { %v1930_v54 = vmul.f32 1.050701, %v1929_v53 }
0x21f5   :  { %v1931_v56 = vpack.c.bf16 %v1930_v54, %v1930_v54 }
0x21f7   :  { %3673 = vmatmul.mubr.msk.bf16.vlgmr.msra.gmra.mrb[36].mxu0 %vm241_vm3, %v1931_v56 }
0x21f8   :  { %3677 = vmatpush3.bf16.msra.mxu0 %v4657_v7  ;;  %3692 = vmatprep.mubr.msk.bf16.mxu0 %vm4098_vm0, %v4097_v3 }
0x21f9   :  { %3678 = vmatprep.subr.bf16.mxu0 %v4097_v3 }
0x21fc   :  { %3679 = vmatpush3.bf16.msra.mxu0 %v4666_v17 }
0x21fd   :  { %3680 = vmatprep.subr.bf16.mxu0 %v4097_v3 }
0x2200   :  { %3681 = vmatpush3.bf16.msra.mxu0 %v4673_v20 }
0x2201   :  { %3682 = vmatprep.subr.bf16.mxu0 %v4097_v3 }
0x2204   :  { %3683 = vmatpush3.bf16.msra.mxu0 %v4680_v22 }
0x2205   :  { %3684 = vmatprep.subr.bf16.mxu0 %v4097_v3 }
0x2208   :  { %3685 = vmatpush3.bf16.msra.mxu0 %v4687_v4 }
0x2209   :  { %3686 = vmatprep.subr.bf16.mxu0 %v4097_v3 }
0x220c   :  { %3687 = vmatpush3.bf16.msra.mxu0 %v4694_v6 }
0x220d   :  { %3688 = vmatprep.subr.bf16.mxu0 %v4097_v3 }
0x2210   :  { %3689 = vmatpush3.bf16.msra.mxu0 %v4703_v9 }
0x2211   :  { %3690 = vmatprep.subr.bf16.mxu0 %v4097_v3 }
0x2214   :  { %3691 = vmatpush3.bf16.msra.mxu0 %v4712_v10 }
0x2215   :  { %3732 = vmatprep.subr.bf16.mxu0 %v4097_v3 }
0x2217   :  { %3693 = vmatmul.mubr.msk.bf16.vlgmr.msra.gmra.mrb[40].mxu0 %vm3114_vm15, %v4099_v16 }
0x2218   :  { %3733 = vmatpush3.bf16.msra.mxu0 %v4864_v61  ;;  %3736 = vmatprep.mubr.msk.bf16.mxu0 %vm4098_vm0, %v4097_v3 }
0x2219   :  { %3734 = vmatprep.subr.bf16.mxu0 %v4097_v3 }
0x221c   :  { %3735 = vmatpush3.bf16.msra.mxu0 %v4873_v18 }
0x221d   :  { %3740 = vmatprep.subr.bf16.mxu0 %v4097_v3 }
0x22ca   :  { %v1969_v43 = vpop.f32.mrb[36].mxu0 }
0x22cb   :  { %v1970_v63 = vadd.f32 %v5027_v13, %v1969_v43  ;;  %v3674_v24 = vpop.f32.mrb[37].mxu0 }
0x22cc   :  { %v1972_v60 = vpop.f32.mrb[38].mxu0 }
0x22cd   :  { %v1977_v31 = vsel %vm1976_vm1, -10000000.0, %v1970_v63  ;;  %v3675_v58 = vpop.f32.mrb[39].mxu0 }
0x22ce   :  { %1979 = vst [vmem:[#allocation2 + $0x20] sm:$0xff] %v1977_v31 }
0x22ea   :  { %v2023_v62 = vpop.f32.mrb[40].mxu0 }
0x22eb   :  { %v2029_v25 = vpack.c.bf16 %v2023_v62, %v2023_v62  ;;  %v3694_v32 = vpop.f32.mrb[41].mxu0 }
0x22ec   :  { %v2026_v23 = vpop.f32.mrb[42].mxu0 }
0x22ed   :  { %v3695_v26 = vpop.f32.mrb[43].mxu0  ;;  %3701 = vmatmul.mubr.msk.bf16.vlgmr.msra.gmra.mrb[80].mxu1 %vm241_vm3, %v2029_v25 }
0x22ee   :  { %3705 = vmatpush3.bf16.msra.mxu1 %v4740_v1  ;;  %3708 = vmatprep.mubr.msk.bf16.mxu1 %vm4098_vm0, %v4097_v3 }
0x22ef   :  { %3706 = vmatprep.subr.bf16.mxu1 %v4097_v3 }
0x22f2   :  { %3707 = vmatpush3.bf16.msra.mxu1 %v4749_v5 }
0x22f3   :  { %3712 = vmatprep.subr.bf16.mxu1 %v4097_v3 }
0x22f5   :  { %3709 = vmatmul.mubr.msk.bf16.vlgmr.msra.gmra.mrb[84].mxu1 %vm241_vm3, %v4922_v28 }
0x22f6   :  { %3713 = vmatpush3.bf16.msra.mxu1 %v4898_v37  ;;  %3716 = vmatprep.mubr.msk.bf16.mxu1 %vm4098_vm0, %v4097_v3 }
0x22f7   :  { %3714 = vmatprep.subr.bf16.mxu1 %v4097_v3 }
0x22fa   :  { %3715 = vmatpush3.bf16.msra.mxu1 %v4907_v8 }
0x22fb   :  { %3720 = vmatprep.subr.bf16.mxu1 %v4097_v3 }
0x23c0   :  { %v2067_v27 = vpop.f32.mrb[80].mxu1 }
0x23c1   :  { %v3702_v35 = vpop.f32.mrb[81].mxu1  ;;  %v2068_v12 = vadd.f32 %v4771_v48, %v2067_v27 }
0x23c2   :  { %v2070_v47 = vpop.f32.mrb[82].mxu1 }
0x23c3   :  { %v3703_v40 = vpop.f32.mrb[83].mxu1 }
0x23c8   :  { %v2107_v41 = vpop.f32.mrb[84].mxu1 }
0x23c9   :  { %v2108_v42 = vadd.f32 %v4764_v0, %v2107_v41  ;;  %v3710_v15 = vpop.f32.mrb[85].mxu1 }
0x23ca   :  { %v2110_v28 = vpop.f32.mrb[86].mxu1 }
0x23cb   :  { %2121 = vrot.lane.b32.xlu1 %v2108_v42, %s4100_s3  ;;  %v3711_v46 = vpop.f32.mrb[87].mxu1  ;;  %v2113_v11 = vadd.f32 %v2108_v42, %v2068_v12 }
0x23cd   :  { %v3118_v49 = vmul.f32 -1.442695, %v2113_v11 }
0x23cf   :  { %3980 = vpow2.f32 %v3118_v49 }
0x23d9   :  { %v3981_v50 = vpop.eup %3980 }
0x23da   :  { %v2117_v21 = vadd.f32 1.0, %v3981_v50 }
0x23dc   :  { %3982 = vrcp.f32 %v2117_v21 }
0x23e6   :  { %v3983_v52 = vpop.eup %3982 }
0x23e7   :  { %v2131_v43 = vsub.f32 1.0, %v3983_v52  ;;  %v2137_v24 = vmul.f32 %v3983_v52, %v4917_v44 }
0x243d   :  { %v2122_v30 = vpop.permute.xlu1 %2121 }
0x243e   :  { %v2124_v53 = vmul.f32 %v3983_v52, %v2122_v30 }
0x2440   :  { %2126 = vrot.lane.b32.xlu0 %v2124_v53, %s4100_s3 }
0x24b2   :  { %v2127_v54 = vpop.permute.xlu0 %2126 }
0x24b3   :  { %v2129_v56 = vadd.f32 %v2127_v54, %v2068_v12 }
0x24b5   :  { %3984 = vtanh.f32 %v2129_v56 }
0x24bf   :  { %v3985_v59 = vpop.eup %3984 }
0x24c0   :  { %2133 = vrot.lane.b32.xlu1 %v3985_v59, %s4102_s25 }
0x2532   :  { %v2134_v63 = vpop.permute.xlu1 %2133 }
0x2533   :  { %v2136_v60 = vmul.f32 %v2134_v63, %v2131_v43 }
0x2535   :  { %v5052_v31 = vadd.f32 %v2137_v24, %v2136_v60 }
0x2537   :  { %v2139_v58 = vpack.c.bf16 %v5052_v31, %v5052_v31 }
0x2539   :  { %2141 = vrot.lane.b32.xlu0 %v2139_v58, %s4102_s25 }
0x25ab   :  { %v5057_v62 = vpop.permute.xlu0 %2141 }
0x25ac   :  { %3717 = vmatmul.mubr.msk.bf16.vlgmr.msra.gmra.mrb[88].mxu1 %vm241_vm3, %v5057_v62 }
0x25ad   :  { %3721 = vmatpush3.bf16.msra.mxu1 %v4929_v38  ;;  %3728 = vmatprep.mubr.msk.bf16.mxu1 %vm4098_vm0, %v4097_v3 }
0x25ae   :  { %3722 = vmatprep.subr.bf16.mxu1 %v4097_v3 }
0x25b1   :  { %3723 = vmatpush3.bf16.msra.mxu1 %v4938_v2 }
0x25b2   :  { %3724 = vmatprep.subr.bf16.mxu1 %v4097_v3 }
0x25b5   :  { %3725 = vmatpush3.bf16.msra.mxu1 %v4945_v39 }
0x25b6   :  { %3726 = vmatprep.subr.bf16.mxu1 %v4097_v3 }
0x25b9   :  { %3727 = vmatpush3.bf16.msra.mxu1 %v4952_v45 }
0x25ba   :  { %3760 = vmatprep.subr.bf16.mxu1 %v4097_v3 }
0x267f   :  { %v2180_v44 = vpop.f32.mrb[88].mxu1 }
0x2680   :  { %v2181_v25 = vadd.f32 %v4799_v29, %v2180_v44  ;;  %v3718_v32 = vpop.f32.mrb[89].mxu1 }
0x2681   :  { %v2183_v23 = vpop.f32.mrb[90].mxu1 }
0x2682   :  { %v2187_v26 = vmul.f32 1.442695, %v2181_v25  ;;  %v3719_v27 = vpop.f32.mrb[91].mxu1  ;;  %vm2186_vm2 = vcmp.gt.f32.partialorder %v2181_v25, 0.0 }
0x2684   :  { %3986 = vpow2.f32 %v2187_v26 }
0x268e   :  { %v3987_v35 = vpop.eup %3986 }
0x268f   :  { %v3120_v47 = vadd.f32 -1.0, %v3987_v35 }
0x2691   :  { %v2190_v40 = vmul.f32 1.6732632, %v3120_v47 }
0x2693   :  { %v2191_v41 = vsel %vm2186_vm2, %v2181_v25, %v2190_v40  ;;  %v3124_v25 = vld [vmem:[%s5343_s0 + $0x30] sm:$0xff] }
0x2694   :  { %v2192_v42 = vmul.f32 1.050701, %v2191_v41 }
0x2696   :  { %v2197_v15 = vmul.f32 %v4805_v33, %v2192_v42  ;;  %v2193_v28 = vmul.f32 %v4811_v34, %v2192_v42 }
0x2698   :  { %v2198_v46 = vsel %vm241_vm3, %v2197_v15, 0.0  ;;  %v2194_v12 = vsel %vm241_vm3, %v2193_v28, 0.0 }
0x2699   :  { %2199 = vadd.xlane.f32.xlu0 %v2198_v46  ;;  %2195 = vadd.xlane.f32.xlu1 %v2194_v12 }
0x26af   :  { %2216 = vrot.lane.b32.xlu0 %v5052_v31, %s4102_s25 }
0x2726   :  { %v2200_v11 = vpop.xlane.xlu0 %2199  ;;  %v2196_v49 = vpop.xlane.xlu1 %2195 }
0x2727   :  { %v2201_v50 = vmax.f32 %v2196_v49, %v2200_v11 }
0x2729   :  { %v2202_v21 = vsub.f32 %v2196_v49, %v2201_v50  ;;  %v2205_v52 = vsub.f32 %v2200_v11, %v2201_v50 }
0x272a   :  { %v2217_v32 = vpop.permute.xlu0 %2216 }
0x272b   :  { %v2203_v30 = vmul.f32 1.442695, %v2202_v21  ;;  %v2206_v53 = vmul.f32 1.442695, %v2205_v52 }
0x272d   :  { %3988 = vpow2.f32 %v2203_v30 }
0x272e   :  { %3990 = vpow2.f32 %v2206_v53 }
0x2737   :  { %v3989_v54 = vpop.eup %3988 }
0x2738   :  { %v3991_v56 = vpop.eup %3990 }
0x2739   :  { %v2208_v59 = vadd.f32 %v3991_v56, %v3989_v54 }
0x273b   :  { %3992 = vrcp.f32 %v2208_v59 }
0x2745   :  { %v3993_v43 = vpop.eup %3992 }
0x2746   :  { %v2210_v63 = vmul.f32 %v3993_v43, %v3989_v54  ;;  %v2212_v24 = vmul.f32 %v3993_v43, %v3991_v56 }
0x2748   :  { %v2211_v60 = vmul.f32 %v4811_v34, %v2210_v63  ;;  %v2213_v58 = vmul.f32 %v4805_v33, %v2212_v24 }
0x274a   :  { %v2214_v44 = vadd.f32 %v2213_v58, %v2211_v60 }
0x274c   :  { %2220 = vrot.lane.b32.xlu1 %v2214_v44, %s4101_s18 }
0x2750   :  { %2327 = vperm.xlu1 %3879, %v3124_v25  }
0x27be   :  { %v2221_v23 = vpop.permute.xlu1 %2220 }
0x27bf   :  { %v2223_v26 = vsel %vm241_vm3, %v2217_v32, %v2221_v23 }
0x27c0   :  { %v2224_v27 = vpack.c.bf16 %v2223_v26, %v2223_v26 }
0x27c2   :  { %3729 = vmatmul.mubr.msk.bf16.vlgmr.msra.gmra.mrb[92].mxu1 %vm493_vm5, %v2224_v27 }
0x27c3   :  { %3761 = vmatpush3.bf16.msra.mxu1 %v4639_v51  ;;  %3764 = vmatprep.mubr.msk.bf16.mxu1 %vm4098_vm0, %v4097_v3 }
0x27c4   :  { %3762 = vmatprep.subr.bf16.mxu1 %v4097_v3 }
0x27c7   :  { %3763 = vmatpush3.bf16.msra.mxu1 %v4648_v19 }
0x27c8   :  { %3768 = vmatprep.subr.bf16.mxu1 %v4097_v3 }
0x27cf   :  { %v5108_v19 = vpop.permute.xlu1 %2327 }
0x27d0   :  { %vm2329_vm6 = vcmp.eq.s32.totalorder %v4265_v14, %v5108_v19  ;;  %v4067_v19 = vld [vmem:[%s5349_s6] sm:$0xff]  }
0x27d1   :  { %vm3126_vm7 = vmpackc.low %vm2329_vm6, %vm2329_vm6 }
0x2895   :  { %v2262_v35 = vpop.f32.mrb[92].mxu1 }
0x2896   :  { %v2263_v47 = vadd.f32 %v4980_v55, %v2262_v35  ;;  %v3730_v40 = vpop.f32.mrb[93].mxu1 }
0x2897   :  { %v2265_v41 = vpop.f32.mrb[94].mxu1 }
0x2898   :  { %v2269_v42 = vmul.f32 1.442695, %v2263_v47  ;;  %v3731_v15 = vpop.f32.mrb[95].mxu1  ;;  %vm2268_vm4 = vcmp.gt.f32.partialorder %v2263_v47, 0.0 }
0x289a   :  { %3994 = vpow2.f32 %v2269_v42 }
0x28a4   :  { %v3995_v28 = vpop.eup %3994 }
0x28a5   :  { %v3122_v46 = vadd.f32 -1.0, %v3995_v28 }
0x28a7   :  { %v2272_v51 = vmul.f32 1.6732632, %v3122_v46 }
0x28a9   :  { %v2273_v12 = vsel %vm2268_vm4, %v2263_v47, %v2272_v51 }
0x28aa   :  { %v2274_v11 = vmul.f32 1.050701, %v2273_v12 }
0x28ac   :  { %v2275_v49 = vpack.c.bf16 %v2274_v11, %v2274_v11 }
0x28ae   :  { %3737 = vmatmul.mubr.msk.bf16.vlgmr.msra.gmra.mrb[44].mxu0 %vm241_vm3, %v2275_v49 }
0x28af   :  { %3741 = vmatpush3.bf16.msra.mxu0 %v4657_v7  ;;  %3756 = vmatprep.mubr.msk.bf16.mxu0 %vm4098_vm0, %v4097_v3  ;;  %v3113_v7 = vsel %vm1985_vm14, 1.0, %v4097_v3 }
0x28b0   :  { %3742 = vmatprep.subr.bf16.mxu0 %v4097_v3 }
0x28b3   :  { %3743 = vmatpush3.bf16.msra.mxu0 %v4666_v17  ;;  %v5132_v17 = vmax.f32 %v5022_v57, %v3113_v7 }
0x28b4   :  { %3744 = vmatprep.subr.bf16.mxu0 %v4097_v3 }
0x28b5   :  { %vm2320_vm8 = vcmp.gt.f32.partialorder %v5132_v17, 0.0 }
0x28b7   :  { %3745 = vmatpush3.bf16.msra.mxu0 %v4673_v20 }
0x28b8   :  { %3746 = vmatprep.subr.bf16.mxu0 %v4097_v3 }
0x28bb   :  { %3747 = vmatpush3.bf16.msra.mxu0 %v4680_v22 }
0x28bc   :  { %3748 = vmatprep.subr.bf16.mxu0 %v4097_v3 }
0x28bf   :  { %3749 = vmatpush3.bf16.msra.mxu0 %v4687_v4 }
0x28c0   :  { %3750 = vmatprep.subr.bf16.mxu0 %v4097_v3 }
0x28c3   :  { %3751 = vmatpush3.bf16.msra.mxu0 %v4694_v6 }
0x28c4   :  { %3752 = vmatprep.subr.bf16.mxu0 %v4097_v3 }
0x28c7   :  { %3753 = vmatpush3.bf16.msra.mxu0 %v4703_v9 }
0x28c8   :  { %3754 = vmatprep.subr.bf16.mxu0 %v4097_v3 }
0x28cb   :  { %3755 = vmatpush3.bf16.msra.mxu0 %v4712_v10 }
0x28cc   :  { %3796 = vmatprep.subr.bf16.mxu0 %v4097_v3 }
0x28ce   :  { %3757 = vmatmul.mubr.msk.bf16.vlgmr.msra.gmra.mrb[48].mxu0 %vm3126_vm7, %v4099_v16 }
0x28cf   :  { %3797 = vmatpush3.bf16.msra.mxu0 %v4864_v61  ;;  %3800 = vmatprep.mubr.msk.bf16.mxu0 %vm4098_vm0, %v4097_v3 }
0x28d0   :  { %3798 = vmatprep.subr.bf16.mxu0 %v4097_v3 }
0x28d3   :  { %3799 = vmatpush3.bf16.msra.mxu0 %v4873_v18 }
0x28d4   :  { %3804 = vmatprep.subr.bf16.mxu0 %v4097_v3 }
0x2981   :  { %v2313_v20 = vpop.f32.mrb[44].mxu0 }
0x2982   :  { %v2314_v22 = vadd.f32 %v5027_v13, %v2313_v20  ;;  %v3738_v4 = vpop.f32.mrb[45].mxu0 }
0x2983   :  { %v2316_v6 = vpop.f32.mrb[46].mxu0 }
0x2984   :  { %v2321_v9 = vsel %vm2320_vm8, -10000000.0, %v2314_v22  ;;  %v3739_v10 = vpop.f32.mrb[47].mxu0 }
0x2985   :  { %2323 = vst [vmem:[#allocation2 + $0x28] sm:$0xff] %v2321_v9 }
0x29a1   :  { %v2367_v50 = vpop.f32.mrb[48].mxu0 }
0x29a2   :  { %v2373_v21 = vpack.c.bf16 %v2367_v50, %v2367_v50  ;;  %v3758_v52 = vpop.f32.mrb[49].mxu0 }
0x29a3   :  { %v2370_v30 = vpop.f32.mrb[50].mxu0 }
0x29a4   :  { %v3759_v53 = vpop.f32.mrb[51].mxu0  ;;  %3765 = vmatmul.mubr.msk.bf16.vlgmr.msra.gmra.mrb[96].mxu1 %vm241_vm3, %v2373_v21 }
0x29a5   :  { %3769 = vmatpush3.bf16.msra.mxu1 %v4740_v1  ;;  %3772 = vmatprep.mubr.msk.bf16.mxu1 %vm4098_vm0, %v4097_v3 }
0x29a6   :  { %3770 = vmatprep.subr.bf16.mxu1 %v4097_v3 }
0x29a9   :  { %3771 = vmatpush3.bf16.msra.mxu1 %v4749_v5 }
0x29aa   :  { %3776 = vmatprep.subr.bf16.mxu1 %v4097_v3 }
0x29ac   :  { %3773 = vmatmul.mubr.msk.bf16.vlgmr.msra.gmra.mrb[100].mxu1 %vm241_vm3, %v5057_v62 }
0x29ad   :  { %3777 = vmatpush3.bf16.msra.mxu1 %v4898_v37  ;;  %3780 = vmatprep.mubr.msk.bf16.mxu1 %vm4098_vm0, %v4097_v3 }
0x29ae   :  { %3778 = vmatprep.subr.bf16.mxu1 %v4097_v3 }
0x29b1   :  { %3779 = vmatpush3.bf16.msra.mxu1 %v4907_v8 }
0x29b2   :  { %3784 = vmatprep.subr.bf16.mxu1 %v4097_v3 }
0x2a77   :  { %v2411_v1 = vpop.f32.mrb[96].mxu1 }
0x2a78   :  { %v3766_v36 = vpop.f32.mrb[97].mxu1  ;;  %v2412_v63 = vadd.f32 %v4771_v48, %v2411_v1 }
0x2a79   :  { %v2414_v57 = vpop.f32.mrb[98].mxu1 }
0x2a7a   :  { %v3767_v5 = vpop.f32.mrb[99].mxu1 }
0x2a7f   :  { %v2451_v54 = vpop.f32.mrb[100].mxu1 }
0x2a80   :  { %v2452_v56 = vadd.f32 %v4764_v0, %v2451_v54  ;;  %v3774_v59 = vpop.f32.mrb[101].mxu1 }
0x2a81   :  { %v2454_v62 = vpop.f32.mrb[102].mxu1 }
0x2a82   :  { %2465 = vrot.lane.b32.xlu0 %v2452_v56, %s4100_s3  ;;  %v3775_v43 = vpop.f32.mrb[103].mxu1  ;;  %v2457_v24 = vadd.f32 %v2452_v56, %v2412_v63  ;;  %v5189_v62 = vld [vmem:[%s5344_s1] sm:$0xff] }
0x2a84   :  { %v3130_v60 = vmul.f32 -1.442695, %v2457_v24 }
0x2a86   :  { %3996 = vpow2.f32 %v3130_v60 }
0x2a90   :  { %v3997_v58 = vpop.eup %3996 }
0x2a91   :  { %v2461_v44 = vadd.f32 1.0, %v3997_v58 }
0x2a93   :  { %3998 = vrcp.f32 %v2461_v44 }
0x2a9d   :  { %v3999_v25 = vpop.eup %3998 }
0x2a9e   :  { %v2475_v35 = vsub.f32 1.0, %v3999_v25  ;;  %v2481_v48 = vmul.f32 %v3999_v25, %v5052_v31 }
0x2af4   :  { %v2466_v32 = vpop.permute.xlu0 %2465 }
0x2af5   :  { %v2468_v23 = vmul.f32 %v3999_v25, %v2466_v32 }
0x2af7   :  { %2470 = vrot.lane.b32.xlu1 %v2468_v23, %s4100_s3  ;;  %v4057_v23 = vld [vmem:[%s5348_s5] sm:$0xff]  }
0x2b69   :  { %v2471_v26 = vpop.permute.xlu1 %2470 }
0x2b6a   :  { %v2473_v0 = vadd.f32 %v2471_v26, %v2412_v63  ;;  %v5195_v63 = vld [vmem:[%s5345_s2] sm:$0xff]  ;;  %v4058_v26 = vld [vmem:[%s5348_s5 + $0x8] sm:$0xff]  }
0x2b6c   :  { %4000 = vtanh.f32 %v2473_v0 }
0x2b76   :  { %v4001_v27 = vpop.eup %4000 }
0x2b77   :  { %2477 = vrot.lane.b32.xlu0 %v4001_v27, %s4102_s25 }
0x2be9   :  { %v2478_v47 = vpop.permute.xlu0 %2477 }
0x2bea   :  { %v2480_v40 = vmul.f32 %v2478_v47, %v2475_v35 }
0x2bec   :  { %v5157_v41 = vadd.f32 %v2481_v48, %v2480_v40 }
0x2bee   :  { %v2483_v42 = vpack.c.bf16 %v5157_v41, %v5157_v41 }
0x2bf0   :  { %2485 = vrot.lane.b32.xlu1 %v2483_v42, %s4102_s25 }
0x2c62   :  { %v5162_v15 = vpop.permute.xlu1 %2485 }
0x2c63   :  { %3781 = vmatmul.mubr.msk.bf16.vlgmr.msra.gmra.mrb[104].mxu1 %vm241_vm3, %v5162_v15 }
0x2c64   :  { %3785 = vmatpush3.bf16.msra.mxu1 %v4929_v38  ;;  %3792 = vmatprep.mubr.msk.bf16.mxu1 %vm4098_vm0, %v4097_v3 }
0x2c65   :  { %3786 = vmatprep.subr.bf16.mxu1 %v4097_v3 }
0x2c68   :  { %3787 = vmatpush3.bf16.msra.mxu1 %v4938_v2 }
0x2c69   :  { %3788 = vmatprep.subr.bf16.mxu1 %v4097_v3 }
0x2c6c   :  { %3789 = vmatpush3.bf16.msra.mxu1 %v4945_v39 }
0x2c6d   :  { %3790 = vmatprep.subr.bf16.mxu1 %v4097_v3 }
0x2c70   :  { %3791 = vmatpush3.bf16.msra.mxu1 %v4952_v45 }
0x2c71   :  { %3824 = vmatprep.subr.bf16.mxu1 %v4097_v3 }
0x2d36   :  { %v2524_v31 = vpop.f32.mrb[104].mxu1 }
0x2d37   :  { %v2525_v28 = vadd.f32 %v4799_v29, %v2524_v31  ;;  %v3782_v46 = vpop.f32.mrb[105].mxu1  ;;  %v3136_v29 = vld [vmem:[%s5343_s0 + $0x38] sm:$0xff] }
0x2d38   :  { %v2527_v51 = vpop.f32.mrb[106].mxu1 }
0x2d39   :  { %v2531_v12 = vmul.f32 1.442695, %v2525_v28  ;;  %v3783_v11 = vpop.f32.mrb[107].mxu1  ;;  %vm2530_vm9 = vcmp.gt.f32.partialorder %v2525_v28, 0.0 }
0x2d3a   :  { %v4059_v11 = vld [vmem:[%s5347_s4] sm:$0xff]  }
0x2d3b   :  { %4002 = vpow2.f32 %v2531_v12 }
0x2d45   :  { %v4003_v49 = vpop.eup %4002 }
0x2d46   :  { %v3132_v7 = vadd.f32 -1.0, %v4003_v49  ;;  %v4060_v49 = vld [vmem:[%s5347_s4 + $0x8] sm:$0xff]  }
0x2d48   :  { %v2534_v20 = vmul.f32 1.6732632, %v3132_v7  ;;  %v4061_v7 = vld [vmem:[%s5347_s4 + $0x10] sm:$0xff]  }
0x2d4a   :  { %v2535_v22 = vsel %vm2530_vm9, %v2525_v28, %v2534_v20  ;;  %v4062_v20 = vld [vmem:[%s5347_s4 + $0x18] sm:$0xff]  }
0x2d4b   :  { %v2536_v4 = vmul.f32 1.050701, %v2535_v22  ;;  %v4063_v22 = vld [vmem:[%s5347_s4 + $0x20] sm:$0xff]  }
0x2d4d   :  { %v2541_v6 = vmul.f32 %v4805_v33, %v2536_v4  ;;  %v2537_v9 = vmul.f32 %v4811_v34, %v2536_v4  ;;  %v4064_v4 = vld [vmem:[%s5347_s4 + $0x28] sm:$0xff]  }
0x2d4f   :  { %v2542_v10 = vsel %vm241_vm3, %v2541_v6, 0.0  ;;  %v2538_v50 = vsel %vm241_vm3, %v2537_v9, 0.0  ;;  %v4065_v9 = vld [vmem:[%s5347_s4 + $0x30] sm:$0xff]  }
0x2d50   :  { %2543 = vadd.xlane.f32.xlu1 %v2542_v10  ;;  %2539 = vadd.xlane.f32.xlu0 %v2538_v50  ;;  %v4066_v10 = vld [vmem:[%s5347_s4 + $0x38] sm:$0xff]   ;;  %v3125_v50 = vsel %vm2329_vm6, 1.0, %v4097_v3 }
0x2d66   :  { %2560 = vrot.lane.b32.xlu0 %v5157_v41, %s4102_s25 }
0x2d6a   :  { %2671 = vperm.xlu0 %3878, %v3136_v29   ;;  %v5266_v29 = vmax.f32 %v5132_v17, %v3125_v50  ;;  %v4068_v17 = vld [vmem:[%s5349_s6 + $0x8] sm:$0xff]  }
0x2d6c   :  { %vm2664_vm13 = vcmp.gt.f32.partialorder %v5266_v29, 0.0 }
0x2ddd   :  { %v2544_v21 = vpop.xlane.xlu1 %2543  ;;  %v2540_v52 = vpop.xlane.xlu0 %2539 }
0x2dde   :  { %v2545_v30 = vmax.f32 %v2540_v52, %v2544_v21 }
0x2de0   :  { %v2546_v33 = vsub.f32 %v2540_v52, %v2545_v30  ;;  %v2549_v53 = vsub.f32 %v2544_v21, %v2545_v30 }
0x2de1   :  { %v2561_v58 = vpop.permute.xlu0 %2560 }
0x2de2   :  { %v2547_v34 = vmul.f32 1.442695, %v2546_v33  ;;  %v2550_v1 = vmul.f32 1.442695, %v2549_v53 }
0x2de4   :  { %4004 = vpow2.f32 %v2547_v34 }
0x2de5   :  { %4006 = vpow2.f32 %v2550_v1 }
0x2de9   :  { %v5239_v6 = vpop.permute.xlu0 %2671 }
0x2dea   :  { %vm2673_vm11 = vcmp.eq.s32.totalorder %v4265_v14, %v5239_v6 }
0x2deb   :  { %vm3138_vm12 = vmpackc.low %vm2673_vm11, %vm2673_vm11 }
0x2dee   :  { %v4005_v36 = vpop.eup %4004 }
0x2def   :  { %v4007_v57 = vpop.eup %4006 }
0x2df0   :  { %v2552_v5 = vadd.f32 %v4007_v57, %v4005_v36 }
0x2df2   :  { %4008 = vrcp.f32 %v2552_v5 }
0x2dfc   :  { %v4009_v54 = vpop.eup %4008 }
0x2dfd   :  { %v2554_v56 = vmul.f32 %v4009_v54, %v4005_v36  ;;  %v2556_v59 = vmul.f32 %v4009_v54, %v4007_v57 }
0x2dff   :  { %v2555_v43 = vmul.f32 %v5189_v62, %v2554_v56  ;;  %v2557_v24 = vmul.f32 %v5195_v63, %v2556_v59 }
0x2e01   :  { %v2558_v60 = vadd.f32 %v2557_v24, %v2555_v43 }
0x2e03   :  { %2564 = vrot.lane.b32.xlu1 %v2558_v60, %s4101_s18 }
0x2e75   :  { %v2565_v44 = vpop.permute.xlu1 %2564 }
0x2e76   :  { %v2567_v25 = vsel %vm241_vm3, %v2561_v58, %v2565_v44 }
0x2e77   :  { %v2568_v32 = vpack.c.bf16 %v2567_v25, %v2567_v25 }
0x2e79   :  { %3793 = vmatmul.mubr.msk.bf16.vlgmr.msra.gmra.mrb[108].mxu1 %vm493_vm5, %v2568_v32 }
0x2e7a   :  { %3825 = vmatpush3.bf16.msra.mxu1 %v4057_v23  ;;  %3828 = vmatprep.mubr.msk.bf16.mxu1 %vm4098_vm0, %v4097_v3 }
0x2e7b   :  { %3826 = vmatprep.subr.bf16.mxu1 %v4097_v3 }
0x2e7e   :  { %3827 = vmatpush3.bf16.msra.mxu1 %v4058_v26 }
0x2e7f   :  { %3832 = vmatprep.subr.bf16.mxu1 %v4097_v3 }
0x2f4c   :  { %v2606_v0 = vpop.f32.mrb[108].mxu1 }
0x2f4d   :  { %v2607_v27 = vadd.f32 %v4980_v55, %v2606_v0  ;;  %v3794_v35 = vpop.f32.mrb[109].mxu1 }
0x2f4e   :  { %v2609_v47 = vpop.f32.mrb[110].mxu1 }
0x2f4f   :  { %v2613_v48 = vmul.f32 1.442695, %v2607_v27  ;;  %v3795_v40 = vpop.f32.mrb[111].mxu1  ;;  %vm2612_vm10 = vcmp.gt.f32.partialorder %v2607_v27, 0.0 }
0x2f51   :  { %4010 = vpow2.f32 %v2613_v48 }
0x2f5b   :  { %v4011_v42 = vpop.eup %4010 }
0x2f5c   :  { %v3134_v31 = vadd.f32 -1.0, %v4011_v42 }
0x2f5e   :  { %v2616_v28 = vmul.f32 1.6732632, %v3134_v31 }
0x2f60   :  { %v2617_v46 = vsel %vm2612_vm10, %v2607_v27, %v2616_v28 }
0x2f61   :  { %v2618_v51 = vmul.f32 1.050701, %v2617_v46 }
0x2f63   :  { %v2619_v12 = vpack.c.bf16 %v2618_v51, %v2618_v51 }
0x2f65   :  { %3801 = vmatmul.mubr.msk.bf16.vlgmr.msra.gmra.mrb[52].mxu0 %vm241_vm3, %v2619_v12 }
0x2f66   :  { %3805 = vmatpush3.bf16.msra.mxu0 %v4059_v11  ;;  %3820 = vmatprep.mubr.msk.bf16.mxu0 %vm4098_vm0, %v4097_v3 }
0x2f67   :  { %3806 = vmatprep.subr.bf16.mxu0 %v4097_v3 }
0x2f6a   :  { %3807 = vmatpush3.bf16.msra.mxu0 %v4060_v49 }
0x2f6b   :  { %3808 = vmatprep.subr.bf16.mxu0 %v4097_v3 }
0x2f6e   :  { %3809 = vmatpush3.bf16.msra.mxu0 %v4061_v7 }
0x2f6f   :  { %3810 = vmatprep.subr.bf16.mxu0 %v4097_v3 }
0x2f72   :  { %3811 = vmatpush3.bf16.msra.mxu0 %v4062_v20 }
0x2f73   :  { %3812 = vmatprep.subr.bf16.mxu0 %v4097_v3 }
0x2f76   :  { %3813 = vmatpush3.bf16.msra.mxu0 %v4063_v22 }
0x2f77   :  { %3814 = vmatprep.subr.bf16.mxu0 %v4097_v3 }
0x2f7a   :  { %3815 = vmatpush3.bf16.msra.mxu0 %v4064_v4 }
0x2f7b   :  { %3816 = vmatprep.subr.bf16.mxu0 %v4097_v3 }
0x2f7e   :  { %3817 = vmatpush3.bf16.msra.mxu0 %v4065_v9 }
0x2f7f   :  { %3818 = vmatprep.subr.bf16.mxu0 %v4097_v3 }
0x2f82   :  { %3819 = vmatpush3.bf16.msra.mxu0 %v4066_v10 }
0x2f83   :  { %3860 = vmatprep.subr.bf16.mxu0 %v4097_v3 }
0x2f85   :  { %3821 = vmatmul.mubr.msk.bf16.vlgmr.msra.gmra.mrb[56].mxu0 %vm3138_vm12, %v4099_v16 }
0x2f86   :  { %3861 = vmatpush3.bf16.msra.mxu0 %v4864_v61  ;;  %3864 = vmatprep.mubr.msk.bf16.mxu0 %vm4098_vm0, %v4097_v3 }
0x2f87   :  { %3862 = vmatprep.subr.bf16.mxu0 %v4097_v3 }
0x2f8a   :  { %3863 = vmatpush3.bf16.msra.mxu0 %v4873_v18 }
0x3038   :  { %v2657_v21 = vpop.f32.mrb[52].mxu0 }
0x3039   :  { %v2658_v16 = vadd.f32 %v5027_v13, %v2657_v21  ;;  %v3802_v52 = vpop.f32.mrb[53].mxu0 }
0x303a   :  { %v2660_v61 = vpop.f32.mrb[54].mxu0 }
0x303b   :  { %v2665_v30 = vsel %vm2664_vm13, -10000000.0, %v2658_v16  ;;  %v3803_v33 = vpop.f32.mrb[55].mxu0 }
0x303c   :  { %2667 = vst [vmem:[#allocation2 + $0x30] sm:$0xff] %v2665_v30 }
0x3058   :  { %v2711_v53 = vpop.f32.mrb[56].mxu0 }
0x3059   :  { %v2717_v18 = vpack.c.bf16 %v2711_v53, %v2711_v53  ;;  %v3822_v34 = vpop.f32.mrb[57].mxu0 }
0x305a   :  { %v2714_v1 = vpop.f32.mrb[58].mxu0 }
0x305b   :  { %v3823_v36 = vpop.f32.mrb[59].mxu0  ;;  %3829 = vmatmul.mubr.msk.bf16.vlgmr.msra.gmra.mrb[112].mxu1 %vm241_vm3, %v2717_v18 }
0x305c   :  { %3833 = vmatpush3.bf16.msra.mxu1 %v4067_v19  ;;  %3836 = vmatprep.mubr.msk.bf16.mxu1 %vm4098_vm0, %v4097_v3 }
0x305d   :  { %3834 = vmatprep.subr.bf16.mxu1 %v4097_v3 }
0x3060   :  { %3835 = vmatpush3.bf16.msra.mxu1 %v4068_v17 }
0x3061   :  { %3840 = vmatprep.subr.bf16.mxu1 %v4097_v3 }
0x3063   :  { %3837 = vmatmul.mubr.msk.bf16.vlgmr.msra.gmra.mrb[116].mxu1 %vm241_vm3, %v5162_v15  ;;  %v4069_v15 = vld [vmem:[%s5351_s8] ss:$0 sm:$0xff] }
0x3064   :  { %3841 = vmatpush3.bf16.msra.mxu1 %v4898_v37  ;;  %3844 = vmatprep.mubr.msk.bf16.mxu1 %vm4098_vm0, %v4097_v3 }
0x3065   :  { %3842 = vmatprep.subr.bf16.mxu1 %v4097_v3 }
0x3068   :  { %3843 = vmatpush3.bf16.msra.mxu1 %v4907_v8  ;;  %v4070_v8 = vld [vmem:[%s5350_s7] ss:$0 sm:$0xff] }
0x3069   :  { %3848 = vmatprep.subr.bf16.mxu1 %v4097_v3 }
0x312e   :  { %v2755_v57 = vpop.f32.mrb[112].mxu1 }
0x312f   :  { %v3830_v5 = vpop.f32.mrb[113].mxu1  ;;  %v2756_v58 = vadd.f32 %v4070_v8, %v2755_v57 }
0x3130   :  { %v2758_v54 = vpop.f32.mrb[114].mxu1 }
0x3131   :  { %v3831_v56 = vpop.f32.mrb[115].mxu1 }
0x3136   :  { %v2795_v59 = vpop.f32.mrb[116].mxu1 }
0x3137   :  { %v2796_v43 = vadd.f32 %v4069_v15, %v2795_v59  ;;  %v3838_v37 = vpop.f32.mrb[117].mxu1 }
0x3138   :  { %v2798_v24 = vpop.f32.mrb[118].mxu1 }
0x3139   :  { %2809 = vrot.lane.b32.xlu1 %v2796_v43, %s4100_s3  ;;  %v3839_v60 = vpop.f32.mrb[119].mxu1  ;;  %v2801_v44 = vadd.f32 %v2796_v43, %v2756_v58 }
0x313b   :  { %v3142_v25 = vmul.f32 -1.442695, %v2801_v44 }
0x313d   :  { %4012 = vpow2.f32 %v3142_v25 }
0x3147   :  { %v4013_v32 = vpop.eup %4012 }
0x3148   :  { %v2805_v23 = vadd.f32 1.0, %v4013_v32 }
0x314a   :  { %4014 = vrcp.f32 %v2805_v23 }
0x3154   :  { %v4015_v26 = vpop.eup %4014 }
0x3155   :  { %v2819_v40 = vsub.f32 1.0, %v4015_v26  ;;  %v2825_v31 = vmul.f32 %v4015_v26, %v5157_v41 }
0x31ab   :  { %v2810_v0 = vpop.permute.xlu1 %2809 }
0x31ac   :  { %v2812_v27 = vmul.f32 %v4015_v26, %v2810_v0 }
0x31ae   :  { %2814 = vrot.lane.b32.xlu0 %v2812_v27, %s4100_s3 }
0x3220   :  { %v2815_v35 = vpop.permute.xlu0 %2814 }
0x3221   :  { %v2817_v47 = vadd.f32 %v2815_v35, %v2756_v58  ;;  %v3137_v35 = vsel %vm2673_vm11, 1.0, %v4097_v3 }
0x3223   :  { %4016 = vtanh.f32 %v2817_v47 }
0x322d   :  { %v4017_v48 = vpop.eup %4016 }
0x322e   :  { %2821 = vrot.lane.b32.xlu1 %v4017_v48, %s4102_s25 }
0x32a0   :  { %v2822_v42 = vpop.permute.xlu1 %2821 }
0x32a1   :  { %v2824_v28 = vmul.f32 %v2822_v42, %v2819_v40 }
0x32a3   :  { %v2826_v46 = vadd.f32 %v2825_v31, %v2824_v28 }
0x32a5   :  { %v2827_v51 = vpack.c.bf16 %v2826_v46, %v2826_v46 }
0x32a7   :  { %2829 = vrot.lane.b32.xlu0 %v2827_v51, %s4102_s25 }
0x3319   :  { %v2830_v12 = vpop.permute.xlu0 %2829 }
0x331a   :  { %3845 = vmatmul.mubr.msk.bf16.vlgmr.msra.gmra.mrb[120].mxu1 %vm241_vm3, %v2830_v12 }
0x331b   :  { %3849 = vmatpush3.bf16.msra.mxu1 %v4929_v38  ;;  %3856 = vmatprep.mubr.msk.bf16.mxu1 %vm4098_vm0, %v4097_v3  ;;  %v4071_v38 = vld [vmem:[%s5353_s10] ss:$0 sm:$0xff]  ;;  %s4103_s10 = smov [#allocation2]  }
0x331c   :  { %3850 = vmatprep.subr.bf16.mxu1 %v4097_v3  ;;  %s3017_s3 = sshll.u32 %s4103_s10, 4  ;;  %s3018_s3 = int_to_ptr.vmem [resolvable:$true] %s3017_s3 }
0x331d   :  { %p4077_p1 = scmp.lt.s32.totalorder %s3018_s3, %s3018_s3 }
0x331f   :  { %3851 = vmatpush3.bf16.msra.mxu1 %v4938_v2 }
0x3320   :  { %3852 = vmatprep.subr.bf16.mxu1 %v4097_v3 }
0x3323   :  { %3853 = vmatpush3.bf16.msra.mxu1 %v4945_v39 }
0x3324   :  { %3854 = vmatprep.subr.bf16.mxu1 %v4097_v3 }
0x3327   :  { %3855 = vmatpush3.bf16.msra.mxu1 %v4952_v45 }
0x33ed   :  { %v2868_v41 = vpop.f32.mrb[120].mxu1 }
0x33ee   :  { %v2869_v11 = vadd.f32 %v4071_v38, %v2868_v41  ;;  %v3846_v49 = vpop.f32.mrb[121].mxu1 }
0x33ef   :  { %v2871_v7 = vpop.f32.mrb[122].mxu1 }
0x33f0   :  { %v2875_v20 = vmul.f32 1.442695, %v2869_v11  ;;  %v3847_v22 = vpop.f32.mrb[123].mxu1  ;;  %vm2874_vm0 = vcmp.gt.f32.partialorder %v2869_v11, 0.0 }
0x33f2   :  { %4018 = vpow2.f32 %v2875_v20 }
0x33fc   :  { %v4019_v2 = vpop.eup %4018 }
0x33fd   :  { %v3144_v4 = vadd.f32 -1.0, %v4019_v2 }
0x33ff   :  { %v2878_v9 = vmul.f32 1.6732632, %v3144_v4 }
0x3401   :  { %v2879_v39 = vsel %vm2874_vm0, %v2869_v11, %v2878_v9 }
0x3402   :  { %v2880_v10 = vmul.f32 1.050701, %v2879_v39 }
0x3404   :  { %v2885_v50 = vmul.f32 %v5195_v63, %v2880_v10  ;;  %v2881_v45 = vmul.f32 %v5189_v62, %v2880_v10 }
0x3406   :  { %v2886_v21 = vsel %vm241_vm3, %v2885_v50, 0.0  ;;  %v2882_v16 = vsel %vm241_vm3, %v2881_v45, 0.0 }
0x3407   :  { %2887 = vadd.xlane.f32.xlu0 %v2886_v21  ;;  %2883 = vadd.xlane.f32.xlu1 %v2882_v16 }
0x341d   :  { %2904 = vrot.lane.b32.xlu0 %v2826_v46, %s4102_s25 }
0x3494   :  { %v2888_v52 = vpop.xlane.xlu0 %2887  ;;  %v2884_v61 = vpop.xlane.xlu1 %2883 }
0x3495   :  { %v2889_v30 = vmax.f32 %v2884_v61, %v2888_v52 }
0x3497   :  { %v2890_v33 = vsub.f32 %v2884_v61, %v2889_v30  ;;  %v2893_v53 = vsub.f32 %v2888_v52, %v2889_v30 }
0x3498   :  { %v2905_v15 = vpop.permute.xlu0 %2904 }
0x3499   :  { %v2891_v18 = vmul.f32 1.442695, %v2890_v33  ;;  %v2894_v34 = vmul.f32 1.442695, %v2893_v53 }
0x349b   :  { %4020 = vpow2.f32 %v2891_v18 }
0x349c   :  { %4022 = vpow2.f32 %v2894_v34 }
0x34a5   :  { %v4021_v1 = vpop.eup %4020 }
0x34a6   :  { %v4023_v36 = vpop.eup %4022 }
0x34a7   :  { %v2896_v19 = vadd.f32 %v4023_v36, %v4021_v1 }
0x34a9   :  { %4024 = vrcp.f32 %v2896_v19 }
0x34b3   :  { %v4025_v17 = vpop.eup %4024 }
0x34b4   :  { %v2898_v57 = vmul.f32 %v4025_v17, %v4021_v1  ;;  %v2900_v5 = vmul.f32 %v4025_v17, %v4023_v36 }
0x34b6   :  { %v2899_v54 = vmul.f32 %v5189_v62, %v2898_v57  ;;  %v2901_v56 = vmul.f32 %v5195_v63, %v2900_v5 }
0x34b8   :  { %v2902_v59 = vadd.f32 %v2901_v56, %v2899_v54 }
0x34ba   :  { %2908 = vrot.lane.b32.xlu1 %v2902_v59, %s4101_s18  ;;  %s4072_s18 = scalar_lea.vmem %s3018_s3, 1024 }
0x34bb   :  { %p4073_p0 = scmp.ne.s32.totalorder %s3018_s3, %s4072_s18  ;;  %p4078_p2 = scmp.lt.s32.totalorder %s4072_s18, %s4072_s18 }
0x34bd   :  { %p4079_p3 = por %p4078_p2, %p4077_p1 }
0x34bf   :  { %p4080_p4 = pnand %p4079_p3, %p4073_p0 }
0x352c   :  { %v2909_v43 = vpop.permute.xlu1 %2908 }
0x352d   :  { %v2911_v37 = vsel %vm241_vm3, %v2905_v15, %v2909_v43 }
0x352e   :  { %v2912_v24 = vpack.c.bf16 %v2911_v37, %v2911_v37 }
0x3530   :  { %3857 = vmatmul.mubr.msk.bf16.vlgmr.msra.gmra.mrb[124].mxu1 %vm493_vm5, %v2912_v24 }
0x3603   :  { %v2950_v60 = vpop.f32.mrb[124].mxu1 }
0x3604   :  { %v2951_v8 = vadd.f32 %v4980_v55, %v2950_v60  ;;  %v3858_v58 = vpop.f32.mrb[125].mxu1  ;;  %v3007_v55 = vmax.f32 %v5266_v29, %v3137_v35 }
0x3605   :  { %v2953_v44 = vpop.f32.mrb[126].mxu1 }
0x3606   :  { %v2957_v25 = vmul.f32 1.442695, %v2951_v8  ;;  %v3859_v32 = vpop.f32.mrb[127].mxu1  ;;  %vm2956_vm14 = vcmp.gt.f32.partialorder %v2951_v8, 0.0  ;;  %vm3008_vm5 = vcmp.gt.f32.partialorder %v3007_v55, 0.0 }
0x3608   :  { %4026 = vpow2.f32 %v2957_v25 }
0x3612   :  { %v4027_v62 = vpop.eup %4026 }
0x3613   :  { %v3146_v63 = vadd.f32 -1.0, %v4027_v62 }
0x3615   :  { %v2960_v23 = vmul.f32 1.6732632, %v3146_v63 }
0x3617   :  { %v2961_v26 = vsel %vm2956_vm14, %v2951_v8, %v2960_v23 }
0x3618   :  { %v2962_v0 = vmul.f32 1.050701, %v2961_v26 }
0x361a   :  { %v2963_v27 = vpack.c.bf16 %v2962_v0, %v2962_v0 }
0x361c   :  { %3865 = vmatmul.mubr.msk.bf16.vlgmr.msra.gmra.mrb[60].mxu0 %vm241_vm3, %v2963_v27 }
0x36ef   :  { %v3001_v47 = vpop.f32.mrb[60].mxu0 }
0x36f0   :  { %v3002_v48 = vadd.f32 %v5027_v13, %v3001_v47  ;;  %v3866_v40 = vpop.f32.mrb[61].mxu0 }
0x36f1   :  { %v3004_v42 = vpop.f32.mrb[62].mxu0 }
0x36f2   :  { %v3009_v31 = vsel %vm3008_vm5, -10000000.0, %v3002_v48  ;;  %v3867_v28 = vpop.f32.mrb[63].mxu0 }
0x36f3   :  { %3011 = vst [vmem:[#allocation2 + $0x38] sm:$0xff] %v3009_v31 }
0x36f4   :  { %4083 = shalt.err (!%p4080_p4)
}
0x36f5   :  { %s4084_s22 = scalar_lea.hbm %s5358_s15, 1024 }
0x36f6   :  { %p4085_p5 = scmp.ne.s32.totalorder %s5358_s15, %s4084_s22  ;;  %p4088_p6 = scmp.lt.u32.totalorder %s4084_s22, %s5358_s15 }
0x36f8   :  { %p4090_p7 = pnand %p4088_p6, %p4085_p5 }
0x36fa   :  { %4093 = shalt.err (!%p4090_p7)
}
0x36fb   :  { %s4104_s27 = smov 128   ;;  %s4105_s28 = smov 8  }
0x36fc   :  { %3023 = dma.vmem_to_hbm [thread:$0]  %s3018_s3, 1024, %s5358_s15, [#allocation3], %s4104_s27, %s4104_s27, %s4105_s28  }
0x36fd   :  { %4094 = dma.done.wait [#allocation3], 1024  }
0x36fe   :  { %4095 = vsyncadd [#allocation3], 4294966272 }
0x36ff   :  { %3027 = vsyncpa [#allocation3], 1 }

</bundles_post_ra>
